<compile_context>
chip_gen: v6e
topology: v6e:2x2x1
jax: 0.10.0
libtpu: 0.0.40
codegen_flags: <defaults>
</compile_context>

<pallas_src>
import functools

import numpy as np
import jax
import jax.numpy as jnp
from jax import lax
from jax.experimental import pallas as pl
from jax.experimental.pallas import tpu as pltpu

_INV_SQRT2 = 0.7071067811865476
_ROW_TILE = 256  # i-row tile (multiple of 8); keeps blocks modest on v7x's 64 MiB VMEM


def _gelu_exact(x):
    # torch.nn.GELU() default: 0.5 * x * (1 + erf(x / sqrt(2)))
    return 0.5 * x * (1.0 + lax.erf(x * _INV_SQRT2))


def _geometric_pe_kernel(x_ref, wemb_ref, be_ref,
                         w1_ref, b1_ref, w2_ref, b2_ref,
                         out_ref, *, dims):
    d = x_ref[...]                                                # (Ti, Lj) f32, lane-dense

    # net: Linear(1, dims) -> GELU -> Linear(dims, 1) -> GELU, accumulated one hidden
    # unit at a time so the live intermediate is a single (Ti, Lj) tile (no (dims,*,*)).
    def body(k, acc):
        return acc + w2_ref[k] * _gelu_exact(d * w1_ref[k] + b1_ref[k])

    acc = lax.fori_loop(0, dims, body, jnp.zeros_like(d), unroll=True)
    y = _gelu_exact(acc + b2_ref[0])

    # masked_fill(zero_distances_mask) + masked_fill(~(mask_i & mask_j)):
    # the wrapper zeroed `d` at exactly those positions, so one compare suffices.
    y = jnp.where(d == 0.0, 0.0, y)

    # Fused j-sum + embed Linear(1, d_model): a single MXU matmul against the
    # block-diagonal broadcast of `we` (+ tiled bias). Lane-dense output store.
    out_ref[...] = jnp.dot(y, wemb_ref[...],
                           preferred_element_type=jnp.float32,
                           precision=lax.Precision.HIGHEST) + be_ref[...]


def geometric_pe_dense(distances, mask, zero_distances_mask, params):
    """Dense [B, N, d_model] output (before the data-dependent x[mask] gather)."""
    f32 = jnp.float32
    B, N, _ = distances.shape
    dims = int(params["w1"].shape[0])
    d_model = int(params["we"].shape[0])

    # ---- host-side layout plumbing (fused by XLA into one pass over the inputs) ----
    # Fold node mask and zero-distance mask into the distances: every position whose
    # MLP output must be zeroed gets distance 0; the kernel re-derives it as d == 0.
    valid = mask[:, :, None] & mask[:, None, :]                           # (B,N,N) bool
    d_in = jnp.where(zero_distances_mask | ~valid, 0.0, distances.astype(f32))

    # Lane-dense fold: pack F consecutive i-rows onto the 128-lane axis when that
    # folds evenly; fold batch into the row axis (batch is just more rows).
    if N < 128 and 128 % N == 0 and N % (128 // N) == 0:
        F = 128 // N
    else:
        F = 1
    Ri, Lj, Fd = N // F, F * N, F * d_model
    x = d_in.reshape(B * Ri, Lj)                                          # (Rtot, Lj)
    Rtot = B * Ri

    # Row tiling: one grid step per row tile, all steps independent ("parallel").
    if Rtot <= _ROW_TILE:
        Ti, Rpad = Rtot, Rtot
    else:
        Ti = _ROW_TILE
        Rpad = ((Rtot + Ti - 1) // Ti) * Ti
        x = jnp.pad(x, ((0, Rpad - Rtot), (0, 0)))                        # padded rows: d=0 -> y=0

    # Block-diagonal broadcast of the embed weight: W[g*N + j, g*d_model + m] = we[m],
    # so y @ W computes we[m] * sum_j y[i, j] for every folded i-row in one MXU pass.
    we = params["we"].astype(f32).reshape(d_model)
    w_emb = jnp.kron(jnp.eye(F, dtype=f32),
                     jnp.broadcast_to(we[None, :], (N, d_model)))         # (Lj, Fd)
    be_tile = jnp.tile(params["be"].astype(f32).reshape(d_model), F).reshape(1, Fd)

    w1 = params["w1"].astype(f32).reshape(dims)
    b1 = params["b1"].astype(f32).reshape(dims)
    w2 = params["w2"].astype(f32).reshape(dims)
    b2 = params["b2"].astype(f32).reshape(1)

    smem = pl.BlockSpec(memory_space=pltpu.MemorySpace.SMEM)
    out = pl.pallas_call(
        functools.partial(_geometric_pe_kernel, dims=dims),
        out_shape=jax.ShapeDtypeStruct((Rpad, Fd), f32),
        grid=(Rpad // Ti,),
        in_specs=[
            pl.BlockSpec((Ti, Lj), lambda r: (r, 0)),   # folded, pre-masked distances
            pl.BlockSpec((Lj, Fd), lambda r: (0, 0)),   # block-diag `we` (resident)
            pl.BlockSpec((1, Fd), lambda r: (0, 0)),    # tiled `be`
            smem, smem, smem, smem,                     # w1, b1, w2, b2 scalars in SMEM
        ],
        out_specs=pl.BlockSpec((Ti, Fd), lambda r: (r, 0)),
        compiler_params=pltpu.CompilerParams(dimension_semantics=("parallel",)),
    )(x, w_emb, be_tile, w1, b1, w2, b2)

    out = out[:Rtot].reshape(B, Ri, F, d_model).reshape(B, N, d_model)
    return out


def geometric_pe_reference(distances, mask, zero_distances_mask, params):
    """Pure-JAX reference mirroring the PyTorch forward (no matmuls -> exact f32)."""
    d = distances.astype(jnp.float32)[..., None]                          # [B,N,N,1]
    h = jax.nn.gelu(d * params["w1"] + params["b1"], approximate=False)   # [B,N,N,dims]
    z = jnp.sum(h * params["w2"], axis=-1, keepdims=True) + params["b2"]  # [B,N,N,1]
    y = jax.nn.gelu(z, approximate=False)
    dm = mask[:, :, None] & mask[:, None, :]                              # [B,N,N]
    y = jnp.where(zero_distances_mask[..., None], 0.0, y)
    y = jnp.where(~dm[..., None], 0.0, y)
    s = jnp.sum(y, axis=-2)                                               # [B,N,1]
    return s * params["we"][None, None, :] + params["be"]                 # [B,N,d_model]


if __name__ == "__main__":
    key = jax.random.PRNGKey(0)
    B, N, d_model, dims = 2, 16, 32, 50
    ks = jax.random.split(key, 8)

    # symmetric distances with zero diagonal
    dist = jnp.abs(jax.random.normal(ks[0], (B, N, N), jnp.float32))
    dist = 0.5 * (dist + jnp.swapaxes(dist, -1, -2))
    dist = dist * (1.0 - jnp.eye(N, dtype=jnp.float32)[None])
    zero_distances_mask = dist == 0.0

    valid_counts = jnp.array([13, 16])
    mask = jnp.arange(N)[None, :] < valid_counts[:, None]                 # [B, N] bool

    params = {
        "w1": jax.random.normal(ks[1], (dims,), jnp.float32) * 0.5,   # Linear(1, dims).weight[:, 0]
        "b1": jax.random.normal(ks[2], (dims,), jnp.float32) * 0.1,
        "w2": jax.random.normal(ks[3], (dims,), jnp.float32) * 0.5,   # Linear(dims, 1).weight[0, :]
        "b2": jax.random.normal(ks[4], (), jnp.float32) * 0.1,
        "we": jax.random.normal(ks[5], (d_model,), jnp.float32) * 0.5,  # Linear(1, d_model).weight[:, 0]
        "be": jax.random.normal(ks[6], (d_model,), jnp.float32) * 0.1,
    }

    dense = jax.block_until_ready(geometric_pe_dense(dist, mask, zero_distances_mask, params))
    ref = jax.block_until_ready(geometric_pe_reference(dist, mask, zero_distances_mask, params))
    np.testing.assert_allclose(np.asarray(dense), np.asarray(ref), rtol=1e-4, atol=1e-4)

    # final `x[batch.mask]` — data-dependent output shape, done outside the kernel
    out = dense[mask]                                                     # [num_valid_nodes, d_model]
    jax.block_until_ready(out)
    print("KERNEL_OK")
</pallas_src>

<mosaic_0001>
module attributes {stable_mosaic.version = 11 : i64} {
  func.func @_geometric_pe_kernel(%arg0: i32, %arg1: memref<4x128xf32, #tpu.memory_space<vmem>>, %arg2: memref<128x256xf32, #tpu.memory_space<vmem>>, %arg3: memref<1x256xf32, #tpu.memory_space<vmem>>, %arg4: memref<50xf32, #tpu.memory_space<smem>>, %arg5: memref<50xf32, #tpu.memory_space<smem>>, %arg6: memref<50xf32, #tpu.memory_space<smem>>, %arg7: memref<1xf32, #tpu.memory_space<smem>>, %arg8: memref<4x256xf32, #tpu.memory_space<vmem>>) attributes {dimension_semantics = [#tpu.dimension_semantics<parallel>], iteration_bounds = array<i64: 1>, scalar_prefetch = 0 : i64, scratch_operands = 0 : i64, tpu.core_type = #tpu.core_type<tc>, window_params = [{transform_indices = @transform_0, window_bounds = array<i64: 4, 128>}, {pipeline_mode = #tpu.pipeline_mode<synchronous>, transform_indices = @transform_1, window_bounds = array<i64: 128, 256>}, {pipeline_mode = #tpu.pipeline_mode<synchronous>, transform_indices = @transform_2, window_bounds = array<i64: 1, 256>}, {transform_indices = @transform_3, window_bounds = array<i64: 50>}, {transform_indices = @transform_4, window_bounds = array<i64: 50>}, {transform_indices = @transform_5, window_bounds = array<i64: 50>}, {transform_indices = @transform_6, window_bounds = array<i64: 1>}, {transform_indices = @transform_7, window_bounds = array<i64: 4, 256>}]} {
    %c0 = arith.constant 0 : index
    %c0_0 = arith.constant 0 : index
    %0 = vector.load %arg1[%c0, %c0_0] : memref<4x128xf32, #tpu.memory_space<vmem>>, vector<4x128xf32>
    %cst = arith.constant 0.000000e+00 : f32
    %1 = vector.broadcast %cst : f32 to vector<4x128xf32>
    %c0_i32 = arith.constant 0 : i32
    %2 = arith.index_cast %c0_i32 : i32 to index
    %3 = memref.load %arg6[%2] : memref<50xf32, #tpu.memory_space<smem>>
    %4 = arith.index_cast %c0_i32 : i32 to index
    %5 = memref.load %arg4[%4] : memref<50xf32, #tpu.memory_space<smem>>
    %6 = vector.broadcast %5 : f32 to vector<4x128xf32>
    %7 = arith.mulf %0, %6 : vector<4x128xf32>
    %8 = arith.index_cast %c0_i32 : i32 to index
    %9 = memref.load %arg5[%8] : memref<50xf32, #tpu.memory_space<smem>>
    %10 = vector.broadcast %9 : f32 to vector<4x128xf32>
    %11 = arith.addf %7, %10 : vector<4x128xf32>
    %cst_1 = arith.constant 5.000000e-01 : f32
    %12 = vector.broadcast %cst_1 : f32 to vector<4x128xf32>
    %13 = arith.mulf %12, %11 : vector<4x128xf32>
    %cst_2 = arith.constant 0.707106769 : f32
    %14 = vector.broadcast %cst_2 : f32 to vector<4x128xf32>
    %15 = arith.mulf %11, %14 : vector<4x128xf32>
    %16 = math.erf %15 : vector<4x128xf32>
    %cst_3 = arith.constant 1.000000e+00 : f32
    %17 = vector.broadcast %cst_3 : f32 to vector<4x128xf32>
    %18 = arith.addf %17, %16 : vector<4x128xf32>
    %19 = arith.mulf %13, %18 : vector<4x128xf32>
    %20 = vector.broadcast %3 : f32 to vector<4x128xf32>
    %21 = arith.mulf %20, %19 : vector<4x128xf32>
    %22 = arith.addf %1, %21 : vector<4x128xf32>
    %c1_i32 = arith.constant 1 : i32
    %23 = arith.index_cast %c1_i32 : i32 to index
    %24 = memref.load %arg6[%23] : memref<50xf32, #tpu.memory_space<smem>>
    %25 = arith.index_cast %c1_i32 : i32 to index
    %26 = memref.load %arg4[%25] : memref<50xf32, #tpu.memory_space<smem>>
    %27 = vector.broadcast %26 : f32 to vector<4x128xf32>
    %28 = arith.mulf %0, %27 : vector<4x128xf32>
    %29 = arith.index_cast %c1_i32 : i32 to index
    %30 = memref.load %arg5[%29] : memref<50xf32, #tpu.memory_space<smem>>
    %31 = vector.broadcast %30 : f32 to vector<4x128xf32>
    %32 = arith.addf %28, %31 : vector<4x128xf32>
    %cst_4 = arith.constant 5.000000e-01 : f32
    %33 = vector.broadcast %cst_4 : f32 to vector<4x128xf32>
    %34 = arith.mulf %33, %32 : vector<4x128xf32>
    %cst_5 = arith.constant 0.707106769 : f32
    %35 = vector.broadcast %cst_5 : f32 to vector<4x128xf32>
    %36 = arith.mulf %32, %35 : vector<4x128xf32>
    %37 = math.erf %36 : vector<4x128xf32>
    %cst_6 = arith.constant 1.000000e+00 : f32
    %38 = vector.broadcast %cst_6 : f32 to vector<4x128xf32>
    %39 = arith.addf %38, %37 : vector<4x128xf32>
    %40 = arith.mulf %34, %39 : vector<4x128xf32>
    %41 = vector.broadcast %24 : f32 to vector<4x128xf32>
    %42 = arith.mulf %41, %40 : vector<4x128xf32>
    %43 = arith.addf %22, %42 : vector<4x128xf32>
    %c2_i32 = arith.constant 2 : i32
    %44 = arith.index_cast %c2_i32 : i32 to index
    %45 = memref.load %arg6[%44] : memref<50xf32, #tpu.memory_space<smem>>
    %46 = arith.index_cast %c2_i32 : i32 to index
    %47 = memref.load %arg4[%46] : memref<50xf32, #tpu.memory_space<smem>>
    %48 = vector.broadcast %47 : f32 to vector<4x128xf32>
    %49 = arith.mulf %0, %48 : vector<4x128xf32>
    %50 = arith.index_cast %c2_i32 : i32 to index
    %51 = memref.load %arg5[%50] : memref<50xf32, #tpu.memory_space<smem>>
    %52 = vector.broadcast %51 : f32 to vector<4x128xf32>
    %53 = arith.addf %49, %52 : vector<4x128xf32>
    %cst_7 = arith.constant 5.000000e-01 : f32
    %54 = vector.broadcast %cst_7 : f32 to vector<4x128xf32>
    %55 = arith.mulf %54, %53 : vector<4x128xf32>
    %cst_8 = arith.constant 0.707106769 : f32
    %56 = vector.broadcast %cst_8 : f32 to vector<4x128xf32>
    %57 = arith.mulf %53, %56 : vector<4x128xf32>
    %58 = math.erf %57 : vector<4x128xf32>
    %cst_9 = arith.constant 1.000000e+00 : f32
    %59 = vector.broadcast %cst_9 : f32 to vector<4x128xf32>
    %60 = arith.addf %59, %58 : vector<4x128xf32>
    %61 = arith.mulf %55, %60 : vector<4x128xf32>
    %62 = vector.broadcast %45 : f32 to vector<4x128xf32>
    %63 = arith.mulf %62, %61 : vector<4x128xf32>
    %64 = arith.addf %43, %63 : vector<4x128xf32>
    %c3_i32 = arith.constant 3 : i32
    %65 = arith.index_cast %c3_i32 : i32 to index
    %66 = memref.load %arg6[%65] : memref<50xf32, #tpu.memory_space<smem>>
    %67 = arith.index_cast %c3_i32 : i32 to index
    %68 = memref.load %arg4[%67] : memref<50xf32, #tpu.memory_space<smem>>
    %69 = vector.broadcast %68 : f32 to vector<4x128xf32>
    %70 = arith.mulf %0, %69 : vector<4x128xf32>
    %71 = arith.index_cast %c3_i32 : i32 to index
    %72 = memref.load %arg5[%71] : memref<50xf32, #tpu.memory_space<smem>>
    %73 = vector.broadcast %72 : f32 to vector<4x128xf32>
    %74 = arith.addf %70, %73 : vector<4x128xf32>
    %cst_10 = arith.constant 5.000000e-01 : f32
    %75 = vector.broadcast %cst_10 : f32 to vector<4x128xf32>
    %76 = arith.mulf %75, %74 : vector<4x128xf32>
    %cst_11 = arith.constant 0.707106769 : f32
    %77 = vector.broadcast %cst_11 : f32 to vector<4x128xf32>
    %78 = arith.mulf %74, %77 : vector<4x128xf32>
    %79 = math.erf %78 : vector<4x128xf32>
    %cst_12 = arith.constant 1.000000e+00 : f32
    %80 = vector.broadcast %cst_12 : f32 to vector<4x128xf32>
    %81 = arith.addf %80, %79 : vector<4x128xf32>
    %82 = arith.mulf %76, %81 : vector<4x128xf32>
    %83 = vector.broadcast %66 : f32 to vector<4x128xf32>
    %84 = arith.mulf %83, %82 : vector<4x128xf32>
    %85 = arith.addf %64, %84 : vector<4x128xf32>
    %c4_i32 = arith.constant 4 : i32
    %86 = arith.index_cast %c4_i32 : i32 to index
    %87 = memref.load %arg6[%86] : memref<50xf32, #tpu.memory_space<smem>>
    %88 = arith.index_cast %c4_i32 : i32 to index
    %89 = memref.load %arg4[%88] : memref<50xf32, #tpu.memory_space<smem>>
    %90 = vector.broadcast %89 : f32 to vector<4x128xf32>
    %91 = arith.mulf %0, %90 : vector<4x128xf32>
    %92 = arith.index_cast %c4_i32 : i32 to index
    %93 = memref.load %arg5[%92] : memref<50xf32, #tpu.memory_space<smem>>
    %94 = vector.broadcast %93 : f32 to vector<4x128xf32>
    %95 = arith.addf %91, %94 : vector<4x128xf32>
    %cst_13 = arith.constant 5.000000e-01 : f32
    %96 = vector.broadcast %cst_13 : f32 to vector<4x128xf32>
    %97 = arith.mulf %96, %95 : vector<4x128xf32>
    %cst_14 = arith.constant 0.707106769 : f32
    %98 = vector.broadcast %cst_14 : f32 to vector<4x128xf32>
    %99 = arith.mulf %95, %98 : vector<4x128xf32>
    %100 = math.erf %99 : vector<4x128xf32>
    %cst_15 = arith.constant 1.000000e+00 : f32
    %101 = vector.broadcast %cst_15 : f32 to vector<4x128xf32>
    %102 = arith.addf %101, %100 : vector<4x128xf32>
    %103 = arith.mulf %97, %102 : vector<4x128xf32>
    %104 = vector.broadcast %87 : f32 to vector<4x128xf32>
    %105 = arith.mulf %104, %103 : vector<4x128xf32>
    %106 = arith.addf %85, %105 : vector<4x128xf32>
    %c5_i32 = arith.constant 5 : i32
    %107 = arith.index_cast %c5_i32 : i32 to index
    %108 = memref.load %arg6[%107] : memref<50xf32, #tpu.memory_space<smem>>
    %109 = arith.index_cast %c5_i32 : i32 to index
    %110 = memref.load %arg4[%109] : memref<50xf32, #tpu.memory_space<smem>>
    %111 = vector.broadcast %110 : f32 to vector<4x128xf32>
    %112 = arith.mulf %0, %111 : vector<4x128xf32>
    %113 = arith.index_cast %c5_i32 : i32 to index
    %114 = memref.load %arg5[%113] : memref<50xf32, #tpu.memory_space<smem>>
    %115 = vector.broadcast %114 : f32 to vector<4x128xf32>
    %116 = arith.addf %112, %115 : vector<4x128xf32>
    %cst_16 = arith.constant 5.000000e-01 : f32
    %117 = vector.broadcast %cst_16 : f32 to vector<4x128xf32>
    %118 = arith.mulf %117, %116 : vector<4x128xf32>
    %cst_17 = arith.constant 0.707106769 : f32
    %119 = vector.broadcast %cst_17 : f32 to vector<4x128xf32>
    %120 = arith.mulf %116, %119 : vector<4x128xf32>
    %121 = math.erf %120 : vector<4x128xf32>
    %cst_18 = arith.constant 1.000000e+00 : f32
    %122 = vector.broadcast %cst_18 : f32 to vector<4x128xf32>
    %123 = arith.addf %122, %121 : vector<4x128xf32>
    %124 = arith.mulf %118, %123 : vector<4x128xf32>
    %125 = vector.broadcast %108 : f32 to vector<4x128xf32>
    %126 = arith.mulf %125, %124 : vector<4x128xf32>
    %127 = arith.addf %106, %126 : vector<4x128xf32>
    %c6_i32 = arith.constant 6 : i32
    %128 = arith.index_cast %c6_i32 : i32 to index
    %129 = memref.load %arg6[%128] : memref<50xf32, #tpu.memory_space<smem>>
    %130 = arith.index_cast %c6_i32 : i32 to index
    %131 = memref.load %arg4[%130] : memref<50xf32, #tpu.memory_space<smem>>
    %132 = vector.broadcast %131 : f32 to vector<4x128xf32>
    %133 = arith.mulf %0, %132 : vector<4x128xf32>
    %134 = arith.index_cast %c6_i32 : i32 to index
    %135 = memref.load %arg5[%134] : memref<50xf32, #tpu.memory_space<smem>>
    %136 = vector.broadcast %135 : f32 to vector<4x128xf32>
    %137 = arith.addf %133, %136 : vector<4x128xf32>
    %cst_19 = arith.constant 5.000000e-01 : f32
    %138 = vector.broadcast %cst_19 : f32 to vector<4x128xf32>
    %139 = arith.mulf %138, %137 : vector<4x128xf32>
    %cst_20 = arith.constant 0.707106769 : f32
    %140 = vector.broadcast %cst_20 : f32 to vector<4x128xf32>
    %141 = arith.mulf %137, %140 : vector<4x128xf32>
    %142 = math.erf %141 : vector<4x128xf32>
    %cst_21 = arith.constant 1.000000e+00 : f32
    %143 = vector.broadcast %cst_21 : f32 to vector<4x128xf32>
    %144 = arith.addf %143, %142 : vector<4x128xf32>
    %145 = arith.mulf %139, %144 : vector<4x128xf32>
    %146 = vector.broadcast %129 : f32 to vector<4x128xf32>
    %147 = arith.mulf %146, %145 : vector<4x128xf32>
    %148 = arith.addf %127, %147 : vector<4x128xf32>
    %c7_i32 = arith.constant 7 : i32
    %149 = arith.index_cast %c7_i32 : i32 to index
    %150 = memref.load %arg6[%149] : memref<50xf32, #tpu.memory_space<smem>>
    %151 = arith.index_cast %c7_i32 : i32 to index
    %152 = memref.load %arg4[%151] : memref<50xf32, #tpu.memory_space<smem>>
    %153 = vector.broadcast %152 : f32 to vector<4x128xf32>
    %154 = arith.mulf %0, %153 : vector<4x128xf32>
    %155 = arith.index_cast %c7_i32 : i32 to index
    %156 = memref.load %arg5[%155] : memref<50xf32, #tpu.memory_space<smem>>
    %157 = vector.broadcast %156 : f32 to vector<4x128xf32>
    %158 = arith.addf %154, %157 : vector<4x128xf32>
    %cst_22 = arith.constant 5.000000e-01 : f32
    %159 = vector.broadcast %cst_22 : f32 to vector<4x128xf32>
    %160 = arith.mulf %159, %158 : vector<4x128xf32>
    %cst_23 = arith.constant 0.707106769 : f32
    %161 = vector.broadcast %cst_23 : f32 to vector<4x128xf32>
    %162 = arith.mulf %158, %161 : vector<4x128xf32>
    %163 = math.erf %162 : vector<4x128xf32>
    %cst_24 = arith.constant 1.000000e+00 : f32
    %164 = vector.broadcast %cst_24 : f32 to vector<4x128xf32>
    %165 = arith.addf %164, %163 : vector<4x128xf32>
    %166 = arith.mulf %160, %165 : vector<4x128xf32>
    %167 = vector.broadcast %150 : f32 to vector<4x128xf32>
    %168 = arith.mulf %167, %166 : vector<4x128xf32>
    %169 = arith.addf %148, %168 : vector<4x128xf32>
    %c8_i32 = arith.constant 8 : i32
    %170 = arith.index_cast %c8_i32 : i32 to index
    %171 = memref.load %arg6[%170] : memref<50xf32, #tpu.memory_space<smem>>
    %172 = arith.index_cast %c8_i32 : i32 to index
    %173 = memref.load %arg4[%172] : memref<50xf32, #tpu.memory_space<smem>>
    %174 = vector.broadcast %173 : f32 to vector<4x128xf32>
    %175 = arith.mulf %0, %174 : vector<4x128xf32>
    %176 = arith.index_cast %c8_i32 : i32 to index
    %177 = memref.load %arg5[%176] : memref<50xf32, #tpu.memory_space<smem>>
    %178 = vector.broadcast %177 : f32 to vector<4x128xf32>
    %179 = arith.addf %175, %178 : vector<4x128xf32>
    %cst_25 = arith.constant 5.000000e-01 : f32
    %180 = vector.broadcast %cst_25 : f32 to vector<4x128xf32>
    %181 = arith.mulf %180, %179 : vector<4x128xf32>
    %cst_26 = arith.constant 0.707106769 : f32
    %182 = vector.broadcast %cst_26 : f32 to vector<4x128xf32>
    %183 = arith.mulf %179, %182 : vector<4x128xf32>
    %184 = math.erf %183 : vector<4x128xf32>
    %cst_27 = arith.constant 1.000000e+00 : f32
    %185 = vector.broadcast %cst_27 : f32 to vector<4x128xf32>
    %186 = arith.addf %185, %184 : vector<4x128xf32>
    %187 = arith.mulf %181, %186 : vector<4x128xf32>
    %188 = vector.broadcast %171 : f32 to vector<4x128xf32>
    %189 = arith.mulf %188, %187 : vector<4x128xf32>
    %190 = arith.addf %169, %189 : vector<4x128xf32>
    %c9_i32 = arith.constant 9 : i32
    %191 = arith.index_cast %c9_i32 : i32 to index
    %192 = memref.load %arg6[%191] : memref<50xf32, #tpu.memory_space<smem>>
    %193 = arith.index_cast %c9_i32 : i32 to index
    %194 = memref.load %arg4[%193] : memref<50xf32, #tpu.memory_space<smem>>
    %195 = vector.broadcast %194 : f32 to vector<4x128xf32>
    %196 = arith.mulf %0, %195 : vector<4x128xf32>
    %197 = arith.index_cast %c9_i32 : i32 to index
    %198 = memref.load %arg5[%197] : memref<50xf32, #tpu.memory_space<smem>>
    %199 = vector.broadcast %198 : f32 to vector<4x128xf32>
    %200 = arith.addf %196, %199 : vector<4x128xf32>
    %cst_28 = arith.constant 5.000000e-01 : f32
    %201 = vector.broadcast %cst_28 : f32 to vector<4x128xf32>
    %202 = arith.mulf %201, %200 : vector<4x128xf32>
    %cst_29 = arith.constant 0.707106769 : f32
    %203 = vector.broadcast %cst_29 : f32 to vector<4x128xf32>
    %204 = arith.mulf %200, %203 : vector<4x128xf32>
    %205 = math.erf %204 : vector<4x128xf32>
    %cst_30 = arith.constant 1.000000e+00 : f32
    %206 = vector.broadcast %cst_30 : f32 to vector<4x128xf32>
    %207 = arith.addf %206, %205 : vector<4x128xf32>
    %208 = arith.mulf %202, %207 : vector<4x128xf32>
    %209 = vector.broadcast %192 : f32 to vector<4x128xf32>
    %210 = arith.mulf %209, %208 : vector<4x128xf32>
    %211 = arith.addf %190, %210 : vector<4x128xf32>
    %c10_i32 = arith.constant 10 : i32
    %212 = arith.index_cast %c10_i32 : i32 to index
    %213 = memref.load %arg6[%212] : memref<50xf32, #tpu.memory_space<smem>>
    %214 = arith.index_cast %c10_i32 : i32 to index
    %215 = memref.load %arg4[%214] : memref<50xf32, #tpu.memory_space<smem>>
    %216 = vector.broadcast %215 : f32 to vector<4x128xf32>
    %217 = arith.mulf %0, %216 : vector<4x128xf32>
    %218 = arith.index_cast %c10_i32 : i32 to index
    %219 = memref.load %arg5[%218] : memref<50xf32, #tpu.memory_space<smem>>
    %220 = vector.broadcast %219 : f32 to vector<4x128xf32>
    %221 = arith.addf %217, %220 : vector<4x128xf32>
    %cst_31 = arith.constant 5.000000e-01 : f32
    %222 = vector.broadcast %cst_31 : f32 to vector<4x128xf32>
    %223 = arith.mulf %222, %221 : vector<4x128xf32>
    %cst_32 = arith.constant 0.707106769 : f32
    %224 = vector.broadcast %cst_32 : f32 to vector<4x128xf32>
    %225 = arith.mulf %221, %224 : vector<4x128xf32>
    %226 = math.erf %225 : vector<4x128xf32>
    %cst_33 = arith.constant 1.000000e+00 : f32
    %227 = vector.broadcast %cst_33 : f32 to vector<4x128xf32>
    %228 = arith.addf %227, %226 : vector<4x128xf32>
    %229 = arith.mulf %223, %228 : vector<4x128xf32>
    %230 = vector.broadcast %213 : f32 to vector<4x128xf32>
    %231 = arith.mulf %230, %229 : vector<4x128xf32>
    %232 = arith.addf %211, %231 : vector<4x128xf32>
    %c11_i32 = arith.constant 11 : i32
    %233 = arith.index_cast %c11_i32 : i32 to index
    %234 = memref.load %arg6[%233] : memref<50xf32, #tpu.memory_space<smem>>
    %235 = arith.index_cast %c11_i32 : i32 to index
    %236 = memref.load %arg4[%235] : memref<50xf32, #tpu.memory_space<smem>>
    %237 = vector.broadcast %236 : f32 to vector<4x128xf32>
    %238 = arith.mulf %0, %237 : vector<4x128xf32>
    %239 = arith.index_cast %c11_i32 : i32 to index
    %240 = memref.load %arg5[%239] : memref<50xf32, #tpu.memory_space<smem>>
    %241 = vector.broadcast %240 : f32 to vector<4x128xf32>
    %242 = arith.addf %238, %241 : vector<4x128xf32>
    %cst_34 = arith.constant 5.000000e-01 : f32
    %243 = vector.broadcast %cst_34 : f32 to vector<4x128xf32>
    %244 = arith.mulf %243, %242 : vector<4x128xf32>
    %cst_35 = arith.constant 0.707106769 : f32
    %245 = vector.broadcast %cst_35 : f32 to vector<4x128xf32>
    %246 = arith.mulf %242, %245 : vector<4x128xf32>
    %247 = math.erf %246 : vector<4x128xf32>
    %cst_36 = arith.constant 1.000000e+00 : f32
    %248 = vector.broadcast %cst_36 : f32 to vector<4x128xf32>
    %249 = arith.addf %248, %247 : vector<4x128xf32>
    %250 = arith.mulf %244, %249 : vector<4x128xf32>
    %251 = vector.broadcast %234 : f32 to vector<4x128xf32>
    %252 = arith.mulf %251, %250 : vector<4x128xf32>
    %253 = arith.addf %232, %252 : vector<4x128xf32>
    %c12_i32 = arith.constant 12 : i32
    %254 = arith.index_cast %c12_i32 : i32 to index
    %255 = memref.load %arg6[%254] : memref<50xf32, #tpu.memory_space<smem>>
    %256 = arith.index_cast %c12_i32 : i32 to index
    %257 = memref.load %arg4[%256] : memref<50xf32, #tpu.memory_space<smem>>
    %258 = vector.broadcast %257 : f32 to vector<4x128xf32>
    %259 = arith.mulf %0, %258 : vector<4x128xf32>
    %260 = arith.index_cast %c12_i32 : i32 to index
    %261 = memref.load %arg5[%260] : memref<50xf32, #tpu.memory_space<smem>>
    %262 = vector.broadcast %261 : f32 to vector<4x128xf32>
    %263 = arith.addf %259, %262 : vector<4x128xf32>
    %cst_37 = arith.constant 5.000000e-01 : f32
    %264 = vector.broadcast %cst_37 : f32 to vector<4x128xf32>
    %265 = arith.mulf %264, %263 : vector<4x128xf32>
    %cst_38 = arith.constant 0.707106769 : f32
    %266 = vector.broadcast %cst_38 : f32 to vector<4x128xf32>
    %267 = arith.mulf %263, %266 : vector<4x128xf32>
    %268 = math.erf %267 : vector<4x128xf32>
    %cst_39 = arith.constant 1.000000e+00 : f32
    %269 = vector.broadcast %cst_39 : f32 to vector<4x128xf32>
    %270 = arith.addf %269, %268 : vector<4x128xf32>
    %271 = arith.mulf %265, %270 : vector<4x128xf32>
    %272 = vector.broadcast %255 : f32 to vector<4x128xf32>
    %273 = arith.mulf %272, %271 : vector<4x128xf32>
    %274 = arith.addf %253, %273 : vector<4x128xf32>
    %c13_i32 = arith.constant 13 : i32
    %275 = arith.index_cast %c13_i32 : i32 to index
    %276 = memref.load %arg6[%275] : memref<50xf32, #tpu.memory_space<smem>>
    %277 = arith.index_cast %c13_i32 : i32 to index
    %278 = memref.load %arg4[%277] : memref<50xf32, #tpu.memory_space<smem>>
    %279 = vector.broadcast %278 : f32 to vector<4x128xf32>
    %280 = arith.mulf %0, %279 : vector<4x128xf32>
    %281 = arith.index_cast %c13_i32 : i32 to index
    %282 = memref.load %arg5[%281] : memref<50xf32, #tpu.memory_space<smem>>
    %283 = vector.broadcast %282 : f32 to vector<4x128xf32>
    %284 = arith.addf %280, %283 : vector<4x128xf32>
    %cst_40 = arith.constant 5.000000e-01 : f32
    %285 = vector.broadcast %cst_40 : f32 to vector<4x128xf32>
    %286 = arith.mulf %285, %284 : vector<4x128xf32>
    %cst_41 = arith.constant 0.707106769 : f32
    %287 = vector.broadcast %cst_41 : f32 to vector<4x128xf32>
    %288 = arith.mulf %284, %287 : vector<4x128xf32>
    %289 = math.erf %288 : vector<4x128xf32>
    %cst_42 = arith.constant 1.000000e+00 : f32
    %290 = vector.broadcast %cst_42 : f32 to vector<4x128xf32>
    %291 = arith.addf %290, %289 : vector<4x128xf32>
    %292 = arith.mulf %286, %291 : vector<4x128xf32>
    %293 = vector.broadcast %276 : f32 to vector<4x128xf32>
    %294 = arith.mulf %293, %292 : vector<4x128xf32>
    %295 = arith.addf %274, %294 : vector<4x128xf32>
    %c14_i32 = arith.constant 14 : i32
    %296 = arith.index_cast %c14_i32 : i32 to index
    %297 = memref.load %arg6[%296] : memref<50xf32, #tpu.memory_space<smem>>
    %298 = arith.index_cast %c14_i32 : i32 to index
    %299 = memref.load %arg4[%298] : memref<50xf32, #tpu.memory_space<smem>>
    %300 = vector.broadcast %299 : f32 to vector<4x128xf32>
    %301 = arith.mulf %0, %300 : vector<4x128xf32>
    %302 = arith.index_cast %c14_i32 : i32 to index
    %303 = memref.load %arg5[%302] : memref<50xf32, #tpu.memory_space<smem>>
    %304 = vector.broadcast %303 : f32 to vector<4x128xf32>
    %305 = arith.addf %301, %304 : vector<4x128xf32>
    %cst_43 = arith.constant 5.000000e-01 : f32
    %306 = vector.broadcast %cst_43 : f32 to vector<4x128xf32>
    %307 = arith.mulf %306, %305 : vector<4x128xf32>
    %cst_44 = arith.constant 0.707106769 : f32
    %308 = vector.broadcast %cst_44 : f32 to vector<4x128xf32>
    %309 = arith.mulf %305, %308 : vector<4x128xf32>
    %310 = math.erf %309 : vector<4x128xf32>
    %cst_45 = arith.constant 1.000000e+00 : f32
    %311 = vector.broadcast %cst_45 : f32 to vector<4x128xf32>
    %312 = arith.addf %311, %310 : vector<4x128xf32>
    %313 = arith.mulf %307, %312 : vector<4x128xf32>
    %314 = vector.broadcast %297 : f32 to vector<4x128xf32>
    %315 = arith.mulf %314, %313 : vector<4x128xf32>
    %316 = arith.addf %295, %315 : vector<4x128xf32>
    %c15_i32 = arith.constant 15 : i32
    %317 = arith.index_cast %c15_i32 : i32 to index
    %318 = memref.load %arg6[%317] : memref<50xf32, #tpu.memory_space<smem>>
    %319 = arith.index_cast %c15_i32 : i32 to index
    %320 = memref.load %arg4[%319] : memref<50xf32, #tpu.memory_space<smem>>
    %321 = vector.broadcast %320 : f32 to vector<4x128xf32>
    %322 = arith.mulf %0, %321 : vector<4x128xf32>
    %323 = arith.index_cast %c15_i32 : i32 to index
    %324 = memref.load %arg5[%323] : memref<50xf32, #tpu.memory_space<smem>>
    %325 = vector.broadcast %324 : f32 to vector<4x128xf32>
    %326 = arith.addf %322, %325 : vector<4x128xf32>
    %cst_46 = arith.constant 5.000000e-01 : f32
    %327 = vector.broadcast %cst_46 : f32 to vector<4x128xf32>
    %328 = arith.mulf %327, %326 : vector<4x128xf32>
    %cst_47 = arith.constant 0.707106769 : f32
    %329 = vector.broadcast %cst_47 : f32 to vector<4x128xf32>
    %330 = arith.mulf %326, %329 : vector<4x128xf32>
    %331 = math.erf %330 : vector<4x128xf32>
    %cst_48 = arith.constant 1.000000e+00 : f32
    %332 = vector.broadcast %cst_48 : f32 to vector<4x128xf32>
    %333 = arith.addf %332, %331 : vector<4x128xf32>
    %334 = arith.mulf %328, %333 : vector<4x128xf32>
    %335 = vector.broadcast %318 : f32 to vector<4x128xf32>
    %336 = arith.mulf %335, %334 : vector<4x128xf32>
    %337 = arith.addf %316, %336 : vector<4x128xf32>
    %c16_i32 = arith.constant 16 : i32
    %338 = arith.index_cast %c16_i32 : i32 to index
    %339 = memref.load %arg6[%338] : memref<50xf32, #tpu.memory_space<smem>>
    %340 = arith.index_cast %c16_i32 : i32 to index
    %341 = memref.load %arg4[%340] : memref<50xf32, #tpu.memory_space<smem>>
    %342 = vector.broadcast %341 : f32 to vector<4x128xf32>
    %343 = arith.mulf %0, %342 : vector<4x128xf32>
    %344 = arith.index_cast %c16_i32 : i32 to index
    %345 = memref.load %arg5[%344] : memref<50xf32, #tpu.memory_space<smem>>
    %346 = vector.broadcast %345 : f32 to vector<4x128xf32>
    %347 = arith.addf %343, %346 : vector<4x128xf32>
    %cst_49 = arith.constant 5.000000e-01 : f32
    %348 = vector.broadcast %cst_49 : f32 to vector<4x128xf32>
    %349 = arith.mulf %348, %347 : vector<4x128xf32>
    %cst_50 = arith.constant 0.707106769 : f32
    %350 = vector.broadcast %cst_50 : f32 to vector<4x128xf32>
    %351 = arith.mulf %347, %350 : vector<4x128xf32>
    %352 = math.erf %351 : vector<4x128xf32>
    %cst_51 = arith.constant 1.000000e+00 : f32
    %353 = vector.broadcast %cst_51 : f32 to vector<4x128xf32>
    %354 = arith.addf %353, %352 : vector<4x128xf32>
    %355 = arith.mulf %349, %354 : vector<4x128xf32>
    %356 = vector.broadcast %339 : f32 to vector<4x128xf32>
    %357 = arith.mulf %356, %355 : vector<4x128xf32>
    %358 = arith.addf %337, %357 : vector<4x128xf32>
    %c17_i32 = arith.constant 17 : i32
    %359 = arith.index_cast %c17_i32 : i32 to index
    %360 = memref.load %arg6[%359] : memref<50xf32, #tpu.memory_space<smem>>
    %361 = arith.index_cast %c17_i32 : i32 to index
    %362 = memref.load %arg4[%361] : memref<50xf32, #tpu.memory_space<smem>>
    %363 = vector.broadcast %362 : f32 to vector<4x128xf32>
    %364 = arith.mulf %0, %363 : vector<4x128xf32>
    %365 = arith.index_cast %c17_i32 : i32 to index
    %366 = memref.load %arg5[%365] : memref<50xf32, #tpu.memory_space<smem>>
    %367 = vector.broadcast %366 : f32 to vector<4x128xf32>
    %368 = arith.addf %364, %367 : vector<4x128xf32>
    %cst_52 = arith.constant 5.000000e-01 : f32
    %369 = vector.broadcast %cst_52 : f32 to vector<4x128xf32>
    %370 = arith.mulf %369, %368 : vector<4x128xf32>
    %cst_53 = arith.constant 0.707106769 : f32
    %371 = vector.broadcast %cst_53 : f32 to vector<4x128xf32>
    %372 = arith.mulf %368, %371 : vector<4x128xf32>
    %373 = math.erf %372 : vector<4x128xf32>
    %cst_54 = arith.constant 1.000000e+00 : f32
    %374 = vector.broadcast %cst_54 : f32 to vector<4x128xf32>
    %375 = arith.addf %374, %373 : vector<4x128xf32>
    %376 = arith.mulf %370, %375 : vector<4x128xf32>
    %377 = vector.broadcast %360 : f32 to vector<4x128xf32>
    %378 = arith.mulf %377, %376 : vector<4x128xf32>
    %379 = arith.addf %358, %378 : vector<4x128xf32>
    %c18_i32 = arith.constant 18 : i32
    %380 = arith.index_cast %c18_i32 : i32 to index
    %381 = memref.load %arg6[%380] : memref<50xf32, #tpu.memory_space<smem>>
    %382 = arith.index_cast %c18_i32 : i32 to index
    %383 = memref.load %arg4[%382] : memref<50xf32, #tpu.memory_space<smem>>
    %384 = vector.broadcast %383 : f32 to vector<4x128xf32>
    %385 = arith.mulf %0, %384 : vector<4x128xf32>
    %386 = arith.index_cast %c18_i32 : i32 to index
    %387 = memref.load %arg5[%386] : memref<50xf32, #tpu.memory_space<smem>>
    %388 = vector.broadcast %387 : f32 to vector<4x128xf32>
    %389 = arith.addf %385, %388 : vector<4x128xf32>
    %cst_55 = arith.constant 5.000000e-01 : f32
    %390 = vector.broadcast %cst_55 : f32 to vector<4x128xf32>
    %391 = arith.mulf %390, %389 : vector<4x128xf32>
    %cst_56 = arith.constant 0.707106769 : f32
    %392 = vector.broadcast %cst_56 : f32 to vector<4x128xf32>
    %393 = arith.mulf %389, %392 : vector<4x128xf32>
    %394 = math.erf %393 : vector<4x128xf32>
    %cst_57 = arith.constant 1.000000e+00 : f32
    %395 = vector.broadcast %cst_57 : f32 to vector<4x128xf32>
    %396 = arith.addf %395, %394 : vector<4x128xf32>
    %397 = arith.mulf %391, %396 : vector<4x128xf32>
    %398 = vector.broadcast %381 : f32 to vector<4x128xf32>
    %399 = arith.mulf %398, %397 : vector<4x128xf32>
    %400 = arith.addf %379, %399 : vector<4x128xf32>
    %c19_i32 = arith.constant 19 : i32
    %401 = arith.index_cast %c19_i32 : i32 to index
    %402 = memref.load %arg6[%401] : memref<50xf32, #tpu.memory_space<smem>>
    %403 = arith.index_cast %c19_i32 : i32 to index
    %404 = memref.load %arg4[%403] : memref<50xf32, #tpu.memory_space<smem>>
    %405 = vector.broadcast %404 : f32 to vector<4x128xf32>
    %406 = arith.mulf %0, %405 : vector<4x128xf32>
    %407 = arith.index_cast %c19_i32 : i32 to index
    %408 = memref.load %arg5[%407] : memref<50xf32, #tpu.memory_space<smem>>
    %409 = vector.broadcast %408 : f32 to vector<4x128xf32>
    %410 = arith.addf %406, %409 : vector<4x128xf32>
    %cst_58 = arith.constant 5.000000e-01 : f32
    %411 = vector.broadcast %cst_58 : f32 to vector<4x128xf32>
    %412 = arith.mulf %411, %410 : vector<4x128xf32>
    %cst_59 = arith.constant 0.707106769 : f32
    %413 = vector.broadcast %cst_59 : f32 to vector<4x128xf32>
    %414 = arith.mulf %410, %413 : vector<4x128xf32>
    %415 = math.erf %414 : vector<4x128xf32>
    %cst_60 = arith.constant 1.000000e+00 : f32
    %416 = vector.broadcast %cst_60 : f32 to vector<4x128xf32>
    %417 = arith.addf %416, %415 : vector<4x128xf32>
    %418 = arith.mulf %412, %417 : vector<4x128xf32>
    %419 = vector.broadcast %402 : f32 to vector<4x128xf32>
    %420 = arith.mulf %419, %418 : vector<4x128xf32>
    %421 = arith.addf %400, %420 : vector<4x128xf32>
    %c20_i32 = arith.constant 20 : i32
    %422 = arith.index_cast %c20_i32 : i32 to index
    %423 = memref.load %arg6[%422] : memref<50xf32, #tpu.memory_space<smem>>
    %424 = arith.index_cast %c20_i32 : i32 to index
    %425 = memref.load %arg4[%424] : memref<50xf32, #tpu.memory_space<smem>>
    %426 = vector.broadcast %425 : f32 to vector<4x128xf32>
    %427 = arith.mulf %0, %426 : vector<4x128xf32>
    %428 = arith.index_cast %c20_i32 : i32 to index
    %429 = memref.load %arg5[%428] : memref<50xf32, #tpu.memory_space<smem>>
    %430 = vector.broadcast %429 : f32 to vector<4x128xf32>
    %431 = arith.addf %427, %430 : vector<4x128xf32>
    %cst_61 = arith.constant 5.000000e-01 : f32
    %432 = vector.broadcast %cst_61 : f32 to vector<4x128xf32>
    %433 = arith.mulf %432, %431 : vector<4x128xf32>
    %cst_62 = arith.constant 0.707106769 : f32
    %434 = vector.broadcast %cst_62 : f32 to vector<4x128xf32>
    %435 = arith.mulf %431, %434 : vector<4x128xf32>
    %436 = math.erf %435 : vector<4x128xf32>
    %cst_63 = arith.constant 1.000000e+00 : f32
    %437 = vector.broadcast %cst_63 : f32 to vector<4x128xf32>
    %438 = arith.addf %437, %436 : vector<4x128xf32>
    %439 = arith.mulf %433, %438 : vector<4x128xf32>
    %440 = vector.broadcast %423 : f32 to vector<4x128xf32>
    %441 = arith.mulf %440, %439 : vector<4x128xf32>
    %442 = arith.addf %421, %441 : vector<4x128xf32>
    %c21_i32 = arith.constant 21 : i32
    %443 = arith.index_cast %c21_i32 : i32 to index
    %444 = memref.load %arg6[%443] : memref<50xf32, #tpu.memory_space<smem>>
    %445 = arith.index_cast %c21_i32 : i32 to index
    %446 = memref.load %arg4[%445] : memref<50xf32, #tpu.memory_space<smem>>
    %447 = vector.broadcast %446 : f32 to vector<4x128xf32>
    %448 = arith.mulf %0, %447 : vector<4x128xf32>
    %449 = arith.index_cast %c21_i32 : i32 to index
    %450 = memref.load %arg5[%449] : memref<50xf32, #tpu.memory_space<smem>>
    %451 = vector.broadcast %450 : f32 to vector<4x128xf32>
    %452 = arith.addf %448, %451 : vector<4x128xf32>
    %cst_64 = arith.constant 5.000000e-01 : f32
    %453 = vector.broadcast %cst_64 : f32 to vector<4x128xf32>
    %454 = arith.mulf %453, %452 : vector<4x128xf32>
    %cst_65 = arith.constant 0.707106769 : f32
    %455 = vector.broadcast %cst_65 : f32 to vector<4x128xf32>
    %456 = arith.mulf %452, %455 : vector<4x128xf32>
    %457 = math.erf %456 : vector<4x128xf32>
    %cst_66 = arith.constant 1.000000e+00 : f32
    %458 = vector.broadcast %cst_66 : f32 to vector<4x128xf32>
    %459 = arith.addf %458, %457 : vector<4x128xf32>
    %460 = arith.mulf %454, %459 : vector<4x128xf32>
    %461 = vector.broadcast %444 : f32 to vector<4x128xf32>
    %462 = arith.mulf %461, %460 : vector<4x128xf32>
    %463 = arith.addf %442, %462 : vector<4x128xf32>
    %c22_i32 = arith.constant 22 : i32
    %464 = arith.index_cast %c22_i32 : i32 to index
    %465 = memref.load %arg6[%464] : memref<50xf32, #tpu.memory_space<smem>>
    %466 = arith.index_cast %c22_i32 : i32 to index
    %467 = memref.load %arg4[%466] : memref<50xf32, #tpu.memory_space<smem>>
    %468 = vector.broadcast %467 : f32 to vector<4x128xf32>
    %469 = arith.mulf %0, %468 : vector<4x128xf32>
    %470 = arith.index_cast %c22_i32 : i32 to index
    %471 = memref.load %arg5[%470] : memref<50xf32, #tpu.memory_space<smem>>
    %472 = vector.broadcast %471 : f32 to vector<4x128xf32>
    %473 = arith.addf %469, %472 : vector<4x128xf32>
    %cst_67 = arith.constant 5.000000e-01 : f32
    %474 = vector.broadcast %cst_67 : f32 to vector<4x128xf32>
    %475 = arith.mulf %474, %473 : vector<4x128xf32>
    %cst_68 = arith.constant 0.707106769 : f32
    %476 = vector.broadcast %cst_68 : f32 to vector<4x128xf32>
    %477 = arith.mulf %473, %476 : vector<4x128xf32>
    %478 = math.erf %477 : vector<4x128xf32>
    %cst_69 = arith.constant 1.000000e+00 : f32
    %479 = vector.broadcast %cst_69 : f32 to vector<4x128xf32>
    %480 = arith.addf %479, %478 : vector<4x128xf32>
    %481 = arith.mulf %475, %480 : vector<4x128xf32>
    %482 = vector.broadcast %465 : f32 to vector<4x128xf32>
    %483 = arith.mulf %482, %481 : vector<4x128xf32>
    %484 = arith.addf %463, %483 : vector<4x128xf32>
    %c23_i32 = arith.constant 23 : i32
    %485 = arith.index_cast %c23_i32 : i32 to index
    %486 = memref.load %arg6[%485] : memref<50xf32, #tpu.memory_space<smem>>
    %487 = arith.index_cast %c23_i32 : i32 to index
    %488 = memref.load %arg4[%487] : memref<50xf32, #tpu.memory_space<smem>>
    %489 = vector.broadcast %488 : f32 to vector<4x128xf32>
    %490 = arith.mulf %0, %489 : vector<4x128xf32>
    %491 = arith.index_cast %c23_i32 : i32 to index
    %492 = memref.load %arg5[%491] : memref<50xf32, #tpu.memory_space<smem>>
    %493 = vector.broadcast %492 : f32 to vector<4x128xf32>
    %494 = arith.addf %490, %493 : vector<4x128xf32>
    %cst_70 = arith.constant 5.000000e-01 : f32
    %495 = vector.broadcast %cst_70 : f32 to vector<4x128xf32>
    %496 = arith.mulf %495, %494 : vector<4x128xf32>
    %cst_71 = arith.constant 0.707106769 : f32
    %497 = vector.broadcast %cst_71 : f32 to vector<4x128xf32>
    %498 = arith.mulf %494, %497 : vector<4x128xf32>
    %499 = math.erf %498 : vector<4x128xf32>
    %cst_72 = arith.constant 1.000000e+00 : f32
    %500 = vector.broadcast %cst_72 : f32 to vector<4x128xf32>
    %501 = arith.addf %500, %499 : vector<4x128xf32>
    %502 = arith.mulf %496, %501 : vector<4x128xf32>
    %503 = vector.broadcast %486 : f32 to vector<4x128xf32>
    %504 = arith.mulf %503, %502 : vector<4x128xf32>
    %505 = arith.addf %484, %504 : vector<4x128xf32>
    %c24_i32 = arith.constant 24 : i32
    %506 = arith.index_cast %c24_i32 : i32 to index
    %507 = memref.load %arg6[%506] : memref<50xf32, #tpu.memory_space<smem>>
    %508 = arith.index_cast %c24_i32 : i32 to index
    %509 = memref.load %arg4[%508] : memref<50xf32, #tpu.memory_space<smem>>
    %510 = vector.broadcast %509 : f32 to vector<4x128xf32>
    %511 = arith.mulf %0, %510 : vector<4x128xf32>
    %512 = arith.index_cast %c24_i32 : i32 to index
    %513 = memref.load %arg5[%512] : memref<50xf32, #tpu.memory_space<smem>>
    %514 = vector.broadcast %513 : f32 to vector<4x128xf32>
    %515 = arith.addf %511, %514 : vector<4x128xf32>
    %cst_73 = arith.constant 5.000000e-01 : f32
    %516 = vector.broadcast %cst_73 : f32 to vector<4x128xf32>
    %517 = arith.mulf %516, %515 : vector<4x128xf32>
    %cst_74 = arith.constant 0.707106769 : f32
    %518 = vector.broadcast %cst_74 : f32 to vector<4x128xf32>
    %519 = arith.mulf %515, %518 : vector<4x128xf32>
    %520 = math.erf %519 : vector<4x128xf32>
    %cst_75 = arith.constant 1.000000e+00 : f32
    %521 = vector.broadcast %cst_75 : f32 to vector<4x128xf32>
    %522 = arith.addf %521, %520 : vector<4x128xf32>
    %523 = arith.mulf %517, %522 : vector<4x128xf32>
    %524 = vector.broadcast %507 : f32 to vector<4x128xf32>
    %525 = arith.mulf %524, %523 : vector<4x128xf32>
    %526 = arith.addf %505, %525 : vector<4x128xf32>
    %c25_i32 = arith.constant 25 : i32
    %527 = arith.index_cast %c25_i32 : i32 to index
    %528 = memref.load %arg6[%527] : memref<50xf32, #tpu.memory_space<smem>>
    %529 = arith.index_cast %c25_i32 : i32 to index
    %530 = memref.load %arg4[%529] : memref<50xf32, #tpu.memory_space<smem>>
    %531 = vector.broadcast %530 : f32 to vector<4x128xf32>
    %532 = arith.mulf %0, %531 : vector<4x128xf32>
    %533 = arith.index_cast %c25_i32 : i32 to index
    %534 = memref.load %arg5[%533] : memref<50xf32, #tpu.memory_space<smem>>
    %535 = vector.broadcast %534 : f32 to vector<4x128xf32>
    %536 = arith.addf %532, %535 : vector<4x128xf32>
    %cst_76 = arith.constant 5.000000e-01 : f32
    %537 = vector.broadcast %cst_76 : f32 to vector<4x128xf32>
    %538 = arith.mulf %537, %536 : vector<4x128xf32>
    %cst_77 = arith.constant 0.707106769 : f32
    %539 = vector.broadcast %cst_77 : f32 to vector<4x128xf32>
    %540 = arith.mulf %536, %539 : vector<4x128xf32>
    %541 = math.erf %540 : vector<4x128xf32>
    %cst_78 = arith.constant 1.000000e+00 : f32
    %542 = vector.broadcast %cst_78 : f32 to vector<4x128xf32>
    %543 = arith.addf %542, %541 : vector<4x128xf32>
    %544 = arith.mulf %538, %543 : vector<4x128xf32>
    %545 = vector.broadcast %528 : f32 to vector<4x128xf32>
    %546 = arith.mulf %545, %544 : vector<4x128xf32>
    %547 = arith.addf %526, %546 : vector<4x128xf32>
    %c26_i32 = arith.constant 26 : i32
    %548 = arith.index_cast %c26_i32 : i32 to index
    %549 = memref.load %arg6[%548] : memref<50xf32, #tpu.memory_space<smem>>
    %550 = arith.index_cast %c26_i32 : i32 to index
    %551 = memref.load %arg4[%550] : memref<50xf32, #tpu.memory_space<smem>>
    %552 = vector.broadcast %551 : f32 to vector<4x128xf32>
    %553 = arith.mulf %0, %552 : vector<4x128xf32>
    %554 = arith.index_cast %c26_i32 : i32 to index
    %555 = memref.load %arg5[%554] : memref<50xf32, #tpu.memory_space<smem>>
    %556 = vector.broadcast %555 : f32 to vector<4x128xf32>
    %557 = arith.addf %553, %556 : vector<4x128xf32>
    %cst_79 = arith.constant 5.000000e-01 : f32
    %558 = vector.broadcast %cst_79 : f32 to vector<4x128xf32>
    %559 = arith.mulf %558, %557 : vector<4x128xf32>
    %cst_80 = arith.constant 0.707106769 : f32
    %560 = vector.broadcast %cst_80 : f32 to vector<4x128xf32>
    %561 = arith.mulf %557, %560 : vector<4x128xf32>
    %562 = math.erf %561 : vector<4x128xf32>
    %cst_81 = arith.constant 1.000000e+00 : f32
    %563 = vector.broadcast %cst_81 : f32 to vector<4x128xf32>
    %564 = arith.addf %563, %562 : vector<4x128xf32>
    %565 = arith.mulf %559, %564 : vector<4x128xf32>
    %566 = vector.broadcast %549 : f32 to vector<4x128xf32>
    %567 = arith.mulf %566, %565 : vector<4x128xf32>
    %568 = arith.addf %547, %567 : vector<4x128xf32>
    %c27_i32 = arith.constant 27 : i32
    %569 = arith.index_cast %c27_i32 : i32 to index
    %570 = memref.load %arg6[%569] : memref<50xf32, #tpu.memory_space<smem>>
    %571 = arith.index_cast %c27_i32 : i32 to index
    %572 = memref.load %arg4[%571] : memref<50xf32, #tpu.memory_space<smem>>
    %573 = vector.broadcast %572 : f32 to vector<4x128xf32>
    %574 = arith.mulf %0, %573 : vector<4x128xf32>
    %575 = arith.index_cast %c27_i32 : i32 to index
    %576 = memref.load %arg5[%575] : memref<50xf32, #tpu.memory_space<smem>>
    %577 = vector.broadcast %576 : f32 to vector<4x128xf32>
    %578 = arith.addf %574, %577 : vector<4x128xf32>
    %cst_82 = arith.constant 5.000000e-01 : f32
    %579 = vector.broadcast %cst_82 : f32 to vector<4x128xf32>
    %580 = arith.mulf %579, %578 : vector<4x128xf32>
    %cst_83 = arith.constant 0.707106769 : f32
    %581 = vector.broadcast %cst_83 : f32 to vector<4x128xf32>
    %582 = arith.mulf %578, %581 : vector<4x128xf32>
    %583 = math.erf %582 : vector<4x128xf32>
    %cst_84 = arith.constant 1.000000e+00 : f32
    %584 = vector.broadcast %cst_84 : f32 to vector<4x128xf32>
    %585 = arith.addf %584, %583 : vector<4x128xf32>
    %586 = arith.mulf %580, %585 : vector<4x128xf32>
    %587 = vector.broadcast %570 : f32 to vector<4x128xf32>
    %588 = arith.mulf %587, %586 : vector<4x128xf32>
    %589 = arith.addf %568, %588 : vector<4x128xf32>
    %c28_i32 = arith.constant 28 : i32
    %590 = arith.index_cast %c28_i32 : i32 to index
    %591 = memref.load %arg6[%590] : memref<50xf32, #tpu.memory_space<smem>>
    %592 = arith.index_cast %c28_i32 : i32 to index
    %593 = memref.load %arg4[%592] : memref<50xf32, #tpu.memory_space<smem>>
    %594 = vector.broadcast %593 : f32 to vector<4x128xf32>
    %595 = arith.mulf %0, %594 : vector<4x128xf32>
    %596 = arith.index_cast %c28_i32 : i32 to index
    %597 = memref.load %arg5[%596] : memref<50xf32, #tpu.memory_space<smem>>
    %598 = vector.broadcast %597 : f32 to vector<4x128xf32>
    %599 = arith.addf %595, %598 : vector<4x128xf32>
    %cst_85 = arith.constant 5.000000e-01 : f32
    %600 = vector.broadcast %cst_85 : f32 to vector<4x128xf32>
    %601 = arith.mulf %600, %599 : vector<4x128xf32>
    %cst_86 = arith.constant 0.707106769 : f32
    %602 = vector.broadcast %cst_86 : f32 to vector<4x128xf32>
    %603 = arith.mulf %599, %602 : vector<4x128xf32>
    %604 = math.erf %603 : vector<4x128xf32>
    %cst_87 = arith.constant 1.000000e+00 : f32
    %605 = vector.broadcast %cst_87 : f32 to vector<4x128xf32>
    %606 = arith.addf %605, %604 : vector<4x128xf32>
    %607 = arith.mulf %601, %606 : vector<4x128xf32>
    %608 = vector.broadcast %591 : f32 to vector<4x128xf32>
    %609 = arith.mulf %608, %607 : vector<4x128xf32>
    %610 = arith.addf %589, %609 : vector<4x128xf32>
    %c29_i32 = arith.constant 29 : i32
    %611 = arith.index_cast %c29_i32 : i32 to index
    %612 = memref.load %arg6[%611] : memref<50xf32, #tpu.memory_space<smem>>
    %613 = arith.index_cast %c29_i32 : i32 to index
    %614 = memref.load %arg4[%613] : memref<50xf32, #tpu.memory_space<smem>>
    %615 = vector.broadcast %614 : f32 to vector<4x128xf32>
    %616 = arith.mulf %0, %615 : vector<4x128xf32>
    %617 = arith.index_cast %c29_i32 : i32 to index
    %618 = memref.load %arg5[%617] : memref<50xf32, #tpu.memory_space<smem>>
    %619 = vector.broadcast %618 : f32 to vector<4x128xf32>
    %620 = arith.addf %616, %619 : vector<4x128xf32>
    %cst_88 = arith.constant 5.000000e-01 : f32
    %621 = vector.broadcast %cst_88 : f32 to vector<4x128xf32>
    %622 = arith.mulf %621, %620 : vector<4x128xf32>
    %cst_89 = arith.constant 0.707106769 : f32
    %623 = vector.broadcast %cst_89 : f32 to vector<4x128xf32>
    %624 = arith.mulf %620, %623 : vector<4x128xf32>
    %625 = math.erf %624 : vector<4x128xf32>
    %cst_90 = arith.constant 1.000000e+00 : f32
    %626 = vector.broadcast %cst_90 : f32 to vector<4x128xf32>
    %627 = arith.addf %626, %625 : vector<4x128xf32>
    %628 = arith.mulf %622, %627 : vector<4x128xf32>
    %629 = vector.broadcast %612 : f32 to vector<4x128xf32>
    %630 = arith.mulf %629, %628 : vector<4x128xf32>
    %631 = arith.addf %610, %630 : vector<4x128xf32>
    %c30_i32 = arith.constant 30 : i32
    %632 = arith.index_cast %c30_i32 : i32 to index
    %633 = memref.load %arg6[%632] : memref<50xf32, #tpu.memory_space<smem>>
    %634 = arith.index_cast %c30_i32 : i32 to index
    %635 = memref.load %arg4[%634] : memref<50xf32, #tpu.memory_space<smem>>
    %636 = vector.broadcast %635 : f32 to vector<4x128xf32>
    %637 = arith.mulf %0, %636 : vector<4x128xf32>
    %638 = arith.index_cast %c30_i32 : i32 to index
    %639 = memref.load %arg5[%638] : memref<50xf32, #tpu.memory_space<smem>>
    %640 = vector.broadcast %639 : f32 to vector<4x128xf32>
    %641 = arith.addf %637, %640 : vector<4x128xf32>
    %cst_91 = arith.constant 5.000000e-01 : f32
    %642 = vector.broadcast %cst_91 : f32 to vector<4x128xf32>
    %643 = arith.mulf %642, %641 : vector<4x128xf32>
    %cst_92 = arith.constant 0.707106769 : f32
    %644 = vector.broadcast %cst_92 : f32 to vector<4x128xf32>
    %645 = arith.mulf %641, %644 : vector<4x128xf32>
    %646 = math.erf %645 : vector<4x128xf32>
    %cst_93 = arith.constant 1.000000e+00 : f32
    %647 = vector.broadcast %cst_93 : f32 to vector<4x128xf32>
    %648 = arith.addf %647, %646 : vector<4x128xf32>
    %649 = arith.mulf %643, %648 : vector<4x128xf32>
    %650 = vector.broadcast %633 : f32 to vector<4x128xf32>
    %651 = arith.mulf %650, %649 : vector<4x128xf32>
    %652 = arith.addf %631, %651 : vector<4x128xf32>
    %c31_i32 = arith.constant 31 : i32
    %653 = arith.index_cast %c31_i32 : i32 to index
    %654 = memref.load %arg6[%653] : memref<50xf32, #tpu.memory_space<smem>>
    %655 = arith.index_cast %c31_i32 : i32 to index
    %656 = memref.load %arg4[%655] : memref<50xf32, #tpu.memory_space<smem>>
    %657 = vector.broadcast %656 : f32 to vector<4x128xf32>
    %658 = arith.mulf %0, %657 : vector<4x128xf32>
    %659 = arith.index_cast %c31_i32 : i32 to index
    %660 = memref.load %arg5[%659] : memref<50xf32, #tpu.memory_space<smem>>
    %661 = vector.broadcast %660 : f32 to vector<4x128xf32>
    %662 = arith.addf %658, %661 : vector<4x128xf32>
    %cst_94 = arith.constant 5.000000e-01 : f32
    %663 = vector.broadcast %cst_94 : f32 to vector<4x128xf32>
    %664 = arith.mulf %663, %662 : vector<4x128xf32>
    %cst_95 = arith.constant 0.707106769 : f32
    %665 = vector.broadcast %cst_95 : f32 to vector<4x128xf32>
    %666 = arith.mulf %662, %665 : vector<4x128xf32>
    %667 = math.erf %666 : vector<4x128xf32>
    %cst_96 = arith.constant 1.000000e+00 : f32
    %668 = vector.broadcast %cst_96 : f32 to vector<4x128xf32>
    %669 = arith.addf %668, %667 : vector<4x128xf32>
    %670 = arith.mulf %664, %669 : vector<4x128xf32>
    %671 = vector.broadcast %654 : f32 to vector<4x128xf32>
    %672 = arith.mulf %671, %670 : vector<4x128xf32>
    %673 = arith.addf %652, %672 : vector<4x128xf32>
    %c32_i32 = arith.constant 32 : i32
    %674 = arith.index_cast %c32_i32 : i32 to index
    %675 = memref.load %arg6[%674] : memref<50xf32, #tpu.memory_space<smem>>
    %676 = arith.index_cast %c32_i32 : i32 to index
    %677 = memref.load %arg4[%676] : memref<50xf32, #tpu.memory_space<smem>>
    %678 = vector.broadcast %677 : f32 to vector<4x128xf32>
    %679 = arith.mulf %0, %678 : vector<4x128xf32>
    %680 = arith.index_cast %c32_i32 : i32 to index
    %681 = memref.load %arg5[%680] : memref<50xf32, #tpu.memory_space<smem>>
    %682 = vector.broadcast %681 : f32 to vector<4x128xf32>
    %683 = arith.addf %679, %682 : vector<4x128xf32>
    %cst_97 = arith.constant 5.000000e-01 : f32
    %684 = vector.broadcast %cst_97 : f32 to vector<4x128xf32>
    %685 = arith.mulf %684, %683 : vector<4x128xf32>
    %cst_98 = arith.constant 0.707106769 : f32
    %686 = vector.broadcast %cst_98 : f32 to vector<4x128xf32>
    %687 = arith.mulf %683, %686 : vector<4x128xf32>
    %688 = math.erf %687 : vector<4x128xf32>
    %cst_99 = arith.constant 1.000000e+00 : f32
    %689 = vector.broadcast %cst_99 : f32 to vector<4x128xf32>
    %690 = arith.addf %689, %688 : vector<4x128xf32>
    %691 = arith.mulf %685, %690 : vector<4x128xf32>
    %692 = vector.broadcast %675 : f32 to vector<4x128xf32>
    %693 = arith.mulf %692, %691 : vector<4x128xf32>
    %694 = arith.addf %673, %693 : vector<4x128xf32>
    %c33_i32 = arith.constant 33 : i32
    %695 = arith.index_cast %c33_i32 : i32 to index
    %696 = memref.load %arg6[%695] : memref<50xf32, #tpu.memory_space<smem>>
    %697 = arith.index_cast %c33_i32 : i32 to index
    %698 = memref.load %arg4[%697] : memref<50xf32, #tpu.memory_space<smem>>
    %699 = vector.broadcast %698 : f32 to vector<4x128xf32>
    %700 = arith.mulf %0, %699 : vector<4x128xf32>
    %701 = arith.index_cast %c33_i32 : i32 to index
    %702 = memref.load %arg5[%701] : memref<50xf32, #tpu.memory_space<smem>>
    %703 = vector.broadcast %702 : f32 to vector<4x128xf32>
    %704 = arith.addf %700, %703 : vector<4x128xf32>
    %cst_100 = arith.constant 5.000000e-01 : f32
    %705 = vector.broadcast %cst_100 : f32 to vector<4x128xf32>
    %706 = arith.mulf %705, %704 : vector<4x128xf32>
    %cst_101 = arith.constant 0.707106769 : f32
    %707 = vector.broadcast %cst_101 : f32 to vector<4x128xf32>
    %708 = arith.mulf %704, %707 : vector<4x128xf32>
    %709 = math.erf %708 : vector<4x128xf32>
    %cst_102 = arith.constant 1.000000e+00 : f32
    %710 = vector.broadcast %cst_102 : f32 to vector<4x128xf32>
    %711 = arith.addf %710, %709 : vector<4x128xf32>
    %712 = arith.mulf %706, %711 : vector<4x128xf32>
    %713 = vector.broadcast %696 : f32 to vector<4x128xf32>
    %714 = arith.mulf %713, %712 : vector<4x128xf32>
    %715 = arith.addf %694, %714 : vector<4x128xf32>
    %c34_i32 = arith.constant 34 : i32
    %716 = arith.index_cast %c34_i32 : i32 to index
    %717 = memref.load %arg6[%716] : memref<50xf32, #tpu.memory_space<smem>>
    %718 = arith.index_cast %c34_i32 : i32 to index
    %719 = memref.load %arg4[%718] : memref<50xf32, #tpu.memory_space<smem>>
    %720 = vector.broadcast %719 : f32 to vector<4x128xf32>
    %721 = arith.mulf %0, %720 : vector<4x128xf32>
    %722 = arith.index_cast %c34_i32 : i32 to index
    %723 = memref.load %arg5[%722] : memref<50xf32, #tpu.memory_space<smem>>
    %724 = vector.broadcast %723 : f32 to vector<4x128xf32>
    %725 = arith.addf %721, %724 : vector<4x128xf32>
    %cst_103 = arith.constant 5.000000e-01 : f32
    %726 = vector.broadcast %cst_103 : f32 to vector<4x128xf32>
    %727 = arith.mulf %726, %725 : vector<4x128xf32>
    %cst_104 = arith.constant 0.707106769 : f32
    %728 = vector.broadcast %cst_104 : f32 to vector<4x128xf32>
    %729 = arith.mulf %725, %728 : vector<4x128xf32>
    %730 = math.erf %729 : vector<4x128xf32>
    %cst_105 = arith.constant 1.000000e+00 : f32
    %731 = vector.broadcast %cst_105 : f32 to vector<4x128xf32>
    %732 = arith.addf %731, %730 : vector<4x128xf32>
    %733 = arith.mulf %727, %732 : vector<4x128xf32>
    %734 = vector.broadcast %717 : f32 to vector<4x128xf32>
    %735 = arith.mulf %734, %733 : vector<4x128xf32>
    %736 = arith.addf %715, %735 : vector<4x128xf32>
    %c35_i32 = arith.constant 35 : i32
    %737 = arith.index_cast %c35_i32 : i32 to index
    %738 = memref.load %arg6[%737] : memref<50xf32, #tpu.memory_space<smem>>
    %739 = arith.index_cast %c35_i32 : i32 to index
    %740 = memref.load %arg4[%739] : memref<50xf32, #tpu.memory_space<smem>>
    %741 = vector.broadcast %740 : f32 to vector<4x128xf32>
    %742 = arith.mulf %0, %741 : vector<4x128xf32>
    %743 = arith.index_cast %c35_i32 : i32 to index
    %744 = memref.load %arg5[%743] : memref<50xf32, #tpu.memory_space<smem>>
    %745 = vector.broadcast %744 : f32 to vector<4x128xf32>
    %746 = arith.addf %742, %745 : vector<4x128xf32>
    %cst_106 = arith.constant 5.000000e-01 : f32
    %747 = vector.broadcast %cst_106 : f32 to vector<4x128xf32>
    %748 = arith.mulf %747, %746 : vector<4x128xf32>
    %cst_107 = arith.constant 0.707106769 : f32
    %749 = vector.broadcast %cst_107 : f32 to vector<4x128xf32>
    %750 = arith.mulf %746, %749 : vector<4x128xf32>
    %751 = math.erf %750 : vector<4x128xf32>
    %cst_108 = arith.constant 1.000000e+00 : f32
    %752 = vector.broadcast %cst_108 : f32 to vector<4x128xf32>
    %753 = arith.addf %752, %751 : vector<4x128xf32>
    %754 = arith.mulf %748, %753 : vector<4x128xf32>
    %755 = vector.broadcast %738 : f32 to vector<4x128xf32>
    %756 = arith.mulf %755, %754 : vector<4x128xf32>
    %757 = arith.addf %736, %756 : vector<4x128xf32>
    %c36_i32 = arith.constant 36 : i32
    %758 = arith.index_cast %c36_i32 : i32 to index
    %759 = memref.load %arg6[%758] : memref<50xf32, #tpu.memory_space<smem>>
    %760 = arith.index_cast %c36_i32 : i32 to index
    %761 = memref.load %arg4[%760] : memref<50xf32, #tpu.memory_space<smem>>
    %762 = vector.broadcast %761 : f32 to vector<4x128xf32>
    %763 = arith.mulf %0, %762 : vector<4x128xf32>
    %764 = arith.index_cast %c36_i32 : i32 to index
    %765 = memref.load %arg5[%764] : memref<50xf32, #tpu.memory_space<smem>>
    %766 = vector.broadcast %765 : f32 to vector<4x128xf32>
    %767 = arith.addf %763, %766 : vector<4x128xf32>
    %cst_109 = arith.constant 5.000000e-01 : f32
    %768 = vector.broadcast %cst_109 : f32 to vector<4x128xf32>
    %769 = arith.mulf %768, %767 : vector<4x128xf32>
    %cst_110 = arith.constant 0.707106769 : f32
    %770 = vector.broadcast %cst_110 : f32 to vector<4x128xf32>
    %771 = arith.mulf %767, %770 : vector<4x128xf32>
    %772 = math.erf %771 : vector<4x128xf32>
    %cst_111 = arith.constant 1.000000e+00 : f32
    %773 = vector.broadcast %cst_111 : f32 to vector<4x128xf32>
    %774 = arith.addf %773, %772 : vector<4x128xf32>
    %775 = arith.mulf %769, %774 : vector<4x128xf32>
    %776 = vector.broadcast %759 : f32 to vector<4x128xf32>
    %777 = arith.mulf %776, %775 : vector<4x128xf32>
    %778 = arith.addf %757, %777 : vector<4x128xf32>
    %c37_i32 = arith.constant 37 : i32
    %779 = arith.index_cast %c37_i32 : i32 to index
    %780 = memref.load %arg6[%779] : memref<50xf32, #tpu.memory_space<smem>>
    %781 = arith.index_cast %c37_i32 : i32 to index
    %782 = memref.load %arg4[%781] : memref<50xf32, #tpu.memory_space<smem>>
    %783 = vector.broadcast %782 : f32 to vector<4x128xf32>
    %784 = arith.mulf %0, %783 : vector<4x128xf32>
    %785 = arith.index_cast %c37_i32 : i32 to index
    %786 = memref.load %arg5[%785] : memref<50xf32, #tpu.memory_space<smem>>
    %787 = vector.broadcast %786 : f32 to vector<4x128xf32>
    %788 = arith.addf %784, %787 : vector<4x128xf32>
    %cst_112 = arith.constant 5.000000e-01 : f32
    %789 = vector.broadcast %cst_112 : f32 to vector<4x128xf32>
    %790 = arith.mulf %789, %788 : vector<4x128xf32>
    %cst_113 = arith.constant 0.707106769 : f32
    %791 = vector.broadcast %cst_113 : f32 to vector<4x128xf32>
    %792 = arith.mulf %788, %791 : vector<4x128xf32>
    %793 = math.erf %792 : vector<4x128xf32>
    %cst_114 = arith.constant 1.000000e+00 : f32
    %794 = vector.broadcast %cst_114 : f32 to vector<4x128xf32>
    %795 = arith.addf %794, %793 : vector<4x128xf32>
    %796 = arith.mulf %790, %795 : vector<4x128xf32>
    %797 = vector.broadcast %780 : f32 to vector<4x128xf32>
    %798 = arith.mulf %797, %796 : vector<4x128xf32>
    %799 = arith.addf %778, %798 : vector<4x128xf32>
    %c38_i32 = arith.constant 38 : i32
    %800 = arith.index_cast %c38_i32 : i32 to index
    %801 = memref.load %arg6[%800] : memref<50xf32, #tpu.memory_space<smem>>
    %802 = arith.index_cast %c38_i32 : i32 to index
    %803 = memref.load %arg4[%802] : memref<50xf32, #tpu.memory_space<smem>>
    %804 = vector.broadcast %803 : f32 to vector<4x128xf32>
    %805 = arith.mulf %0, %804 : vector<4x128xf32>
    %806 = arith.index_cast %c38_i32 : i32 to index
    %807 = memref.load %arg5[%806] : memref<50xf32, #tpu.memory_space<smem>>
    %808 = vector.broadcast %807 : f32 to vector<4x128xf32>
    %809 = arith.addf %805, %808 : vector<4x128xf32>
    %cst_115 = arith.constant 5.000000e-01 : f32
    %810 = vector.broadcast %cst_115 : f32 to vector<4x128xf32>
    %811 = arith.mulf %810, %809 : vector<4x128xf32>
    %cst_116 = arith.constant 0.707106769 : f32
    %812 = vector.broadcast %cst_116 : f32 to vector<4x128xf32>
    %813 = arith.mulf %809, %812 : vector<4x128xf32>
    %814 = math.erf %813 : vector<4x128xf32>
    %cst_117 = arith.constant 1.000000e+00 : f32
    %815 = vector.broadcast %cst_117 : f32 to vector<4x128xf32>
    %816 = arith.addf %815, %814 : vector<4x128xf32>
    %817 = arith.mulf %811, %816 : vector<4x128xf32>
    %818 = vector.broadcast %801 : f32 to vector<4x128xf32>
    %819 = arith.mulf %818, %817 : vector<4x128xf32>
    %820 = arith.addf %799, %819 : vector<4x128xf32>
    %c39_i32 = arith.constant 39 : i32
    %821 = arith.index_cast %c39_i32 : i32 to index
    %822 = memref.load %arg6[%821] : memref<50xf32, #tpu.memory_space<smem>>
    %823 = arith.index_cast %c39_i32 : i32 to index
    %824 = memref.load %arg4[%823] : memref<50xf32, #tpu.memory_space<smem>>
    %825 = vector.broadcast %824 : f32 to vector<4x128xf32>
    %826 = arith.mulf %0, %825 : vector<4x128xf32>
    %827 = arith.index_cast %c39_i32 : i32 to index
    %828 = memref.load %arg5[%827] : memref<50xf32, #tpu.memory_space<smem>>
    %829 = vector.broadcast %828 : f32 to vector<4x128xf32>
    %830 = arith.addf %826, %829 : vector<4x128xf32>
    %cst_118 = arith.constant 5.000000e-01 : f32
    %831 = vector.broadcast %cst_118 : f32 to vector<4x128xf32>
    %832 = arith.mulf %831, %830 : vector<4x128xf32>
    %cst_119 = arith.constant 0.707106769 : f32
    %833 = vector.broadcast %cst_119 : f32 to vector<4x128xf32>
    %834 = arith.mulf %830, %833 : vector<4x128xf32>
    %835 = math.erf %834 : vector<4x128xf32>
    %cst_120 = arith.constant 1.000000e+00 : f32
    %836 = vector.broadcast %cst_120 : f32 to vector<4x128xf32>
    %837 = arith.addf %836, %835 : vector<4x128xf32>
    %838 = arith.mulf %832, %837 : vector<4x128xf32>
    %839 = vector.broadcast %822 : f32 to vector<4x128xf32>
    %840 = arith.mulf %839, %838 : vector<4x128xf32>
    %841 = arith.addf %820, %840 : vector<4x128xf32>
    %c40_i32 = arith.constant 40 : i32
    %842 = arith.index_cast %c40_i32 : i32 to index
    %843 = memref.load %arg6[%842] : memref<50xf32, #tpu.memory_space<smem>>
    %844 = arith.index_cast %c40_i32 : i32 to index
    %845 = memref.load %arg4[%844] : memref<50xf32, #tpu.memory_space<smem>>
    %846 = vector.broadcast %845 : f32 to vector<4x128xf32>
    %847 = arith.mulf %0, %846 : vector<4x128xf32>
    %848 = arith.index_cast %c40_i32 : i32 to index
    %849 = memref.load %arg5[%848] : memref<50xf32, #tpu.memory_space<smem>>
    %850 = vector.broadcast %849 : f32 to vector<4x128xf32>
    %851 = arith.addf %847, %850 : vector<4x128xf32>
    %cst_121 = arith.constant 5.000000e-01 : f32
    %852 = vector.broadcast %cst_121 : f32 to vector<4x128xf32>
    %853 = arith.mulf %852, %851 : vector<4x128xf32>
    %cst_122 = arith.constant 0.707106769 : f32
    %854 = vector.broadcast %cst_122 : f32 to vector<4x128xf32>
    %855 = arith.mulf %851, %854 : vector<4x128xf32>
    %856 = math.erf %855 : vector<4x128xf32>
    %cst_123 = arith.constant 1.000000e+00 : f32
    %857 = vector.broadcast %cst_123 : f32 to vector<4x128xf32>
    %858 = arith.addf %857, %856 : vector<4x128xf32>
    %859 = arith.mulf %853, %858 : vector<4x128xf32>
    %860 = vector.broadcast %843 : f32 to vector<4x128xf32>
    %861 = arith.mulf %860, %859 : vector<4x128xf32>
    %862 = arith.addf %841, %861 : vector<4x128xf32>
    %c41_i32 = arith.constant 41 : i32
    %863 = arith.index_cast %c41_i32 : i32 to index
    %864 = memref.load %arg6[%863] : memref<50xf32, #tpu.memory_space<smem>>
    %865 = arith.index_cast %c41_i32 : i32 to index
    %866 = memref.load %arg4[%865] : memref<50xf32, #tpu.memory_space<smem>>
    %867 = vector.broadcast %866 : f32 to vector<4x128xf32>
    %868 = arith.mulf %0, %867 : vector<4x128xf32>
    %869 = arith.index_cast %c41_i32 : i32 to index
    %870 = memref.load %arg5[%869] : memref<50xf32, #tpu.memory_space<smem>>
    %871 = vector.broadcast %870 : f32 to vector<4x128xf32>
    %872 = arith.addf %868, %871 : vector<4x128xf32>
    %cst_124 = arith.constant 5.000000e-01 : f32
    %873 = vector.broadcast %cst_124 : f32 to vector<4x128xf32>
    %874 = arith.mulf %873, %872 : vector<4x128xf32>
    %cst_125 = arith.constant 0.707106769 : f32
    %875 = vector.broadcast %cst_125 : f32 to vector<4x128xf32>
    %876 = arith.mulf %872, %875 : vector<4x128xf32>
    %877 = math.erf %876 : vector<4x128xf32>
    %cst_126 = arith.constant 1.000000e+00 : f32
    %878 = vector.broadcast %cst_126 : f32 to vector<4x128xf32>
    %879 = arith.addf %878, %877 : vector<4x128xf32>
    %880 = arith.mulf %874, %879 : vector<4x128xf32>
    %881 = vector.broadcast %864 : f32 to vector<4x128xf32>
    %882 = arith.mulf %881, %880 : vector<4x128xf32>
    %883 = arith.addf %862, %882 : vector<4x128xf32>
    %c42_i32 = arith.constant 42 : i32
    %884 = arith.index_cast %c42_i32 : i32 to index
    %885 = memref.load %arg6[%884] : memref<50xf32, #tpu.memory_space<smem>>
    %886 = arith.index_cast %c42_i32 : i32 to index
    %887 = memref.load %arg4[%886] : memref<50xf32, #tpu.memory_space<smem>>
    %888 = vector.broadcast %887 : f32 to vector<4x128xf32>
    %889 = arith.mulf %0, %888 : vector<4x128xf32>
    %890 = arith.index_cast %c42_i32 : i32 to index
    %891 = memref.load %arg5[%890] : memref<50xf32, #tpu.memory_space<smem>>
    %892 = vector.broadcast %891 : f32 to vector<4x128xf32>
    %893 = arith.addf %889, %892 : vector<4x128xf32>
    %cst_127 = arith.constant 5.000000e-01 : f32
    %894 = vector.broadcast %cst_127 : f32 to vector<4x128xf32>
    %895 = arith.mulf %894, %893 : vector<4x128xf32>
    %cst_128 = arith.constant 0.707106769 : f32
    %896 = vector.broadcast %cst_128 : f32 to vector<4x128xf32>
    %897 = arith.mulf %893, %896 : vector<4x128xf32>
    %898 = math.erf %897 : vector<4x128xf32>
    %cst_129 = arith.constant 1.000000e+00 : f32
    %899 = vector.broadcast %cst_129 : f32 to vector<4x128xf32>
    %900 = arith.addf %899, %898 : vector<4x128xf32>
    %901 = arith.mulf %895, %900 : vector<4x128xf32>
    %902 = vector.broadcast %885 : f32 to vector<4x128xf32>
    %903 = arith.mulf %902, %901 : vector<4x128xf32>
    %904 = arith.addf %883, %903 : vector<4x128xf32>
    %c43_i32 = arith.constant 43 : i32
    %905 = arith.index_cast %c43_i32 : i32 to index
    %906 = memref.load %arg6[%905] : memref<50xf32, #tpu.memory_space<smem>>
    %907 = arith.index_cast %c43_i32 : i32 to index
    %908 = memref.load %arg4[%907] : memref<50xf32, #tpu.memory_space<smem>>
    %909 = vector.broadcast %908 : f32 to vector<4x128xf32>
    %910 = arith.mulf %0, %909 : vector<4x128xf32>
    %911 = arith.index_cast %c43_i32 : i32 to index
    %912 = memref.load %arg5[%911] : memref<50xf32, #tpu.memory_space<smem>>
    %913 = vector.broadcast %912 : f32 to vector<4x128xf32>
    %914 = arith.addf %910, %913 : vector<4x128xf32>
    %cst_130 = arith.constant 5.000000e-01 : f32
    %915 = vector.broadcast %cst_130 : f32 to vector<4x128xf32>
    %916 = arith.mulf %915, %914 : vector<4x128xf32>
    %cst_131 = arith.constant 0.707106769 : f32
    %917 = vector.broadcast %cst_131 : f32 to vector<4x128xf32>
    %918 = arith.mulf %914, %917 : vector<4x128xf32>
    %919 = math.erf %918 : vector<4x128xf32>
    %cst_132 = arith.constant 1.000000e+00 : f32
    %920 = vector.broadcast %cst_132 : f32 to vector<4x128xf32>
    %921 = arith.addf %920, %919 : vector<4x128xf32>
    %922 = arith.mulf %916, %921 : vector<4x128xf32>
    %923 = vector.broadcast %906 : f32 to vector<4x128xf32>
    %924 = arith.mulf %923, %922 : vector<4x128xf32>
    %925 = arith.addf %904, %924 : vector<4x128xf32>
    %c44_i32 = arith.constant 44 : i32
    %926 = arith.index_cast %c44_i32 : i32 to index
    %927 = memref.load %arg6[%926] : memref<50xf32, #tpu.memory_space<smem>>
    %928 = arith.index_cast %c44_i32 : i32 to index
    %929 = memref.load %arg4[%928] : memref<50xf32, #tpu.memory_space<smem>>
    %930 = vector.broadcast %929 : f32 to vector<4x128xf32>
    %931 = arith.mulf %0, %930 : vector<4x128xf32>
    %932 = arith.index_cast %c44_i32 : i32 to index
    %933 = memref.load %arg5[%932] : memref<50xf32, #tpu.memory_space<smem>>
    %934 = vector.broadcast %933 : f32 to vector<4x128xf32>
    %935 = arith.addf %931, %934 : vector<4x128xf32>
    %cst_133 = arith.constant 5.000000e-01 : f32
    %936 = vector.broadcast %cst_133 : f32 to vector<4x128xf32>
    %937 = arith.mulf %936, %935 : vector<4x128xf32>
    %cst_134 = arith.constant 0.707106769 : f32
    %938 = vector.broadcast %cst_134 : f32 to vector<4x128xf32>
    %939 = arith.mulf %935, %938 : vector<4x128xf32>
    %940 = math.erf %939 : vector<4x128xf32>
    %cst_135 = arith.constant 1.000000e+00 : f32
    %941 = vector.broadcast %cst_135 : f32 to vector<4x128xf32>
    %942 = arith.addf %941, %940 : vector<4x128xf32>
    %943 = arith.mulf %937, %942 : vector<4x128xf32>
    %944 = vector.broadcast %927 : f32 to vector<4x128xf32>
    %945 = arith.mulf %944, %943 : vector<4x128xf32>
    %946 = arith.addf %925, %945 : vector<4x128xf32>
    %c45_i32 = arith.constant 45 : i32
    %947 = arith.index_cast %c45_i32 : i32 to index
    %948 = memref.load %arg6[%947] : memref<50xf32, #tpu.memory_space<smem>>
    %949 = arith.index_cast %c45_i32 : i32 to index
    %950 = memref.load %arg4[%949] : memref<50xf32, #tpu.memory_space<smem>>
    %951 = vector.broadcast %950 : f32 to vector<4x128xf32>
    %952 = arith.mulf %0, %951 : vector<4x128xf32>
    %953 = arith.index_cast %c45_i32 : i32 to index
    %954 = memref.load %arg5[%953] : memref<50xf32, #tpu.memory_space<smem>>
    %955 = vector.broadcast %954 : f32 to vector<4x128xf32>
    %956 = arith.addf %952, %955 : vector<4x128xf32>
    %cst_136 = arith.constant 5.000000e-01 : f32
    %957 = vector.broadcast %cst_136 : f32 to vector<4x128xf32>
    %958 = arith.mulf %957, %956 : vector<4x128xf32>
    %cst_137 = arith.constant 0.707106769 : f32
    %959 = vector.broadcast %cst_137 : f32 to vector<4x128xf32>
    %960 = arith.mulf %956, %959 : vector<4x128xf32>
    %961 = math.erf %960 : vector<4x128xf32>
    %cst_138 = arith.constant 1.000000e+00 : f32
    %962 = vector.broadcast %cst_138 : f32 to vector<4x128xf32>
    %963 = arith.addf %962, %961 : vector<4x128xf32>
    %964 = arith.mulf %958, %963 : vector<4x128xf32>
    %965 = vector.broadcast %948 : f32 to vector<4x128xf32>
    %966 = arith.mulf %965, %964 : vector<4x128xf32>
    %967 = arith.addf %946, %966 : vector<4x128xf32>
    %c46_i32 = arith.constant 46 : i32
    %968 = arith.index_cast %c46_i32 : i32 to index
    %969 = memref.load %arg6[%968] : memref<50xf32, #tpu.memory_space<smem>>
    %970 = arith.index_cast %c46_i32 : i32 to index
    %971 = memref.load %arg4[%970] : memref<50xf32, #tpu.memory_space<smem>>
    %972 = vector.broadcast %971 : f32 to vector<4x128xf32>
    %973 = arith.mulf %0, %972 : vector<4x128xf32>
    %974 = arith.index_cast %c46_i32 : i32 to index
    %975 = memref.load %arg5[%974] : memref<50xf32, #tpu.memory_space<smem>>
    %976 = vector.broadcast %975 : f32 to vector<4x128xf32>
    %977 = arith.addf %973, %976 : vector<4x128xf32>
    %cst_139 = arith.constant 5.000000e-01 : f32
    %978 = vector.broadcast %cst_139 : f32 to vector<4x128xf32>
    %979 = arith.mulf %978, %977 : vector<4x128xf32>
    %cst_140 = arith.constant 0.707106769 : f32
    %980 = vector.broadcast %cst_140 : f32 to vector<4x128xf32>
    %981 = arith.mulf %977, %980 : vector<4x128xf32>
    %982 = math.erf %981 : vector<4x128xf32>
    %cst_141 = arith.constant 1.000000e+00 : f32
    %983 = vector.broadcast %cst_141 : f32 to vector<4x128xf32>
    %984 = arith.addf %983, %982 : vector<4x128xf32>
    %985 = arith.mulf %979, %984 : vector<4x128xf32>
    %986 = vector.broadcast %969 : f32 to vector<4x128xf32>
    %987 = arith.mulf %986, %985 : vector<4x128xf32>
    %988 = arith.addf %967, %987 : vector<4x128xf32>
    %c47_i32 = arith.constant 47 : i32
    %989 = arith.index_cast %c47_i32 : i32 to index
    %990 = memref.load %arg6[%989] : memref<50xf32, #tpu.memory_space<smem>>
    %991 = arith.index_cast %c47_i32 : i32 to index
    %992 = memref.load %arg4[%991] : memref<50xf32, #tpu.memory_space<smem>>
    %993 = vector.broadcast %992 : f32 to vector<4x128xf32>
    %994 = arith.mulf %0, %993 : vector<4x128xf32>
    %995 = arith.index_cast %c47_i32 : i32 to index
    %996 = memref.load %arg5[%995] : memref<50xf32, #tpu.memory_space<smem>>
    %997 = vector.broadcast %996 : f32 to vector<4x128xf32>
    %998 = arith.addf %994, %997 : vector<4x128xf32>
    %cst_142 = arith.constant 5.000000e-01 : f32
    %999 = vector.broadcast %cst_142 : f32 to vector<4x128xf32>
    %1000 = arith.mulf %999, %998 : vector<4x128xf32>
    %cst_143 = arith.constant 0.707106769 : f32
    %1001 = vector.broadcast %cst_143 : f32 to vector<4x128xf32>
    %1002 = arith.mulf %998, %1001 : vector<4x128xf32>
    %1003 = math.erf %1002 : vector<4x128xf32>
    %cst_144 = arith.constant 1.000000e+00 : f32
    %1004 = vector.broadcast %cst_144 : f32 to vector<4x128xf32>
    %1005 = arith.addf %1004, %1003 : vector<4x128xf32>
    %1006 = arith.mulf %1000, %1005 : vector<4x128xf32>
    %1007 = vector.broadcast %990 : f32 to vector<4x128xf32>
    %1008 = arith.mulf %1007, %1006 : vector<4x128xf32>
    %1009 = arith.addf %988, %1008 : vector<4x128xf32>
    %c48_i32 = arith.constant 48 : i32
    %1010 = arith.index_cast %c48_i32 : i32 to index
    %1011 = memref.load %arg6[%1010] : memref<50xf32, #tpu.memory_space<smem>>
    %1012 = arith.index_cast %c48_i32 : i32 to index
    %1013 = memref.load %arg4[%1012] : memref<50xf32, #tpu.memory_space<smem>>
    %1014 = vector.broadcast %1013 : f32 to vector<4x128xf32>
    %1015 = arith.mulf %0, %1014 : vector<4x128xf32>
    %1016 = arith.index_cast %c48_i32 : i32 to index
    %1017 = memref.load %arg5[%1016] : memref<50xf32, #tpu.memory_space<smem>>
    %1018 = vector.broadcast %1017 : f32 to vector<4x128xf32>
    %1019 = arith.addf %1015, %1018 : vector<4x128xf32>
    %cst_145 = arith.constant 5.000000e-01 : f32
    %1020 = vector.broadcast %cst_145 : f32 to vector<4x128xf32>
    %1021 = arith.mulf %1020, %1019 : vector<4x128xf32>
    %cst_146 = arith.constant 0.707106769 : f32
    %1022 = vector.broadcast %cst_146 : f32 to vector<4x128xf32>
    %1023 = arith.mulf %1019, %1022 : vector<4x128xf32>
    %1024 = math.erf %1023 : vector<4x128xf32>
    %cst_147 = arith.constant 1.000000e+00 : f32
    %1025 = vector.broadcast %cst_147 : f32 to vector<4x128xf32>
    %1026 = arith.addf %1025, %1024 : vector<4x128xf32>
    %1027 = arith.mulf %1021, %1026 : vector<4x128xf32>
    %1028 = vector.broadcast %1011 : f32 to vector<4x128xf32>
    %1029 = arith.mulf %1028, %1027 : vector<4x128xf32>
    %1030 = arith.addf %1009, %1029 : vector<4x128xf32>
    %c49_i32 = arith.constant 49 : i32
    %1031 = arith.index_cast %c49_i32 : i32 to index
    %1032 = memref.load %arg6[%1031] : memref<50xf32, #tpu.memory_space<smem>>
    %1033 = arith.index_cast %c49_i32 : i32 to index
    %1034 = memref.load %arg4[%1033] : memref<50xf32, #tpu.memory_space<smem>>
    %1035 = vector.broadcast %1034 : f32 to vector<4x128xf32>
    %1036 = arith.mulf %0, %1035 : vector<4x128xf32>
    %1037 = arith.index_cast %c49_i32 : i32 to index
    %1038 = memref.load %arg5[%1037] : memref<50xf32, #tpu.memory_space<smem>>
    %1039 = vector.broadcast %1038 : f32 to vector<4x128xf32>
    %1040 = arith.addf %1036, %1039 : vector<4x128xf32>
    %cst_148 = arith.constant 5.000000e-01 : f32
    %1041 = vector.broadcast %cst_148 : f32 to vector<4x128xf32>
    %1042 = arith.mulf %1041, %1040 : vector<4x128xf32>
    %cst_149 = arith.constant 0.707106769 : f32
    %1043 = vector.broadcast %cst_149 : f32 to vector<4x128xf32>
    %1044 = arith.mulf %1040, %1043 : vector<4x128xf32>
    %1045 = math.erf %1044 : vector<4x128xf32>
    %cst_150 = arith.constant 1.000000e+00 : f32
    %1046 = vector.broadcast %cst_150 : f32 to vector<4x128xf32>
    %1047 = arith.addf %1046, %1045 : vector<4x128xf32>
    %1048 = arith.mulf %1042, %1047 : vector<4x128xf32>
    %1049 = vector.broadcast %1032 : f32 to vector<4x128xf32>
    %1050 = arith.mulf %1049, %1048 : vector<4x128xf32>
    %1051 = arith.addf %1030, %1050 : vector<4x128xf32>
    %c50_i32 = arith.constant 50 : i32
    %c0_151 = arith.constant 0 : index
    %1052 = memref.load %arg7[%c0_151] : memref<1xf32, #tpu.memory_space<smem>>
    %1053 = vector.broadcast %1052 : f32 to vector<4x128xf32>
    %1054 = arith.addf %1051, %1053 : vector<4x128xf32>
    %cst_152 = arith.constant 5.000000e-01 : f32
    %1055 = vector.broadcast %cst_152 : f32 to vector<4x128xf32>
    %1056 = arith.mulf %1055, %1054 : vector<4x128xf32>
    %cst_153 = arith.constant 0.707106769 : f32
    %1057 = vector.broadcast %cst_153 : f32 to vector<4x128xf32>
    %1058 = arith.mulf %1054, %1057 : vector<4x128xf32>
    %1059 = math.erf %1058 : vector<4x128xf32>
    %cst_154 = arith.constant 1.000000e+00 : f32
    %1060 = vector.broadcast %cst_154 : f32 to vector<4x128xf32>
    %1061 = arith.addf %1060, %1059 : vector<4x128xf32>
    %1062 = arith.mulf %1056, %1061 : vector<4x128xf32>
    %cst_155 = arith.constant 0.000000e+00 : f32
    %1063 = vector.broadcast %cst_155 : f32 to vector<4x128xf32>
    %1064 = arith.cmpf oeq, %0, %1063 : vector<4x128xf32>
    %cst_156 = arith.constant 0.000000e+00 : f32
    %1065 = vector.broadcast %cst_156 : f32 to vector<4x128xf32>
    %1066 = arith.select %1064, %1065, %1062 : vector<4x128xi1>, vector<4x128xf32>
    %c0_157 = arith.constant 0 : index
    %c0_158 = arith.constant 0 : index
    %1067 = vector.load %arg2[%c0_157, %c0_158] : memref<128x256xf32, #tpu.memory_space<vmem>>, vector<128x256xf32>
    %cst_159 = arith.constant dense<0.000000e+00> : vector<4x256xf32>
    %1068 = tpu.matmul %1066, %1067, %cst_159 {dimension_numbers = #tpu.dot_dimension_numbers<[1], [0], [0], [1], [0, 0, 1, 1], [], []>, precision = #tpu.contract_precision<fp32>} : vector<4x128xf32>, vector<128x256xf32>, vector<4x256xf32> -> vector<4x256xf32>
    %c0_160 = arith.constant 0 : index
    %c0_161 = arith.constant 0 : index
    %1069 = vector.load %arg3[%c0_160, %c0_161] : memref<1x256xf32, #tpu.memory_space<vmem>>, vector<1x256xf32>
    %1070 = vector.broadcast %1069 : vector<1x256xf32> to vector<4x256xf32>
    %1071 = arith.addf %1068, %1070 : vector<4x256xf32>
    %c0_162 = arith.constant 0 : index
    %c0_163 = arith.constant 0 : index
    %1072 = vector.load %arg8[%c0_162, %c0_163] : memref<4x256xf32, #tpu.memory_space<vmem>>, vector<4x256xf32>
    tpu.vector_store %arg8[%c0_162, %c0_163], %1071 {strides = array<i32>} : memref<4x256xf32, #tpu.memory_space<vmem>>, vector<4x256xf32>,
    return
  }
  func.func @transform_0(%arg0: i32) -> (i32, i32) {
    %c0_i32 = arith.constant 0 : i32
    %c0_i32_0 = arith.constant 0 : i32
    return %arg0, %c0_i32 : i32, i32
  }
  func.func @transform_1(%arg0: i32) -> (i32, i32) {
    %c0_i32 = arith.constant 0 : i32
    %c0_i32_0 = arith.constant 0 : i32
    %c0_i32_1 = arith.constant 0 : i32
    return %c0_i32, %c0_i32_0 : i32, i32
  }
  func.func @transform_2(%arg0: i32) -> (i32, i32) {
    %c0_i32 = arith.constant 0 : i32
    %c0_i32_0 = arith.constant 0 : i32
    %c0_i32_1 = arith.constant 0 : i32
    return %c0_i32, %c0_i32_0 : i32, i32
  }
  func.func @transform_3(%arg0: i32) -> i32 {
    %c0_i32 = arith.constant 0 : i32
    %c0_i32_0 = arith.constant 0 : i32
    return %c0_i32 : i32
  }
  func.func @transform_4(%arg0: i32) -> i32 {
    %c0_i32 = arith.constant 0 : i32
    %c0_i32_0 = arith.constant 0 : i32
    return %c0_i32 : i32
  }
  func.func @transform_5(%arg0: i32) -> i32 {
    %c0_i32 = arith.constant 0 : i32
    %c0_i32_0 = arith.constant 0 : i32
    return %c0_i32 : i32
  }
  func.func @transform_6(%arg0: i32) -> i32 {
    %c0_i32 = arith.constant 0 : i32
    %c0_i32_0 = arith.constant 0 : i32
    return %c0_i32 : i32
  }
  func.func @transform_7(%arg0: i32) -> (i32, i32) {
    %c0_i32 = arith.constant 0 : i32
    %c0_i32_0 = arith.constant 0 : i32
    return %arg0, %c0_i32 : i32, i32
  }
}

</mosaic_0001>

<bundles_post_ra>
// kernel: tpu_custom_call.1
= control target key start
LH: loop header
LB: loop body
LE: loop exit
PB: predicated region body
PF: predicated region fallthrough
CT: control target
= control target key end

     0   :  { %13 = vsyncpa [#allocation4], 0  ;;  %s3376_s0 = inlined_call_operand.hbm [shape: f32[4,128], index: 0, kind: input, shape index: {}]   ;;  %s3377_s1 = inlined_call_operand.hbm [shape: f32[128,256], index: 1, kind: input, shape index: {}]   ;;  %s3378_s2 = inlined_call_operand.vmem [shape: f32[1,256], index: 2, kind: input, shape index: {}]   ;;  %s3379_s3 = inlined_call_operand.vmem [shape: f32[50], index: 3, kind: input, shape index: {}]   ;;  %s3380_s4 = inlined_call_operand.vmem [shape: f32[50], index: 4, kind: input, shape index: {}]   ;;  %s3381_s5 = inlined_call_operand.vmem [shape: f32[50], index: 5, kind: input, shape index: {}]   ;;  %s3382_s6 = inlined_call_operand.<no memory space> [shape: f32[1], index: 6, kind: input, shape index: {}]   ;;  %s3383_s7 = inlined_call_operand.hbm [shape: f32[4,256], index: 7, kind: output, shape index: {}]  }
   0x1   :  { %14 = vsyncpa [#allocation8], 0 }
   0x2   :  { %15 = vsyncpa [#allocation6], 0 }
   0x3   :  { %16 = vsyncpa [#allocation11], 0  ;;  %s58_s26 = sshll.u32 %s3380_s4, 4  ;;  %s59_s26 = int_to_ptr.vmem [resolvable:$true] %s58_s26 }
   0x4   :  { %17 = vsyncpa [#allocation5], 0  ;;  %s2032_s27 = scalar_lea.vmem %s59_s26, 16  ;;  %p2037_p1 = scmp.lt.s32.totalorder %s59_s26, %s59_s26 }
   0x5   :  { %p2033_p0 = scmp.ne.s32.totalorder %s59_s26, %s2032_s27  ;;  %p2038_p2 = scmp.lt.s32.totalorder %s2032_s27, %s2032_s27 }
   0x7   :  { %p2039_p3 = por %p2038_p2, %p2037_p1 }
   0x9   :  { %p2040_p4 = pnand %p2039_p3, %p2033_p0 }
   0xb   :  { %2043 = shalt.err (!%p2040_p4)
}
   0xc   :  { %s2138_s28 = smov [#allocation10]   ;;  %s2139_s29 = smov [#allocation3]  }
   0xd   :  { %61 = dma.vmem_to_smem %s59_s26, 16, %s2138_s28, [#allocation11]  }
   0xe   :  { %s24_s30 = sshll.u32 %s2139_s29, 4  ;;  %s2140_s8 = smov [#allocation7]   ;;  %s25_s30 = int_to_ptr.vmem [resolvable:$true] %s24_s30 }
   0xf   :  { %s33_s9 = sshll.u32 %s2140_s8, 4  ;;  %s2052_s10 = scalar_lea.vmem %s25_s30, 64  ;;  %s34_s9 = int_to_ptr.vmem [resolvable:$true] %s33_s9 }
  0x10   :  { %p2053_p5 = scmp.ne.s32.totalorder %s25_s30, %s2052_s10  ;;  %p2057_p6 = scmp.lt.s32.totalorder %s25_s30, %s25_s30 }
  0x11   :  { %p2058_p7 = scmp.lt.s32.totalorder %s2052_s10, %s2052_s10 }
  0x13   :  { %p2059_p8 = por %p2058_p7, %p2057_p6 }
  0x15   :  { %p2060_p9 = pnand %p2059_p8, %p2053_p5 }
  0x17   :  { %2063 = shalt.err (!%p2060_p9)
}
  0x18   :  { %27 = dma.hbm_to_vmem [thread:$0]  %s3376_s0, 64, %s25_s30, [#allocation4]  }
  0x19   :  { %s48_s14 = sshll.u32 %s3379_s3, 4  ;;  %s2072_s15 = scalar_lea.vmem %s34_s9, 4096  ;;  %s49_s14 = int_to_ptr.vmem [resolvable:$true] %s48_s14 }
  0x1a   :  { %p2073_p10 = scmp.ne.s32.totalorder %s34_s9, %s2072_s15  ;;  %p2077_p11 = scmp.lt.s32.totalorder %s34_s9, %s34_s9 }
  0x1b   :  { %p2078_p12 = scmp.lt.s32.totalorder %s2072_s15, %s2072_s15 }
  0x1d   :  { %p2079_p13 = por %p2078_p12, %p2077_p11 }
  0x1f   :  { %p2080_p0 = pnand %p2079_p13, %p2073_p10 }
  0x21   :  { %2083 = shalt.err (!%p2080_p0)
}
  0x22   :  { %s2141_s16 = smov 256   ;;  %s2142_s17 = smov 16  }
  0x23   :  { %39 = dma.hbm_to_vmem [thread:$0]  %s3377_s1, 4096, %s34_s9, [#allocation8], %s2141_s16, %s2141_s16, %s2142_s17  }
  0x24   :  { %s2084_s0 = scalar_lea.vmem %s49_s14, 16  ;;  %p2089_p2 = scmp.lt.s32.totalorder %s49_s14, %s49_s14 }
  0x25   :  { %p2085_p1 = scmp.ne.s32.totalorder %s49_s14, %s2084_s0  ;;  %p2090_p3 = scmp.lt.s32.totalorder %s2084_s0, %s2084_s0 }
  0x27   :  { %p2091_p4 = por %p2090_p3, %p2089_p2 }
  0x29   :  { %p2092_p5 = pnand %p2091_p4, %p2085_p1 }
  0x2b   :  { %2095 = shalt.err (!%p2092_p5)
}
  0x2c   :  { %s2143_s3 = smov [#allocation9]   ;;  %s68_s22 = sshll.u32 %s3381_s5, 4  ;;  %s69_s22 = int_to_ptr.vmem [resolvable:$true] %s68_s22 }
  0x2d   :  { %51 = dma.vmem_to_smem %s49_s14, 16, %s2143_s3, [#allocation6]  }
  0x2e   :  { %s2096_s23 = scalar_lea.vmem %s69_s22, 16  ;;  %p2101_p7 = scmp.lt.s32.totalorder %s69_s22, %s69_s22 }
  0x2f   :  { %p2097_p6 = scmp.ne.s32.totalorder %s69_s22, %s2096_s23  ;;  %p2102_p8 = scmp.lt.s32.totalorder %s2096_s23, %s2096_s23 }
  0x31   :  { %p2103_p9 = por %p2102_p8, %p2101_p7 }
  0x33   :  { %p2104_p10 = pnand %p2103_p9, %p2097_p6 }
  0x35   :  { %2107 = shalt.err (!%p2104_p10)
}
  0x36   :  { %s2144_s1 = smov [#allocation12]  }
  0x37   :  { %71 = dma.vmem_to_smem %s69_s22, 16, %s2144_s1, [#allocation11]  }
  0x38   :  { %2128 = dma.done.wait [#allocation4], 64  }
  0x39   :  { %2129 = vsyncadd [#allocation4], 4294967232 }
  0x3a   :  { %2130 = dma.done.wait [#allocation8], 4096  }
  0x3b   :  { %2131 = vsyncadd [#allocation8], 4294963200 }
  0x3c   :  { %2132 = dma.done.wait [#allocation6], 16  }
  0x3d   :  { %2133 = vsyncadd [#allocation6], 4294967280 }
  0x3e   :  { %2134 = dma.done.wait [#allocation11], 32  }
  0x3f   :  { %2135 = vsyncadd [#allocation11], 4294967264 }
  0x40   :  { %89 = sfence }
  0x41   :  { %v882_v0 = vld [vmem:[#allocation7 + $0xf8] sm:$0xff]  ;;  %v881_v1 = vld [vmem:[#allocation7 + $0xf0] sm:$0xff]  ;;  %v880_v2 = vld [vmem:[#allocation7 + $0xe8] sm:$0xff]  ;;  %v3403_v9 = vmov 0.0   ;;  %s2400_s5 = sld [smem:[#allocation12]] }
  0x42   :  { %v2202_v3 = vand.u32 4294901760, %v882_v0  ;;  %v2204_v4 = vand.u32 4294901760, %v881_v1  ;;  %v2206_v5 = vand.u32 4294901760, %v880_v2  ;;  %v879_v6 = vld [vmem:[#allocation7 + $0xe0] sm:$0xff]  ;;  %v878_v7 = vld [vmem:[#allocation7 + $0xd8] sm:$0xff]  ;;  %v877_v8 = vld [vmem:[#allocation7 + $0xd0] sm:$0xff]  ;;  %991 = vmatprep.mubr.f32.mxu0 %v3403_v9  ;;  %1227 = vmatprep.mubr.f32.mxu1 %v3403_v9 }
  0x43   :  { %v2210_v10 = vand.u32 4294901760, %v879_v6  ;;  %v2212_v11 = vand.u32 4294901760, %v878_v7  ;;  %v2214_v12 = vand.u32 4294901760, %v877_v8  ;;  %v876_v13 = vld [vmem:[#allocation7 + $0xc8] sm:$0xff]  ;;  %v875_v14 = vld [vmem:[#allocation7 + $0xc0] sm:$0xff]  ;;  %v874_v39 = vld [vmem:[#allocation7 + $0xb8] sm:$0xff] }
  0x44   :  { %3472 = vst [vmem:[#allocation19_spill] sm:$0xff] %v2202_v3  ;;  %896 = vmatprep.subr.mxu0 %v2202_v3  ;;  %v2218_v15 = vsub.f32 %v882_v0, %v2202_v3  ;;  %v2221_v16 = vsub.f32 %v881_v1, %v2204_v4  ;;  %v2224_v17 = vsub.f32 %v880_v2, %v2206_v5  ;;  %v2226_v18 = vand.u32 4294901760, %v876_v13  ;;  %v873_v40 = vld [vmem:[#allocation7 + $0xb0] sm:$0xff]  ;;  %v872_v41 = vld [vmem:[#allocation7 + $0xa8] sm:$0xff]  ;;  %v871_v46 = vld [vmem:[#allocation7 + $0xa0] sm:$0xff]  ;;  %s2409_s24 = sld [smem:[#allocation9]] }
  0x45   :  { %898 = vmatpush1.msra.mxu0 %v2204_v4  ;;  %v2230_v19 = vsub.f32 %v879_v6, %v2210_v10  ;;  %v2233_v20 = vsub.f32 %v878_v7, %v2212_v11  ;;  %v2236_v21 = vsub.f32 %v877_v8, %v2214_v12  ;;  %v2238_v22 = vand.u32 4294901760, %v875_v14  ;;  %v870_v47 = vld [vmem:[#allocation7 + $0x98] sm:$0xff]  ;;  %v869_v48 = vld [vmem:[#allocation7 + $0x90] sm:$0xff]  ;;  %v868_v53 = vld [vmem:[#allocation7 + $0x88] sm:$0xff]  ;;  %s2418_s25 = sld [smem:[#allocation10]] }
  0x46   :  { %3473 = vst [vmem:[#allocation20_spill] sm:$0xff] %v2218_v15  ;;  %v3399_v23 = vand.u32 4294901760, %v2218_v15  ;;  %v3398_v24 = vand.u32 4294901760, %v2221_v16  ;;  %900 = vmatprep.subr.mxu0 %v2206_v5  ;;  %v3397_v25 = vand.u32 4294901760, %v2224_v17  ;;  %v2245_v26 = vsub.f32 %v876_v13, %v2226_v18  ;;  %v867_v58 = vld [vmem:[#allocation7 + $0x80] sm:$0xff]  ;;  %s2431_s26 = sld [smem:[#allocation12 + $0x1]] }
  0x47   :  { %902 = vmatpush1.msra.mxu0 %v2210_v10  ;;  %v3396_v27 = vand.u32 4294901760, %v2230_v19  ;;  %v3395_v28 = vand.u32 4294901760, %v2233_v20  ;;  %v3394_v29 = vand.u32 4294901760, %v2236_v21  ;;  %v2252_v30 = vsub.f32 %v875_v14, %v2238_v22  ;;  %v855_v9 = vld [vmem:[#allocation7 + $0x20] sm:$0xff]  ;;  %s2444_s27 = sld [smem:[#allocation9 + $0x1]] }
  0x48   :  { %v1006_v31 = vsub.f32 %v2218_v15, %v3399_v23  ;;  %v1012_v32 = vsub.f32 %v2221_v16, %v3398_v24  ;;  %v1018_v33 = vsub.f32 %v2224_v17, %v3397_v25  ;;  %904 = vmatprep.subr.mxu0 %v2212_v11  ;;  %v3392_v34 = vand.u32 4294901760, %v2245_v26  ;;  %v858_v25 = vld [vmem:[#allocation7 + $0x38] sm:$0xff]  ;;  %v857_v24 = vld [vmem:[#allocation7 + $0x30] sm:$0xff]  ;;  %v856_v23 = vld [vmem:[#allocation7 + $0x28] sm:$0xff]  ;;  %s2450_s28 = sld [smem:[#allocation10 + $0x1]] }
  0x49   :  { %v1024_v35 = vsub.f32 %v2230_v19, %v3396_v27  ;;  %v1030_v36 = vsub.f32 %v2233_v20, %v3395_v28  ;;  %906 = vmatpush1.msra.mxu0 %v2214_v12  ;;  %v1036_v37 = vsub.f32 %v2236_v21, %v3394_v29  ;;  %v3391_v38 = vand.u32 4294901760, %v2252_v30  ;;  %s2456_s29 = sld [smem:[#allocation12 + $0x2]] }
  0x4a   :  { %v1007_v42 = vand.u32 4294901760, %v1006_v31  ;;  %v1013_v43 = vand.u32 4294901760, %v1012_v32  ;;  %v1019_v44 = vand.u32 4294901760, %v1018_v33  ;;  %908 = vmatprep.subr.mxu0 %v2226_v18  ;;  %v1042_v45 = vsub.f32 %v2245_v26, %v3392_v34  ;;  %s2464_s30 = sld [smem:[#allocation9 + $0x2]] }
  0x4b   :  { %v1025_v49 = vand.u32 4294901760, %v1024_v35  ;;  %v1031_v50 = vand.u32 4294901760, %v1030_v36  ;;  %v1037_v51 = vand.u32 4294901760, %v1036_v37  ;;  %910 = vmatpush1.msra.mxu0 %v2238_v22  ;;  %v1048_v52 = vsub.f32 %v2252_v30, %v3391_v38  ;;  %v859_v38 = vld [vmem:[#allocation7 + $0x40] sm:$0xff]  ;;  %s2472_s8 = sld [smem:[#allocation10 + $0x2]] }
  0x4c   :  { %1008 = vmatprep.subr.mxu1 %v1007_v42  ;;  %v1043_v54 = vand.u32 4294901760, %v1042_v45  ;;  %v2284_v55 = vand.u32 4294901760, %v874_v39  ;;  %v2286_v56 = vand.u32 4294901760, %v873_v40  ;;  %v2288_v57 = vand.u32 4294901760, %v872_v41  ;;  %s2486_s9 = sld [smem:[#allocation12 + $0x3]] }
  0x4d   :  { %1014 = vmatpush1.msra.mxu1 %v1013_v43  ;;  %v1049_v59 = vand.u32 4294901760, %v1048_v52  ;;  %v2290_v60 = vand.u32 4294901760, %v871_v46  ;;  %v2292_v61 = vand.u32 4294901760, %v870_v47  ;;  %v2294_v62 = vand.u32 4294901760, %v869_v48  ;;  %s2500_s10 = sld [smem:[#allocation9 + $0x3]] }
  0x4e   :  { %1020 = vmatprep.subr.mxu1 %v1019_v44  ;;  %912 = vmatprep.subr.mxu0 %v2284_v55  ;;  %v2298_v63 = vsub.f32 %v874_v39, %v2284_v55  ;;  %v2301_v0 = vsub.f32 %v873_v40, %v2286_v56  ;;  %v2304_v1 = vsub.f32 %v872_v41, %v2288_v57  ;;  %v2306_v2 = vand.u32 4294901760, %v868_v53  ;;  %s2509_s4 = sld [smem:[#allocation10 + $0x3]] }
  0x4f   :  { %1026 = vmatpush1.msra.mxu1 %v1025_v49  ;;  %914 = vmatpush1.msra.mxu0 %v2286_v56  ;;  %v2310_v6 = vsub.f32 %v871_v46, %v2290_v60  ;;  %v2313_v7 = vsub.f32 %v870_v47, %v2292_v61  ;;  %v2316_v8 = vsub.f32 %v869_v48, %v2294_v62  ;;  %v2318_v13 = vand.u32 4294901760, %v867_v58  ;;  %v866_v48 = vld [vmem:[#allocation7 + $0x78] sm:$0xff]  ;;  %v865_v49 = vld [vmem:[#allocation7 + $0x70] sm:$0xff]  ;;  %s2518_s11 = sld [smem:[#allocation12 + $0x4]] }
  0x50   :  { %1032 = vmatprep.subr.mxu1 %v1031_v50  ;;  %v3389_v14 = vand.u32 4294901760, %v2298_v63  ;;  %v3388_v31 = vand.u32 4294901760, %v2301_v0  ;;  %916 = vmatprep.subr.mxu0 %v2288_v57  ;;  %v3386_v32 = vand.u32 4294901760, %v2304_v1  ;;  %v2325_v33 = vsub.f32 %v868_v53, %v2306_v2  ;;  %v864_v50 = vld [vmem:[#allocation7 + $0x68] sm:$0xff]  ;;  %s2531_s12 = sld [smem:[#allocation9 + $0x4]] }
  0x51   :  { %1038 = vmatpush1.msra.mxu1 %v1037_v51  ;;  %918 = vmatpush1.msra.mxu0 %v2290_v60  ;;  %v3385_v35 = vand.u32 4294901760, %v2310_v6  ;;  %v3384_v36 = vand.u32 4294901760, %v2313_v7  ;;  %v3387_v37 = vand.u32 4294901760, %v2316_v8  ;;  %v2332_v39 = vsub.f32 %v867_v58, %v2318_v13  ;;  %v863_v58 = vld [vmem:[#allocation7 + $0x60] sm:$0xff]  ;;  %s2546_s13 = sld [smem:[#allocation10 + $0x4]] }
  0x52   :  { %3474 = vst [vmem:[#allocation21_spill] sm:$0xff] %v2325_v33  ;;  %1044 = vmatprep.subr.mxu1 %v1043_v54  ;;  %v1054_v40 = vsub.f32 %v2298_v63, %v3389_v14  ;;  %v1060_v41 = vsub.f32 %v2301_v0, %v3388_v31  ;;  %v1066_v42 = vsub.f32 %v2304_v1, %v3386_v32  ;;  %v3390_v43 = vand.u32 4294901760, %v2325_v33  ;;  %s2552_s14 = sld [smem:[#allocation12 + $0x5]] }
  0x53   :  { %3475 = vst [vmem:[#allocation22_spill] sm:$0xff] %v2332_v39  ;;  %920 = vmatprep.subr.mxu0 %v2292_v61  ;;  %1050 = vmatpush1.msra.mxu1 %v1049_v59  ;;  %v1072_v44 = vsub.f32 %v2310_v6, %v3385_v35  ;;  %v1078_v45 = vsub.f32 %v2313_v7, %v3384_v36  ;;  %v3393_v47 = vand.u32 4294901760, %v2332_v39  ;;  %v862_v59 = vld [vmem:[#allocation7 + $0x58] sm:$0xff]  ;;  %v861_v36 = vld [vmem:[#allocation7 + $0x50] sm:$0xff]  ;;  %v2364_v31 = vand.u32 4294901760, %v866_v48  ;;  %s2558_s15 = sld [smem:[#allocation9 + $0x5]] }
  0x54   :  { %922 = vmatpush1.msra.mxu0 %v2294_v62  ;;  %v1084_v46 = vsub.f32 %v2316_v8, %v3387_v37  ;;  %v1055_v51 = vand.u32 4294901760, %v1054_v40  ;;  %v1061_v52 = vand.u32 4294901760, %v1060_v41  ;;  %v1067_v53 = vand.u32 4294901760, %v1066_v42  ;;  %v860_v41 = vld [vmem:[#allocation7 + $0x48] sm:$0xff]  ;;  %s2563_s16 = sld [smem:[#allocation10 + $0x5]] }
  0x55   :  { %924 = vmatprep.subr.mxu0 %v2306_v2  ;;  %v1090_v54 = vsub.f32 %v2325_v33, %v3390_v43  ;;  %v1073_v35 = vand.u32 4294901760, %v1072_v44  ;;  %v1079_v32 = vand.u32 4294901760, %v1078_v45  ;;  %v1096_v40 = vsub.f32 %v2332_v39, %v3393_v47  ;;  %s2568_s17 = sld [smem:[#allocation9 + $0x6]] }
  0x56   :  { %v1085_v37 = vand.u32 4294901760, %v1084_v46  ;;  %926 = vmatpush1.msra.mxu0 %v2318_v13  ;;  %1056 = vmatprep.subr.mxu1 %v1055_v51  ;;  %v2366_v14 = vand.u32 4294901760, %v865_v49  ;;  %v2368_v43 = vand.u32 4294901760, %v864_v50  ;;  %v2370_v45 = vand.u32 4294901760, %v863_v58  ;;  %s2573_s18 = sld [smem:[#allocation10 + $0x6]] }
  0x57   :  { %v1091_v42 = vand.u32 4294901760, %v1090_v54  ;;  %1062 = vmatpush1.msra.mxu1 %v1061_v52  ;;  %v1097_v44 = vand.u32 4294901760, %v1096_v40  ;;  %v2372_v46 = vand.u32 4294901760, %v862_v59  ;;  %v2374_v34 = vand.u32 4294901760, %v861_v36  ;;  %928 = vmatprep.subr.mxu0 %v2364_v31  ;;  %s2577_s19 = sld [smem:[#allocation9 + $0x7]] }
  0x58   :  { %1068 = vmatprep.subr.mxu1 %v1067_v53  ;;  %v2378_v51 = vsub.f32 %v866_v48, %v2364_v31  ;;  %v2381_v54 = vsub.f32 %v865_v49, %v2366_v14  ;;  %v2384_v47 = vsub.f32 %v864_v50, %v2368_v43  ;;  %v2386_v52 = vand.u32 4294901760, %v860_v41  ;;  %930 = vmatpush1.msra.mxu0 %v2366_v14  ;;  %s2581_s0 = sld [smem:[#allocation10 + $0x7]] }
  0x59   :  { %3476 = vst [vmem:[#allocation23_spill] sm:$0xff] %v2374_v34  ;;  %1074 = vmatpush1.msra.mxu1 %v1073_v35  ;;  %v2390_v40 = vsub.f32 %v863_v58, %v2370_v45  ;;  %v2393_v53 = vsub.f32 %v862_v59, %v2372_v46  ;;  %v2396_v48 = vsub.f32 %v861_v36, %v2374_v34  ;;  %v2398_v29 = vand.u32 4294901760, %v859_v38  ;;  %s2584_s3 = sld [smem:[#allocation9 + $0x8]] }
  0x5a   :  { %3477 = vst [vmem:[#allocation24_spill] sm:$0xff] %v2378_v51  ;;  %3478 = vst [vmem:[#allocation25_spill] sm:$0xff] %v2381_v54  ;;  %1080 = vmatprep.subr.mxu1 %v1079_v32  ;;  %v3402_v49 = vand.u32 4294901760, %v2378_v51  ;;  %v3400_v35 = vand.u32 4294901760, %v2381_v54  ;;  %932 = vmatprep.subr.mxu0 %v2368_v43  ;;  %v3401_v50 = vand.u32 4294901760, %v2384_v47  ;;  %v2407_v58 = vsub.f32 %v860_v41, %v2386_v52  ;;  %s2587_s20 = sld [smem:[#allocation10 + $0x8]] }
  0x5b   :  { %3479 = vst [vmem:[#allocation26_spill] sm:$0xff] %v2384_v47  ;;  %3480 = vst [vmem:[#allocation27_spill] sm:$0xff] %v2386_v52  ;;  %1086 = vmatpush1.msra.mxu1 %v1085_v37  ;;  %934 = vmatpush1.msra.mxu0 %v2370_v45  ;;  %v3409_v36 = vand.u32 4294901760, %v2390_v40  ;;  %v3410_v32 = vand.u32 4294901760, %v2393_v53  ;;  %v3415_v59 = vand.u32 4294901760, %v2396_v48  ;;  %v2416_v28 = vsub.f32 %v859_v38, %v2398_v29  ;;  %v854_v38 = vld [vmem:[#allocation7 + $0x18] sm:$0xff] }
  0x5c   :  { %3481 = vst [vmem:[#allocation28_spill] sm:$0xff] %v2390_v40  ;;  %3482 = vst [vmem:[#allocation29_spill] sm:$0xff] %v2393_v53  ;;  %1092 = vmatprep.subr.mxu1 %v1091_v42  ;;  %v1102_v41 = vsub.f32 %v2378_v51, %v3402_v49  ;;  %v1108_v37 = vsub.f32 %v2381_v54, %v3400_v35  ;;  %v1114_v27 = vsub.f32 %v2384_v47, %v3401_v50  ;;  %v853_v47 = vld [vmem:[#allocation7 + $0x10] sm:$0xff]  ;;  %s2590_s21 = sld [smem:[#allocation9 + $0x9]] }
  0x5d   :  { %3483 = vst [vmem:[#allocation30_spill] sm:$0xff] %v2396_v48  ;;  %3484 = vst [vmem:[#allocation31_spill] sm:$0xff] %v2398_v29  ;;  %936 = vmatprep.subr.mxu0 %v2372_v46  ;;  %1098 = vmatpush1.msra.mxu1 %v1097_v44  ;;  %v1120_v42 = vsub.f32 %v2390_v40, %v3409_v36  ;;  %v1126_v35 = vsub.f32 %v2393_v53, %v3410_v32  ;;  %v3487_v32 = vand.u32 4294901760, %v2407_v58  ;;  %v852_v40 = vld [vmem:[#allocation7 + $0x8] sm:$0xff]  ;;  %s2593_s22 = sld [smem:[#allocation12 + $0x6]] }
  0x5e   :  { %3485 = vst [vmem:[#allocation32_spill] sm:$0xff] %v2407_v58  ;;  %3486 = vst [vmem:[#allocation33_spill] sm:$0xff] %v2416_v28  ;;  %938 = vmatpush1.msra.mxu0 %v2374_v34  ;;  %v1132_v50 = vsub.f32 %v2396_v48, %v3415_v59  ;;  %v1103_v44 = vand.u32 4294901760, %v1102_v41  ;;  %v1109_v54 = vand.u32 4294901760, %v1108_v37  ;;  %v1115_v36 = vand.u32 4294901760, %v1114_v27  ;;  %v851_v37 = vld [vmem:[#allocation7] sm:$0xff] }
  0x5f   :  { %940 = vmatprep.subr.mxu0 %v2386_v52  ;;  %v1138_v53 = vsub.f32 %v2407_v58, %v3487_v32  ;;  %v1121_v59 = vand.u32 4294901760, %v1120_v42  ;;  %v1127_v48 = vand.u32 4294901760, %v1126_v35  ;;  %v3488_v51 = vand.u32 4294901760, %v2416_v28  ;;  %s2598_s23 = sld [smem:[#allocation10 + $0x9]] }
  0x60   :  { %v1133_v49 = vand.u32 4294901760, %v1132_v50  ;;  %942 = vmatpush1.msra.mxu0 %v2398_v29  ;;  %1104 = vmatprep.subr.mxu1 %v1103_v44  ;;  %v2458_v39 = vand.u32 4294901760, %v858_v25  ;;  %v2460_v32 = vand.u32 4294901760, %v857_v24  ;;  %v2462_v58 = vand.u32 4294901760, %v856_v23  ;;  %s2602_s1 = sld [smem:[#allocation9 + $0xa]] }
  0x61   :  { %v1144_v41 = vsub.f32 %v2416_v28, %v3488_v51  ;;  %v1139_v27 = vand.u32 4294901760, %v1138_v53  ;;  %1110 = vmatpush1.msra.mxu1 %v1109_v54  ;;  %v2466_v50 = vand.u32 4294901760, %v855_v9  ;;  %v2468_v42 = vand.u32 4294901760, %v854_v38 }
  0x62   :  { %3489 = vst [vmem:[#allocation34_spill] sm:$0xff] %v2458_v39  ;;  %3490 = vst [vmem:[#allocation35_spill] sm:$0xff] %v2460_v32  ;;  %v2470_v51 = vand.u32 4294901760, %v853_v47  ;;  %1116 = vmatprep.subr.mxu1 %v1115_v36  ;;  %944 = vmatprep.subr.mxu0 %v2458_v39  ;;  %v2476_v53 = vsub.f32 %v858_v25, %v2458_v39  ;;  %v2479_v44 = vsub.f32 %v857_v24, %v2460_v32 }
  0x63   :  { %3491 = vst [vmem:[#allocation36_spill] sm:$0xff] %v2462_v58  ;;  %v1145_v35 = vand.u32 4294901760, %v1144_v41  ;;  %3492 = vst [vmem:[#allocation37_spill] sm:$0xff] %v2466_v50  ;;  %v2482_v54 = vsub.f32 %v856_v23, %v2462_v58  ;;  %v2484_v41 = vand.u32 4294901760, %v852_v40  ;;  %1122 = vmatpush1.msra.mxu1 %v1121_v59  ;;  %946 = vmatpush1.msra.mxu0 %v2460_v32  ;;  %v2498_v24 = vand.u32 4294901760, %v851_v37 }
  0x64   :  { %3493 = vst [vmem:[#allocation38_spill] sm:$0xff] %v2468_v42  ;;  %3494 = vst [vmem:[#allocation39_spill] sm:$0xff] %v2470_v51  ;;  %v2490_v36 = vsub.f32 %v855_v9, %v2466_v50  ;;  %v2493_v28 = vsub.f32 %v854_v38, %v2468_v42  ;;  %v2496_v25 = vsub.f32 %v853_v47, %v2470_v51  ;;  %1128 = vmatprep.subr.mxu1 %v1127_v48 }
  0x65   :  { %3495 = vst [vmem:[#allocation40_spill] sm:$0xff] %v2476_v53  ;;  %3496 = vst [vmem:[#allocation41_spill] sm:$0xff] %v2479_v44  ;;  %v3428_v23 = vand.u32 4294901760, %v2476_v53  ;;  %948 = vmatprep.subr.mxu0 %v2462_v58  ;;  %v2507_v32 = vsub.f32 %v852_v40, %v2484_v41  ;;  %1134 = vmatpush1.msra.mxu1 %v1133_v49  ;;  %v2516_v59 = vsub.f32 %v851_v37, %v2498_v24  ;;  %v2544_v37 = vld [vmem:[#allocation3] sm:$0xf] }
  0x66   :  { %3497 = vst [vmem:[#allocation42_spill] sm:$0xff] %v2482_v54  ;;  %3498 = vst [vmem:[#allocation43_spill] sm:$0xff] %v2484_v41  ;;  %950 = vmatpush1.msra.mxu0 %v2466_v50  ;;  %1140 = vmatprep.subr.mxu1 %v1139_v27  ;;  %v3505_v49 = vand.u32 4294901760, %v2479_v44  ;;  %v3506_v47 = vand.u32 4294901760, %v2482_v54  ;;  %v3507_v27 = vand.u32 4294901760, %v2490_v36 }
  0x67   :  { %3499 = vst [vmem:[#allocation44_spill] sm:$0xff] %v2490_v36  ;;  %3500 = vst [vmem:[#allocation45_spill] sm:$0xff] %v2493_v28  ;;  %v1150_v40 = vsub.f32 %v2476_v53, %v3428_v23  ;;  %952 = vmatprep.subr.mxu0 %v2468_v42  ;;  %1146 = vmatpush1.msra.mxu1 %v1145_v35  ;;  %v3508_v23 = vand.u32 4294901760, %v2493_v28 }
  0x68   :  { %3501 = vst [vmem:[#allocation46_spill] sm:$0xff] %v2496_v25  ;;  %3502 = vst [vmem:[#allocation47_spill] sm:$0xff] %v2498_v24  ;;  %v1156_v9 = vsub.f32 %v2479_v44, %v3505_v49  ;;  %v1162_v48 = vsub.f32 %v2482_v54, %v3506_v47  ;;  %v1168_v38 = vsub.f32 %v2490_v36, %v3507_v27  ;;  %954 = vmatpush1.msra.mxu0 %v2470_v51 }
  0x69   :  { %3503 = vst [vmem:[#allocation48_spill] sm:$0xff] %v2507_v32  ;;  %3504 = vst [vmem:[#allocation49_spill] sm:$0xff] %v2516_v59  ;;  %v1174_v53 = vsub.f32 %v2493_v28, %v3508_v23  ;;  %v3509_v49 = vand.u32 4294901760, %v2496_v25  ;;  %v3443_v54 = vand.u32 4294901760, %v2516_v59  ;;  %v1151_v35 = vand.u32 4294901760, %v1150_v40  ;;  %956 = vmatprep.subr.mxu0 %v2484_v41 }
  0x6a   :  { %v1157_v27 = vand.u32 4294901760, %v1156_v9  ;;  %v1163_v36 = vand.u32 4294901760, %v1162_v48  ;;  %v3510_v23 = vand.u32 4294901760, %v2507_v32  ;;  %958 = vmatpush1.msra.mxu0 %v2498_v24  ;;  %v93_v48 = vstv %s2409_s24  ;;  %s2608_s24 = sld [smem:[#allocation10 + $0xa]] }
  0x6b   :  { %v1180_v47 = vsub.f32 %v2496_v25, %v3509_v49  ;;  %v1169_v49 = vand.u32 4294901760, %v1168_v38  ;;  %v1192_v25 = vsub.f32 %v2516_v59, %v3443_v54  ;;  %1152 = vmatprep.subr.mxu1 %v1151_v35  ;;  %v1175_v9 = vand.u32 4294901760, %v1174_v53  ;;  %1237 = vmatprep.subr.mxu0 %v2218_v15 }
  0x6c   :  { %v1186_v28 = vsub.f32 %v2507_v32, %v3510_v23  ;;  %v96_v40 = vstv %s2418_s25  ;;  %1158 = vmatpush1.msra.mxu1 %v1157_v27  ;;  %v94_v23 = vmul.f32 %v93_v48, %v2544_v37  ;;  %v108_v32 = vstv %s2444_s27  ;;  %s2612_s25 = sld [smem:[#allocation9 + $0xb]] }
  0x6d   :  { %v1181_v38 = vand.u32 4294901760, %v1180_v47  ;;  %v111_v44 = vstv %s2450_s28  ;;  %1164 = vmatprep.subr.mxu1 %v1163_v36  ;;  %v109_v53 = vmul.f32 %v108_v32, %v2544_v37  ;;  %v123_v54 = vstv %s2464_s30  ;;  %s2614_s27 = sld [smem:[#allocation12 + $0x7]] }
  0x6e   :  { %v1187_v35 = vand.u32 4294901760, %v1186_v28  ;;  %v126_v15 = vstv %s2472_s8  ;;  %1170 = vmatpush1.msra.mxu1 %v1169_v49  ;;  %v1193_v27 = vand.u32 4294901760, %v1192_v25  ;;  %v97_v59 = vadd.f32 %v96_v40, %v94_v23  ;;  %s2620_s28 = sld [smem:[#allocation10 + $0xb]] }
  0x6f   :  { %v124_v47 = vmul.f32 %v123_v54, %v2544_v37  ;;  %v138_v48 = vstv %s2500_s10  ;;  %1176 = vmatprep.subr.mxu1 %v1175_v9  ;;  %v112_v24 = vadd.f32 %v111_v44, %v109_v53  ;;  %v141_v28 = vstv %s2509_s4  ;;  %s2626_s30 = sld [smem:[#allocation12 + $0x8]] }
  0x70   :  { %v139_v36 = vmul.f32 %v138_v48, %v2544_v37  ;;  %1182 = vmatpush1.msra.mxu1 %v1181_v38  ;;  %v99_v32 = vmul.f32 0.70710677, %v97_v59  ;;  %v153_v51 = vstv %s2531_s12  ;;  %v156_v9 = vstv %s2546_s13  ;;  %s2632_s8 = sld [smem:[#allocation12 + $0x9]] }
  0x71   :  { %v127_v41 = vadd.f32 %v126_v15, %v124_v47  ;;  %1188 = vmatprep.subr.mxu1 %v1187_v35  ;;  %v114_v54 = vmul.f32 0.70710677, %v112_v24  ;;  %v154_v44 = vmul.f32 %v153_v51, %v2544_v37  ;;  %v168_v38 = vstv %s2558_s15  ;;  %s2638_s10 = sld [smem:[#allocation9 + $0xc]] }
  0x72   :  { %v142_v25 = vadd.f32 %v141_v28, %v139_v36  ;;  %1194 = vmatpush1.msra.mxu1 %v1193_v27  ;;  %1929 = verf.f32 %v99_v32  ;;  %v171_v23 = vstv %s2563_s16  ;;  %v169_v27 = vmul.f32 %v168_v38, %v2544_v37  ;;  %s2644_s4 = sld [smem:[#allocation10 + $0xc]] }
  0x73   :  { %v129_v49 = vmul.f32 0.70710677, %v127_v41  ;;  %1373 = vmatprep.subr.mxu1 %v2202_v3  ;;  %1931 = verf.f32 %v114_v54  ;;  %v157_v40 = vadd.f32 %v156_v9, %v154_v44  ;;  %v183_v36 = vstv %s2568_s17  ;;  %s2649_s12 = sld [smem:[#allocation9 + $0xd]] }
  0x74   :  { %v144_v15 = vmul.f32 0.70710677, %v142_v25  ;;  %v186_v28 = vstv %s2573_s18  ;;  %v172_v32 = vadd.f32 %v171_v23, %v169_v27  ;;  %v184_v54 = vmul.f32 %v183_v36, %v2544_v37  ;;  %s2654_s13 = sld [smem:[#allocation10 + $0xd]] }
  0x75   :  { %1933 = verf.f32 %v129_v49  ;;  %v159_v53 = vmul.f32 0.70710677, %v157_v40  ;;  %v198_v44 = vstv %s2577_s19  ;;  %v98_v49 = vmul.f32 0.5, %v97_v59  ;;  %s2656_s15 = sld [smem:[#allocation12 + $0xa]] }
  0x76   :  { %1935 = verf.f32 %v144_v15  ;;  %v199_v9 = vmul.f32 %v198_v44, %v2544_v37  ;;  %v201_v15 = vstv %s2581_s0  ;;  %v213_v38 = vstv %s2584_s3  ;;  %s2663_s16 = sld [smem:[#allocation9 + $0xe]] }
  0x77   :  { %1937 = verf.f32 %v159_v53  ;;  %v113_v48 = vmul.f32 0.5, %v112_v24  ;;  %v174_v47 = vmul.f32 0.70710677, %v172_v32  ;;  %v187_v35 = vadd.f32 %v186_v28, %v184_v54  ;;  %s2667_s17 = sld [smem:[#allocation10 + $0xe]] }
  0x78   :  { %v214_v23 = vmul.f32 %v213_v38, %v2544_v37  ;;  %v128_v53 = vmul.f32 0.5, %v127_v41  ;;  %v2622_v27 = vadd.f32 %v201_v15, %v199_v9  ;;  %v216_v59 = vstv %s2587_s20  ;;  %s2676_s18 = sld [smem:[#allocation12 + $0xb]] }
  0x79   :  { %v228_v36 = vstv %s2590_s21  ;;  %v143_v51 = vmul.f32 0.5, %v142_v25  ;;  %1939 = verf.f32 %v174_v47  ;;  %v189_v44 = vmul.f32 0.70710677, %v187_v35  ;;  %s2709_s19 = sld [smem:[#allocation12 + $0xe]] }
  0x7a   :  { %v2628_v24 = vadd.f32 %v216_v59, %v214_v23  ;;  %v204_v54 = vmul.f32 0.70710677, %v2622_v27  ;;  %v229_v41 = vmul.f32 %v228_v36, %v2544_v37  ;;  %v231_v9 = vstv %s2598_s23  ;;  %s2714_s0 = sld [smem:[#allocation10 + $0x10]] }
  0x7b   :  { %v158_v15 = vmul.f32 0.5, %v157_v40  ;;  %1941 = verf.f32 %v189_v44  ;;  %v243_v23 = vstv %s2602_s1  ;;  %v246_v59 = vstv %s2608_s24  ;;  %s2718_s3 = sld [smem:[#allocation12 + $0xf]] }
  0x7c   :  { %v219_v47 = vmul.f32 0.70710677, %v2628_v24  ;;  %1943 = verf.f32 %v204_v54  ;;  %v2640_v38 = vadd.f32 %v231_v9, %v229_v41  ;;  %v244_v40 = vmul.f32 %v243_v23, %v2544_v37  ;;  %s2729_s20 = sld [smem:[#allocation10 + $0x11]] }
  0x7d   :  { %v258_v36 = vstv %s2612_s25  ;;  %v173_v3 = vmul.f32 0.5, %v172_v32  ;;  %v261_v23 = vstv %s2620_s28  ;;  %v273_v32 = vstv %s2638_s10  ;;  %s2735_s21 = sld [smem:[#allocation9 + $0x12]] }
  0x7e   :  { %1945 = verf.f32 %v219_v47  ;;  %v234_v54 = vmul.f32 0.70710677, %v2640_v38  ;;  %v259_v41 = vmul.f32 %v258_v36, %v2544_v37  ;;  %v2658_v47 = vadd.f32 %v246_v59, %v244_v40  ;;  %s2743_s23 = sld [smem:[#allocation9 + $0x13]] }
  0x7f   :  { %v1930_v28 = vpop.eup %1929  ;;  %v3511_v40 = vstv %s2400_s5  ;;  %v276_v33 = vstv %s2644_s4  ;;  %s2682_s5 = sld [smem:[#allocation12 + $0xc]] }
  0x80   :  { %v1932_v44 = vpop.eup %1931  ;;  %v101_v25 = vadd.f32 1.0, %v1930_v28  ;;  %1947 = verf.f32 %v234_v54  ;;  %v2661_v39 = vadd.f32 %v261_v23, %v259_v41  ;;  %v188_v54 = vmul.f32 0.5, %v187_v35  ;;  %s2748_s1 = sld [smem:[#allocation10 + $0x13]] }
  0x81   :  { %v116_v50 = vadd.f32 1.0, %v1932_v44  ;;  %v249_v44 = vmul.f32 0.70710677, %v2658_v47  ;;  %s2751_s24 = sld [smem:[#allocation9 + $0x14]] }
  0x82   :  { %v1934_v9 = vpop.eup %1933  ;;  %v102_v28 = vmul.f32 %v101_v25, %v98_v49  ;;  %v264_v41 = vmul.f32 0.70710677, %v2661_v39  ;;  %s2757_s25 = sld [smem:[#allocation10 + $0x14]] }
  0x83   :  { %v1936_v58 = vpop.eup %1935  ;;  %v131_v42 = vadd.f32 1.0, %v1934_v9  ;;  %v117_v36 = vmul.f32 %v116_v50, %v113_v48  ;;  %v3512_v9 = vstv %s2431_s26  ;;  %1949 = verf.f32 %v249_v44  ;;  %s2689_s26 = sld [smem:[#allocation9 + $0xf]] }
  0x84   :  { %v146_v29 = vadd.f32 1.0, %v1936_v58  ;;  %v1938_v59 = vpop.eup %1937  ;;  %v104_v49 = vmul.f32 %v3511_v40, %v102_v28  ;;  %v3513_v50 = vstv %s2456_s29  ;;  %1951 = verf.f32 %v264_v41  ;;  %s2695_s29 = sld [smem:[#allocation12 + $0xd]] }
  0x85   :  { %v132_v25 = vmul.f32 %v131_v42, %v128_v53  ;;  %v119_v23 = vmul.f32 %v3512_v9, %v117_v36  ;;  %v161_v58 = vadd.f32 1.0, %v1938_v59  ;;  %v3514_v42 = vstv %s2486_s9  ;;  %s2701_s9 = sld [smem:[#allocation10 + $0xf]] }
  0x86   :  { %v147_v52 = vmul.f32 %v146_v29, %v143_v51  ;;  %v274_v29 = vmul.f32 %v273_v32, %v2544_v37  ;;  %v1940_v51 = vpop.eup %1939  ;;  %v203_v36 = vmul.f32 0.5, %v2622_v27  ;;  %v218_v44 = vmul.f32 0.5, %v2628_v24  ;;  %s2767_s28 = sld [smem:[#allocation9 + $0x15]] }
  0x87   :  { %v134_v48 = vmul.f32 %v3513_v50, %v132_v25  ;;  %v120_v28 = vadd.f32 %v119_v23, %v104_v49  ;;  %v162_v53 = vmul.f32 %v161_v58, %v158_v15  ;;  %v288_v59 = vstv %s2649_s12  ;;  %s2782_s10 = sld [smem:[#allocation12 + $0x12]] }
  0x88   :  { %v149_v35 = vmul.f32 %v3514_v42, %v147_v52  ;;  %v291_v40 = vstv %s2654_s13  ;;  %v3515_v52 = vstv %s2518_s11  ;;  %v176_v15 = vadd.f32 1.0, %v1940_v51  ;;  %v1942_v32 = vpop.eup %1941  ;;  %s2704_s11 = sld [smem:[#allocation9 + $0x10]] }
  0x89   :  { %v135_v49 = vadd.f32 %v134_v48, %v120_v28  ;;  %v164_v25 = vmul.f32 %v3515_v52, %v162_v53  ;;  %v2693_v41 = vadd.f32 %v276_v33, %v274_v29  ;;  %v238_v9 = vstv %s2632_s8  ;;  %v1944_v58 = vpop.eup %1943  ;;  %s2776_s8 = sld [smem:[#allocation10 + $0x15]] }
  0x8a   :  { %v289_v27 = vmul.f32 %v288_v59, %v2544_v37  ;;  %v303_v24 = vstv %s2663_s16  ;;  %v177_v42 = vmul.f32 %v176_v15, %v173_v3  ;;  %v191_v48 = vadd.f32 1.0, %v1942_v32  ;;  %s2789_s4 = sld [smem:[#allocation9 + $0x16]] }
  0x8b   :  { %v150_v50 = vadd.f32 %v149_v35, %v135_v49  ;;  %v306_v28 = vstv %s2667_s17  ;;  %v1946_v33 = vpop.eup %1945  ;;  %v206_v53 = vadd.f32 1.0, %v1944_v58  ;;  %v279_v29 = vmul.f32 0.70710677, %v2693_v41  ;;  %s2794_s12 = sld [smem:[#allocation10 + $0x16]] }
  0x8c   :  { %v2707_v51 = vadd.f32 %v291_v40, %v289_v27  ;;  %v304_v59 = vmul.f32 %v303_v24, %v2544_v37  ;;  %v3516_v23 = vstv %s2552_s14  ;;  %v192_v3 = vmul.f32 %v191_v48, %v188_v54  ;;  %s2724_s14 = sld [smem:[#allocation9 + $0x11]] }
  0x8d   :  { %v165_v52 = vadd.f32 %v164_v25, %v150_v50  ;;  %v179_v35 = vmul.f32 %v3516_v23, %v177_v42  ;;  %v221_v49 = vadd.f32 1.0, %v1946_v33  ;;  %v207_v15 = vmul.f32 %v206_v53, %v203_v36  ;;  %v1948_v27 = vpop.eup %1947  ;;  %s2798_s13 = sld [smem:[#allocation9 + $0x17]] }
  0x8e   :  { %v233_v32 = vmul.f32 0.5, %v2640_v38  ;;  %1953 = verf.f32 %v279_v29  ;;  %v294_v40 = vmul.f32 0.70710677, %v2707_v51  ;;  %v3517_v25 = vstv %s2593_s22  ;;  %s2740_s22 = sld [smem:[#allocation10 + $0x12]] }
  0x8f   :  { %v180_v24 = vadd.f32 %v179_v35, %v165_v52  ;;  %v194_v58 = vmul.f32 %v3517_v25, %v192_v3  ;;  %v222_v50 = vmul.f32 %v221_v49, %v218_v44  ;;  %v2722_v23 = vadd.f32 %v306_v28, %v304_v59  ;;  %s2806_s16 = sld [smem:[#allocation12 + $0x13]] }
  0x90   :  { %v3518_v54 = vstv %s2614_s27  ;;  %v236_v42 = vadd.f32 1.0, %v1948_v27  ;;  %1955 = verf.f32 %v294_v40  ;;  %v318_v38 = vstv %s2689_s26  ;;  %v1950_v28 = vpop.eup %1949  ;;  %s2761_s27 = sld [smem:[#allocation12 + $0x10]] }
  0x91   :  { %v209_v36 = vmul.f32 %v3518_v54, %v207_v15  ;;  %v195_v48 = vadd.f32 %v194_v58, %v180_v24  ;;  %v3519_v33 = vstv %s2626_s30  ;;  %v248_v29 = vmul.f32 0.5, %v2658_v47  ;;  %v1952_v49 = vpop.eup %1951  ;;  %s2769_s30 = sld [smem:[#allocation12 + $0x11]] }
  0x92   :  { %v224_v53 = vmul.f32 %v3519_v33, %v222_v50  ;;  %v309_v44 = vmul.f32 0.70710677, %v2722_v23  ;;  %v237_v59 = vmul.f32 %v236_v42, %v233_v32  ;;  %v263_v52 = vmul.f32 0.5, %v2661_v39  ;;  %s2813_s17 = sld [smem:[#allocation9 + $0x18]] }
  0x93   :  { %v319_v35 = vmul.f32 %v318_v38, %v2544_v37  ;;  %v321_v3 = vstv %s2701_s9  ;;  %v210_v15 = vadd.f32 %v209_v36, %v195_v48  ;;  %v251_v40 = vadd.f32 1.0, %v1950_v28  ;;  %s2829_s26 = sld [smem:[#allocation10 + $0x19]] }
  0x94   :  { %1957 = verf.f32 %v309_v44  ;;  %v333_v47 = vstv %s2704_s11  ;;  %v239_v27 = vmul.f32 %v238_v9, %v237_v59  ;;  %v266_v24 = vadd.f32 1.0, %v1952_v49  ;;  %s2836_s9 = sld [smem:[#allocation12 + $0x15]] }
  0x95   :  { %v2745_v32 = vadd.f32 %v321_v3, %v319_v35  ;;  %v334_v39 = vmul.f32 %v333_v47, %v2544_v37  ;;  %v225_v25 = vadd.f32 %v224_v53, %v210_v15  ;;  %v252_v58 = vmul.f32 %v251_v40, %v248_v29  ;;  %s2843_s11 = sld [smem:[#allocation9 + $0x1a]] }
  0x96   :  { %v336_v50 = vstv %s2714_s0  ;;  %v267_v54 = vmul.f32 %v266_v24, %v263_v52  ;;  %v268_v36 = vstv %s2676_s18  ;;  %v3520_v48 = vstv %s2656_s15  ;;  %s2804_s15 = sld [smem:[#allocation10 + $0x17]] }
  0x97   :  { %v324_v42 = vmul.f32 0.70710677, %v2745_v32  ;;  %v2755_v9 = vadd.f32 %v336_v50, %v334_v39  ;;  %v240_v38 = vadd.f32 %v239_v27, %v225_v25  ;;  %v254_v33 = vmul.f32 %v3520_v48, %v252_v58  ;;  %s2817_s18 = sld [smem:[#allocation10 + $0x18]] }
  0x98   :  { %v348_v53 = vstv %s2724_s14  ;;  %v283_v29 = vstv %s2682_s5  ;;  %v351_v28 = vstv %s2729_s20  ;;  %v269_v52 = vmul.f32 %v268_v36, %v267_v54  ;;  %s2821_s5 = sld [smem:[#allocation9 + $0x19]] }
  0x99   :  { %1959 = verf.f32 %v324_v42  ;;  %v339_v44 = vmul.f32 0.70710677, %v2755_v9  ;;  %v255_v59 = vadd.f32 %v254_v33, %v240_v38  ;;  %v349_v35 = vmul.f32 %v348_v53, %v2544_v37  ;;  %s2854_s0 = sld [smem:[#allocation9 + $0x1b]] }
  0x9a   :  { %v363_v3 = vstv %s2735_s21  ;;  %v278_v49 = vmul.f32 0.5, %v2693_v41  ;;  %v366_v40 = vstv %s2740_s22  ;;  %v293_v27 = vmul.f32 0.5, %v2707_v51  ;;  %s2863_s14 = sld [smem:[#allocation10 + $0x1b]] }
  0x9b   :  { %1961 = verf.f32 %v339_v44  ;;  %v364_v15 = vmul.f32 %v363_v3, %v2544_v37  ;;  %v1954_v47 = vpop.eup %1953  ;;  %v298_v24 = vstv %s2695_s29  ;;  %v2780_v39 = vadd.f32 %v351_v28, %v349_v35  ;;  %s2833_s29 = sld [smem:[#allocation12 + $0x14]] }
  0x9c   :  { %v378_v25 = vstv %s2743_s23  ;;  %v281_v58 = vadd.f32 1.0, %v1954_v47  ;;  %v381_v54 = vstv %s2748_s1  ;;  %v270_v42 = vadd.f32 %v269_v52, %v255_v59  ;;  %s2865_s20 = sld [smem:[#allocation12 + $0x17]] }
  0x9d   :  { %v2785_v41 = vadd.f32 %v366_v40, %v364_v15  ;;  %v379_v50 = vmul.f32 %v378_v25, %v2544_v37  ;;  %v1956_v36 = vpop.eup %1955  ;;  %v313_v38 = vstv %s2709_s19  ;;  %v354_v51 = vmul.f32 0.70710677, %v2780_v39  ;;  %s2849_s19 = sld [smem:[#allocation10 + $0x1a]] }
  0x9e   :  { %v393_v48 = vstv %s2751_s24  ;;  %v282_v33 = vmul.f32 %v281_v58, %v278_v49  ;;  %v296_v53 = vadd.f32 1.0, %v1956_v36  ;;  %v396_v28 = vstv %s2757_s25  ;;  %s2873_s21 = sld [smem:[#allocation9 + $0x1c]] }
  0x9f   :  { %v369_v44 = vmul.f32 0.70710677, %v2785_v41  ;;  %v308_v35 = vmul.f32 0.5, %v2722_v23  ;;  %1963 = verf.f32 %v354_v51  ;;  %v2801_v3 = vadd.f32 %v381_v54, %v379_v50  ;;  %s2875_s22 = sld [smem:[#allocation12 + $0x18]] }
  0xa0   :  { %v394_v59 = vmul.f32 %v393_v48, %v2544_v37  ;;  %v284_v15 = vmul.f32 %v283_v29, %v282_v33  ;;  %v297_v49 = vmul.f32 %v296_v53, %v293_v27  ;;  %v408_v40 = vstv %s2767_s28  ;;  %s2883_s23 = sld [smem:[#allocation10 + $0x1c]] }
  0xa1   :  { %v1958_v52 = vpop.eup %1957  ;;  %1965 = verf.f32 %v369_v44  ;;  %v328_v25 = vstv %s2718_s3  ;;  %v384_v23 = vmul.f32 0.70710677, %v2801_v3  ;;  %v409_v36 = vmul.f32 %v408_v40, %v2544_v37  ;;  %s2857_s3 = sld [smem:[#allocation12 + $0x16]] }
  0xa2   :  { %v311_v47 = vadd.f32 1.0, %v1958_v52  ;;  %v2811_v58 = vadd.f32 %v396_v28, %v394_v59  ;;  %v285_v50 = vadd.f32 %v284_v15, %v270_v42  ;;  %v299_v54 = vmul.f32 %v298_v24, %v297_v49  ;;  %s2886_s1 = sld [smem:[#allocation9 + $0x1d]] }
  0xa3   :  { %v411_v29 = vstv %s2776_s8  ;;  %v343_v51 = vstv %s2761_s27  ;;  %1967 = verf.f32 %v384_v23  ;;  %v323_v53 = vmul.f32 0.5, %v2745_v32  ;;  %s2891_s24 = sld [smem:[#allocation10 + $0x1d]] }
  0xa4   :  { %v312_v27 = vmul.f32 %v311_v47, %v308_v35  ;;  %v399_v48 = vmul.f32 0.70710677, %v2811_v58  ;;  %v300_v33 = vadd.f32 %v299_v54, %v285_v50  ;;  %v2824_v44 = vadd.f32 %v411_v29, %v409_v36  ;;  %s2894_s25 = sld [smem:[#allocation9 + $0x1e]] }
  0xa5   :  { %v423_v24 = vstv %s2789_s4  ;;  %v426_v59 = vstv %s2794_s12  ;;  %v338_v15 = vmul.f32 0.5, %v2755_v9  ;;  %v358_v49 = vstv %s2769_s30  ;;  %s2897_s27 = sld [smem:[#allocation12 + $0x19]] }
  0xa6   :  { %v1960_v42 = vpop.eup %1959  ;;  %v314_v28 = vmul.f32 %v313_v38, %v312_v27  ;;  %1969 = verf.f32 %v399_v48  ;;  %v424_v35 = vmul.f32 %v423_v24, %v2544_v37  ;;  %v414_v32 = vmul.f32 0.70710677, %v2824_v44  ;;  %s2906_s28 = sld [smem:[#allocation10 + $0x1e]] }
  0xa7   :  { %v326_v52 = vadd.f32 1.0, %v1960_v42  ;;  %v438_v23 = vstv %s2798_s13  ;;  %v441_v50 = vstv %s2804_s15  ;;  %v373_v29 = vstv %s2782_s10  ;;  %s2911_s30 = sld [smem:[#allocation9 + $0x1f]] }
  0xa8   :  { %v1962_v40 = vpop.eup %1961  ;;  %v315_v47 = vadd.f32 %v314_v28, %v300_v33  ;;  %v2838_v38 = vadd.f32 %v426_v59, %v424_v35  ;;  %1971 = verf.f32 %v414_v32  ;;  %v439_v9 = vmul.f32 %v438_v23, %v2544_v37  ;;  %s2914_s8 = sld [smem:[#allocation12 + $0x1a]] }
  0xa9   :  { %v327_v54 = vmul.f32 %v326_v52, %v323_v53  ;;  %v341_v36 = vadd.f32 1.0, %v1962_v40  ;;  %v388_v27 = vstv %s2806_s16  ;;  %v453_v33 = vstv %s2813_s17  ;;  %s2919_s10 = sld [smem:[#allocation10 + $0x1f]] }
  0xaa   :  { %v429_v48 = vmul.f32 0.70710677, %v2838_v38  ;;  %v2851_v28 = vadd.f32 %v441_v50, %v439_v9  ;;  %v454_v53 = vmul.f32 %v453_v33, %v2544_v37  ;;  %v353_v35 = vmul.f32 0.5, %v2780_v39  ;;  %s2922_s4 = sld [smem:[#allocation9 + $0x20]] }
  0xab   :  { %v329_v24 = vmul.f32 %v328_v25, %v327_v54  ;;  %v342_v42 = vmul.f32 %v341_v36, %v338_v15  ;;  %v456_v59 = vstv %s2817_s18  ;;  %v468_v52 = vstv %s2821_s5  ;;  %s2924_s12 = sld [smem:[#allocation12 + $0x1b]] }
  0xac   :  { %1973 = verf.f32 %v429_v48  ;;  %v1964_v32 = vpop.eup %1963  ;;  %v368_v25 = vmul.f32 0.5, %v2785_v41  ;;  %v444_v15 = vmul.f32 0.70710677, %v2851_v28  ;;  %v2867_v39 = vadd.f32 %v456_v59, %v454_v53  ;;  %s2933_s13 = sld [smem:[#allocation10 + $0x20]] }
  0xad   :  { %v330_v40 = vadd.f32 %v329_v24, %v315_v47  ;;  %v344_v23 = vmul.f32 %v343_v51, %v342_v42  ;;  %v356_v54 = vadd.f32 1.0, %v1964_v32  ;;  %v469_v36 = vmul.f32 %v468_v52, %v2544_v37  ;;  %s2937_s15 = sld [smem:[#allocation9 + $0x21]] }
  0xae   :  { %v1966_v50 = vpop.eup %1965  ;;  %v471_v9 = vstv %s2829_s26  ;;  %v383_v51 = vmul.f32 0.5, %v2801_v3  ;;  %v403_v47 = vstv %s2833_s29  ;;  %1975 = verf.f32 %v444_v15  ;;  %s2939_s16 = sld [smem:[#allocation12 + $0x1c]] }
  0xaf   :  { %v371_v48 = vadd.f32 1.0, %v1966_v50  ;;  %v345_v41 = vadd.f32 %v344_v23, %v330_v40  ;;  %v357_v33 = vmul.f32 %v356_v54, %v353_v35  ;;  %v459_v24 = vmul.f32 0.70710677, %v2867_v39  ;;  %s2947_s17 = sld [smem:[#allocation10 + $0x21]] }
  0xb0   :  { %v2878_v42 = vadd.f32 %v471_v9, %v469_v36  ;;  %v1968_v53 = vpop.eup %1967  ;;  %v398_v52 = vmul.f32 0.5, %v2811_v58  ;;  %v418_v32 = vstv %s2836_s9  ;;  %v483_v3 = vstv %s2843_s11  ;;  %s2950_s18 = sld [smem:[#allocation12 + $0x1d]] }
  0xb1   :  { %v372_v59 = vmul.f32 %v371_v48, %v368_v25  ;;  %v359_v15 = vmul.f32 %v358_v49, %v357_v33  ;;  %v386_v50 = vadd.f32 1.0, %v1968_v53  ;;  %1977 = verf.f32 %v459_v24  ;;  %s2957_s5 = sld [smem:[#allocation9 + $0x22]] }
  0xb2   :  { %v486_v40 = vstv %s2849_s19  ;;  %v474_v54 = vmul.f32 0.70710677, %v2878_v42  ;;  %v484_v25 = vmul.f32 %v483_v3, %v2544_v37  ;;  %v498_v36 = vstv %s2854_s0  ;;  %s2961_s26 = sld [smem:[#allocation10 + $0x22]] }
  0xb3   :  { %v1970_v35 = vpop.eup %1969  ;;  %v374_v23 = vmul.f32 %v373_v29, %v372_v59  ;;  %v360_v58 = vadd.f32 %v359_v15, %v345_v41  ;;  %v387_v9 = vmul.f32 %v386_v50, %v383_v51  ;;  %v499_v48 = vmul.f32 %v498_v36, %v2544_v37  ;;  %s2965_s29 = sld [smem:[#allocation9 + $0x23]] }
  0xb4   :  { %v401_v49 = vadd.f32 1.0, %v1970_v35  ;;  %v413_v33 = vmul.f32 0.5, %v2824_v44  ;;  %1979 = verf.f32 %v474_v54  ;;  %v2899_v29 = vadd.f32 %v486_v40, %v484_v25  ;;  %s2971_s9 = sld [smem:[#allocation10 + $0x23]] }
  0xb5   :  { %v501_v24 = vstv %s2863_s14  ;;  %v1972_v53 = vpop.eup %1971  ;;  %v375_v59 = vadd.f32 %v374_v23, %v360_v58  ;;  %v389_v41 = vmul.f32 %v388_v27, %v387_v9  ;;  %v433_v50 = vstv %s2857_s3  ;;  %s2974_s11 = sld [smem:[#allocation12 + $0x1e]] }
  0xb6   :  { %v402_v51 = vmul.f32 %v401_v49, %v398_v52  ;;  %v2904_v3 = vadd.f32 %v501_v24, %v499_v48  ;;  %v416_v15 = vadd.f32 1.0, %v1972_v53  ;;  %v489_v44 = vmul.f32 0.70710677, %v2899_v29  ;;  %s2981_s19 = sld [smem:[#allocation9 + $0x24]] }
  0xb7   :  { %v513_v35 = vstv %s2873_s21  ;;  %v390_v40 = vadd.f32 %v389_v41, %v375_v59  ;;  %v428_v25 = vmul.f32 0.5, %v2838_v38  ;;  %v516_v58 = vstv %s2883_s23  ;;  %s2985_s0 = sld [smem:[#allocation10 + $0x24]] }
  0xb8   :  { %v404_v54 = vmul.f32 %v403_v47, %v402_v51  ;;  %v504_v27 = vmul.f32 0.70710677, %v2904_v3  ;;  %v417_v23 = vmul.f32 %v416_v15, %v413_v33  ;;  %1981 = verf.f32 %v489_v44  ;;  %s2988_s3 = sld [smem:[#allocation12 + $0x1f]] }
  0xb9   :  { %v1974_v52 = vpop.eup %1973  ;;  %v514_v36 = vmul.f32 %v513_v35, %v2544_v37  ;;  %v443_v38 = vmul.f32 0.5, %v2851_v28  ;;  %v528_v33 = vstv %s2886_s1  ;;  %v531_v24 = vstv %s2891_s24  ;;  %s2994_s14 = sld [smem:[#allocation9 + $0x25]] }
  0xba   :  { %v405_v9 = vadd.f32 %v404_v54, %v390_v40  ;;  %v431_v47 = vadd.f32 1.0, %v1974_v52  ;;  %1983 = verf.f32 %v504_v27  ;;  %v419_v49 = vmul.f32 %v418_v32, %v417_v23  ;;  %s3008_s21 = sld [smem:[#allocation9 + $0x26]] }
  0xbb   :  { %v2926_v48 = vadd.f32 %v516_v58, %v514_v36  ;;  %v1976_v53 = vpop.eup %1975  ;;  %v448_v41 = vstv %s2865_s20  ;;  %v529_v51 = vmul.f32 %v528_v33, %v2544_v37  ;;  %v543_v15 = vstv %s2894_s25  ;;  %s2998_s20 = sld [smem:[#allocation10 + $0x25]] }
  0xbc   :  { %v432_v59 = vmul.f32 %v431_v47, %v428_v25  ;;  %v420_v28 = vadd.f32 %v419_v49, %v405_v9  ;;  %v446_v44 = vadd.f32 1.0, %v1976_v53  ;;  %v458_v32 = vmul.f32 0.5, %v2867_v39  ;;  %s3016_s23 = sld [smem:[#allocation12 + $0x20]] }
  0xbd   :  { %v519_v35 = vmul.f32 0.70710677, %v2926_v48  ;;  %v2941_v54 = vadd.f32 %v531_v24, %v529_v51  ;;  %v544_v25 = vmul.f32 %v543_v15, %v2544_v37  ;;  %v546_v27 = vstv %s2906_s28  ;;  %s3020_s1 = sld [smem:[#allocation12 + $0x21]] }
  0xbe   :  { %v434_v40 = vmul.f32 %v433_v50, %v432_v59  ;;  %v1978_v52 = vpop.eup %1977  ;;  %v447_v23 = vmul.f32 %v446_v44, %v443_v38  ;;  %v463_v36 = vstv %s2875_s22  ;;  %v558_v58 = vstv %s2911_s30  ;;  %s3012_s22 = sld [smem:[#allocation10 + $0x26]] }
  0xbf   :  { %1985 = verf.f32 %v519_v35  ;;  %v461_v9 = vadd.f32 1.0, %v1978_v52  ;;  %v473_v50 = vmul.f32 0.5, %v2878_v42  ;;  %v534_v47 = vmul.f32 0.70710677, %v2941_v54  ;;  %s3028_s24 = sld [smem:[#allocation9 + $0x27]] }
  0xc0   :  { %v435_v39 = vadd.f32 %v434_v40, %v420_v28  ;;  %v449_v49 = vmul.f32 %v448_v41, %v447_v23  ;;  %v2953_v33 = vadd.f32 %v546_v27, %v544_v25  ;;  %v559_v38 = vmul.f32 %v558_v58, %v2544_v37  ;;  %s3032_s25 = sld [smem:[#allocation10 + $0x27]] }
  0xc1   :  { %v561_v24 = vstv %s2919_s10  ;;  %v1980_v53 = vpop.eup %1979  ;;  %v462_v59 = vmul.f32 %v461_v9, %v458_v32  ;;  %v478_v51 = vstv %s2897_s27  ;;  %1987 = verf.f32 %v534_v47  ;;  %s3034_s27 = sld [smem:[#allocation12 + $0x22]] }
  0xc2   :  { %v573_v15 = vstv %s2922_s4  ;;  %v450_v42 = vadd.f32 %v449_v49, %v435_v39  ;;  %v476_v28 = vadd.f32 1.0, %v1980_v53  ;;  %v493_v44 = vstv %s2914_s8  ;;  %s3042_s28 = sld [smem:[#allocation9 + $0x28]] }
  0xc3   :  { %v549_v41 = vmul.f32 0.70710677, %v2953_v33  ;;  %v464_v35 = vmul.f32 %v463_v36, %v462_v59  ;;  %v2967_v40 = vadd.f32 %v561_v24, %v559_v38  ;;  %v574_v25 = vmul.f32 %v573_v15, %v2544_v37  ;;  %s3045_s30 = sld [smem:[#allocation12 + $0x23]] }
  0xc4   :  { %v576_v27 = vstv %s2933_s13  ;;  %v477_v32 = vmul.f32 %v476_v28, %v473_v50  ;;  %v488_v52 = vmul.f32 0.5, %v2899_v29  ;;  %v588_v23 = vstv %s2937_s15  ;;  %s3052_s8 = sld [smem:[#allocation10 + $0x28]] }
  0xc5   :  { %1989 = verf.f32 %v549_v41  ;;  %v1982_v58 = vpop.eup %1981  ;;  %v465_v39 = vadd.f32 %v464_v35, %v450_v42  ;;  %v503_v36 = vmul.f32 0.5, %v2904_v3  ;;  %v564_v9 = vmul.f32 0.70710677, %v2967_v40  ;;  %s3055_s10 = sld [smem:[#allocation9 + $0x29]] }
  0xc6   :  { %v2979_v47 = vadd.f32 %v576_v27, %v574_v25  ;;  %v479_v50 = vmul.f32 %v478_v51, %v477_v32  ;;  %v491_v38 = vadd.f32 1.0, %v1982_v58  ;;  %v589_v29 = vmul.f32 %v588_v23, %v2544_v37  ;;  %s3059_s4 = sld [smem:[#allocation12 + $0x24]] }
  0xc7   :  { %v1984_v49 = vpop.eup %1983  ;;  %v591_v24 = vstv %s2947_s17  ;;  %v508_v59 = vstv %s2924_s12  ;;  %1991 = verf.f32 %v564_v9  ;;  %v523_v28 = vstv %s2939_s16  ;;  %s3065_s12 = sld [smem:[#allocation10 + $0x29]] }
  0xc8   :  { %v506_v53 = vadd.f32 1.0, %v1984_v49  ;;  %v579_v3 = vmul.f32 0.70710677, %v2979_v47  ;;  %v480_v15 = vadd.f32 %v479_v50, %v465_v39  ;;  %v492_v42 = vmul.f32 %v491_v38, %v488_v52  ;;  %v3002_v52 = vld [vmem:[#allocation3] sm:$0xf]  ;;  %s3069_s13 = sld [smem:[#allocation9 + $0x2a]] }
  0xc9   :  { %v2992_v51 = vadd.f32 %v591_v24, %v589_v29  ;;  %v603_v41 = vstv %s2957_s5  ;;  %v606_v35 = vstv %s2961_s26  ;;  %v518_v27 = vmul.f32 0.5, %v2926_v48  ;;  %s3073_s15 = sld [smem:[#allocation10 + $0x2a]] }
  0xca   :  { %v507_v37 = vmul.f32 %v506_v53, %v503_v36  ;;  %1993 = verf.f32 %v579_v3  ;;  %v494_v25 = vmul.f32 %v493_v44, %v492_v42  ;;  %v604_v23 = vmul.f32 %v3002_v52, %v603_v41  ;;  %s3076_s16 = sld [smem:[#allocation12 + $0x25]] }
  0xcb   :  { %v594_v32 = vmul.f32 0.70710677, %v2992_v51  ;;  %v538_v9 = vstv %s2950_s18  ;;  %v618_v36 = vstv %s2965_s29  ;;  %v621_v49 = vstv %s2971_s9  ;;  %s3082_s17 = sld [smem:[#allocation9 + $0x2b]] }
  0xcc   :  { %v1986_v58 = vpop.eup %1985  ;;  %v509_v39 = vmul.f32 %v508_v59, %v507_v37  ;;  %v495_v50 = vadd.f32 %v494_v25, %v480_v15  ;;  %v3010_v48 = vadd.f32 %v606_v35, %v604_v23  ;;  %v533_v38 = vmul.f32 0.5, %v2941_v54  ;;  %s3087_s18 = sld [smem:[#allocation10 + $0x2b]] }
  0xcd   :  { %v521_v44 = vadd.f32 1.0, %v1986_v58  ;;  %1995 = verf.f32 %v594_v32  ;;  %v553_v29 = vstv %s2974_s11  ;;  %v619_v24 = vmul.f32 %v3002_v52, %v618_v36  ;;  %s3090_s5 = sld [smem:[#allocation12 + $0x26]] }
  0xce   :  { %v633_v53 = vstv %s2981_s19  ;;  %v1988_v59 = vpop.eup %1987  ;;  %v510_v3 = vadd.f32 %v509_v39, %v495_v50  ;;  %v609_v15 = vmul.f32 0.70710677, %v3010_v48  ;;  %v636_v37 = vstv %s2985_s0  ;;  %s3096_s26 = sld [smem:[#allocation9 + $0x2c]] }
  0xcf   :  { %v522_v42 = vmul.f32 %v521_v44, %v518_v27  ;;  %v536_v41 = vadd.f32 1.0, %v1988_v59  ;;  %v568_v35 = vstv %s2988_s3  ;;  %v3025_v25 = vadd.f32 %v621_v49, %v619_v24  ;;  %s3100_s29 = sld [smem:[#allocation12 + $0x27]] }
  0xd0   :  { %v634_v54 = vmul.f32 %v3002_v52, %v633_v53  ;;  %v548_v23 = vmul.f32 0.5, %v2953_v33  ;;  %1997 = verf.f32 %v609_v15  ;;  %v648_v58 = vstv %s2994_s14  ;;  %s3107_s9 = sld [smem:[#allocation10 + $0x2c]] }
  0xd1   :  { %v524_v32 = vmul.f32 %v523_v28, %v522_v42  ;;  %v537_v39 = vmul.f32 %v536_v41, %v533_v38  ;;  %v624_v36 = vmul.f32 0.70710677, %v3025_v25  ;;  %v651_v50 = vstv %s2998_s20  ;;  %s3111_s11 = sld [smem:[#allocation9 + $0x2d]] }
  0xd2   :  { %v1990_v27 = vpop.eup %1989  ;;  %v3037_v49 = vadd.f32 %v636_v37, %v634_v54  ;;  %v563_v28 = vmul.f32 0.5, %v2967_v40  ;;  %v649_v33 = vmul.f32 %v3002_v52, %v648_v58  ;;  %v578_v38 = vmul.f32 0.5, %v2979_v47  ;;  %s3116_s19 = sld [smem:[#allocation10 + $0x2d]] }
  0xd3   :  { %v525_v44 = vadd.f32 %v524_v32, %v510_v3  ;;  %v551_v24 = vadd.f32 1.0, %v1990_v27  ;;  %v539_v53 = vmul.f32 %v538_v9, %v537_v39  ;;  %1999 = verf.f32 %v624_v36  ;;  %s3118_s0 = sld [smem:[#allocation12 + $0x28]] }
  0xd4   :  { %v639_v59 = vmul.f32 0.70710677, %v3037_v49  ;;  %v1992_v42 = vpop.eup %1991  ;;  %v3048_v37 = vadd.f32 %v651_v50, %v649_v33  ;;  %v663_v3 = vstv %s3008_s21  ;;  %v666_v41 = vstv %s3012_s22  ;;  %s3125_s3 = sld [smem:[#allocation9 + $0x2e]] }
  0xd5   :  { %v552_v15 = vmul.f32 %v551_v24, %v548_v23  ;;  %v540_v40 = vadd.f32 %v539_v53, %v525_v44  ;;  %v566_v54 = vadd.f32 1.0, %v1992_v42  ;;  %v664_v47 = vmul.f32 %v3002_v52, %v663_v3  ;;  %s3129_s14 = sld [smem:[#allocation10 + $0x2e]] }
  0xd6   :  { %2001 = verf.f32 %v639_v59  ;;  %v583_v58 = vstv %s3016_s23  ;;  %v593_v23 = vmul.f32 0.5, %v2992_v51  ;;  %v654_v27 = vmul.f32 0.70710677, %v3048_v37  ;;  %s3135_s20 = sld [smem:[#allocation9 + $0x2f]] }
  0xd7   :  { %v1994_v9 = vpop.eup %1993  ;;  %v554_v32 = vmul.f32 %v553_v29, %v552_v15  ;;  %v567_v39 = vmul.f32 %v566_v54, %v563_v28  ;;  %v3062_v50 = vadd.f32 %v666_v41, %v664_v47  ;;  %v678_v44 = vstv %s3028_s24  ;;  %s3137_s21 = sld [smem:[#allocation12 + $0x29]] }
  0xd8   :  { %v581_v36 = vadd.f32 1.0, %v1994_v9  ;;  %2003 = verf.f32 %v654_v27  ;;  %v679_v29 = vmul.f32 %v3002_v52, %v678_v44  ;;  %v681_v33 = vstv %s3032_s25  ;;  %s3143_s22 = sld [smem:[#allocation10 + $0x2f]] }
  0xd9   :  { %v555_v24 = vadd.f32 %v554_v32, %v540_v40  ;;  %v569_v53 = vmul.f32 %v568_v35, %v567_v39  ;;  %v598_v42 = vstv %s3020_s1  ;;  %v669_v28 = vmul.f32 0.70710677, %v3062_v50  ;;  %s3148_s23 = sld [smem:[#allocation9 + $0x30]] }
  0xda   :  { %v1996_v51 = vpop.eup %1995  ;;  %v582_v59 = vmul.f32 %v581_v36, %v578_v38  ;;  %v613_v3 = vstv %s3034_s27  ;;  %v3078_v41 = vadd.f32 %v681_v33, %v679_v29  ;;  %v693_v40 = vstv %s3042_s28  ;;  %s3150_s1 = sld [smem:[#allocation12 + $0x2a]] }
  0xdb   :  { %v596_v15 = vadd.f32 1.0, %v1996_v51  ;;  %v570_v54 = vadd.f32 %v569_v53, %v555_v24  ;;  %2005 = verf.f32 %v669_v28  ;;  %v694_v35 = vmul.f32 %v3002_v52, %v693_v40  ;;  %s3157_s24 = sld [smem:[#allocation10 + $0x30]] }
  0xdc   :  { %v584_v47 = vmul.f32 %v583_v58, %v582_v59  ;;  %v608_v9 = vmul.f32 0.5, %v3010_v48  ;;  %v684_v32 = vmul.f32 0.70710677, %v3078_v41  ;;  %v696_v27 = vstv %s3052_s8  ;;  %s3161_s25 = sld [smem:[#allocation9 + $0x31]] }
  0xdd   :  { %v597_v38 = vmul.f32 %v596_v15, %v593_v23  ;;  %v1998_v39 = vpop.eup %1997  ;;  %v628_v44 = vstv %s3045_s30  ;;  %v3092_v58 = vadd.f32 %v696_v27, %v694_v35  ;;  %v708_v24 = vstv %s3055_s10  ;;  %s3169_s27 = sld [smem:[#allocation10 + $0x31]] }
  0xde   :  { %v585_v36 = vadd.f32 %v584_v47, %v570_v54  ;;  %v611_v33 = vadd.f32 1.0, %v1998_v39  ;;  %2007 = verf.f32 %v684_v32  ;;  %v709_v48 = vmul.f32 %v3002_v52, %v708_v24  ;;  %s3176_s28 = sld [smem:[#allocation12 + $0x2b]] }
  0xdf   :  { %v599_v29 = vmul.f32 %v598_v42, %v597_v38  ;;  %v623_v23 = vmul.f32 0.5, %v3025_v25  ;;  %v638_v51 = vmul.f32 0.5, %v3037_v49  ;;  %v699_v53 = vmul.f32 0.70710677, %v3092_v58  ;;  %s3183_s30 = sld [smem:[#allocation12 + $0x2c]] }
  0xe0   :  { %v711_v59 = vstv %s3065_s12  ;;  %v2000_v28 = vpop.eup %1999  ;;  %v612_v42 = vmul.f32 %v611_v33, %v608_v9  ;;  %v723_v54 = vstv %s3069_s13  ;;  %v726_v49 = vstv %s3073_s15  ;;  %s1905_s8 = sld [smem:[#allocation12 + $0x2d]] }
  0xe1   :  { %v600_v15 = vadd.f32 %v599_v29, %v585_v36  ;;  %v3104_v40 = vadd.f32 %v711_v59, %v709_v48  ;;  %v626_v47 = vadd.f32 1.0, %v2000_v28  ;;  %2009 = verf.f32 %v699_v53  ;;  %s1908_s10 = sld [smem:[#allocation12 + $0x2e]] }
  0xe2   :  { %v724_v25 = vmul.f32 %v3002_v52, %v723_v54  ;;  %v614_v38 = vmul.f32 %v613_v3, %v612_v42  ;;  %v643_v32 = vstv %s3059_s4  ;;  %v653_v27 = vmul.f32 0.5, %v3048_v37  ;;  %s1911_s4 = sld [smem:[#allocation12 + $0x2f]] }
  0xe3   :  { %v2002_v35 = vpop.eup %2001  ;;  %v714_v9 = vmul.f32 0.70710677, %v3104_v40  ;;  %v627_v39 = vmul.f32 %v626_v47, %v623_v23  ;;  %v738_v29 = vstv %s3082_s17  ;;  %v741_v48 = vstv %s3087_s18  ;;  %s1914_s12 = sld [smem:[#allocation12 + $0x30]] }
  0xe4   :  { %v641_v36 = vadd.f32 1.0, %v2002_v35  ;;  %v3120_v24 = vadd.f32 %v726_v49, %v724_v25  ;;  %v615_v33 = vadd.f32 %v614_v38, %v600_v15  ;;  %v739_v3 = vmul.f32 %v3002_v52, %v738_v29  ;;  %s1917_s13 = sld [smem:[#allocation12 + $0x31]] }
  0xe5   :  { %2011 = verf.f32 %v714_v9  ;;  %v2004_v37 = vpop.eup %2003  ;;  %v629_v53 = vmul.f32 %v628_v44, %v627_v39  ;;  %v658_v28 = vstv %s3076_s16  ;;  %v668_v54 = vmul.f32 0.5, %v3062_v50 }
  0xe6   :  { %v642_v59 = vmul.f32 %v641_v36, %v638_v51  ;;  %v729_v23 = vmul.f32 0.70710677, %v3120_v24  ;;  %v656_v42 = vadd.f32 1.0, %v2004_v37  ;;  %v3132_v15 = vadd.f32 %v741_v48, %v739_v3 }
  0xe7   :  { %v753_v47 = vstv %s3096_s26  ;;  %v630_v25 = vadd.f32 %v629_v53, %v615_v33  ;;  %v673_v38 = vstv %s3090_s5  ;;  %v756_v9 = vstv %s3107_s9 }
  0xe8   :  { %v644_v49 = vmul.f32 %v643_v32, %v642_v59  ;;  %2013 = verf.f32 %v729_v23  ;;  %v754_v44 = vmul.f32 %v3002_v52, %v753_v47  ;;  %v2006_v51 = vpop.eup %2005  ;;  %v657_v35 = vmul.f32 %v656_v42, %v653_v27 }
  0xe9   :  { %v744_v50 = vmul.f32 0.70710677, %v3132_v15  ;;  %v671_v36 = vadd.f32 1.0, %v2006_v51  ;;  %v683_v32 = vmul.f32 0.5, %v3078_v41  ;;  %v768_v27 = vstv %s3111_s11 }
  0xea   :  { %v645_v39 = vadd.f32 %v644_v49, %v630_v25  ;;  %v3146_v29 = vadd.f32 %v756_v9, %v754_v44  ;;  %v659_v33 = vmul.f32 %v658_v28, %v657_v35  ;;  %v771_v3 = vstv %s3116_s19 }
  0xeb   :  { %2015 = verf.f32 %v744_v50  ;;  %v2008_v48 = vpop.eup %2007  ;;  %v672_v37 = vmul.f32 %v671_v36, %v668_v54  ;;  %v688_v53 = vstv %s3100_s29  ;;  %v769_v41 = vmul.f32 %v3002_v52, %v768_v27 }
  0xec   :  { %v759_v59 = vmul.f32 0.70710677, %v3146_v29  ;;  %v660_v23 = vadd.f32 %v659_v33, %v645_v39  ;;  %v686_v42 = vadd.f32 1.0, %v2008_v48  ;;  %v698_v28 = vmul.f32 0.5, %v3092_v58 }
  0xed   :  { %v783_v47 = vstv %s3125_s3  ;;  %v674_v25 = vmul.f32 %v673_v38, %v672_v37  ;;  %v3163_v54 = vadd.f32 %v771_v3, %v769_v41  ;;  %v703_v35 = vstv %s3118_s0 }
  0xee   :  { %2017 = verf.f32 %v759_v59  ;;  %v784_v49 = vmul.f32 %v3002_v52, %v783_v47  ;;  %v2010_v44 = vpop.eup %2009  ;;  %v687_v51 = vmul.f32 %v686_v42, %v683_v32  ;;  %v786_v50 = vstv %s3129_s14 }
  0xef   :  { %v798_v9 = vstv %s3135_s20  ;;  %v675_v58 = vadd.f32 %v674_v25, %v660_v23  ;;  %v701_v39 = vadd.f32 1.0, %v2010_v44  ;;  %v713_v36 = vmul.f32 0.5, %v3104_v40 }
  0xf0   :  { %v774_v38 = vmul.f32 0.70710677, %v3163_v54  ;;  %v689_v33 = vmul.f32 %v688_v53, %v687_v51  ;;  %v787_v27 = vadd.f32 %v786_v50, %v784_v49  ;;  %v799_v3 = vmul.f32 %v3002_v52, %v798_v9 }
  0xf1   :  { %v801_v48 = vstv %s3143_s22  ;;  %v702_v32 = vmul.f32 %v701_v39, %v698_v28  ;;  %v718_v59 = vstv %s3137_s21  ;;  %v813_v41 = vstv %s3148_s23 }
  0xf2   :  { %v2012_v37 = vpop.eup %2011  ;;  %2019 = verf.f32 %v774_v38  ;;  %v690_v23 = vadd.f32 %v689_v33, %v675_v58  ;;  %v728_v40 = vmul.f32 0.5, %v3120_v24  ;;  %v789_v47 = vmul.f32 0.70710677, %v787_v27 }
  0xf3   :  { %v716_v42 = vadd.f32 1.0, %v2012_v37  ;;  %v704_v53 = vmul.f32 %v703_v35, %v702_v32  ;;  %v802_v25 = vadd.f32 %v801_v48, %v799_v3  ;;  %v814_v49 = vmul.f32 %v3002_v52, %v813_v41 }
  0xf4   :  { %v816_v44 = vstv %s3157_s24  ;;  %v733_v28 = vstv %s3150_s1  ;;  %2021 = verf.f32 %v789_v47  ;;  %v828_v9 = vstv %s3161_s25 }
  0xf5   :  { %v2014_v51 = vpop.eup %2013  ;;  %v717_v50 = vmul.f32 %v716_v42, %v713_v36  ;;  %v705_v39 = vadd.f32 %v704_v53, %v690_v23  ;;  %v743_v38 = vmul.f32 0.5, %v3132_v15  ;;  %v804_v24 = vmul.f32 0.70710677, %v802_v25 }
  0xf6   :  { %v731_v58 = vadd.f32 1.0, %v2014_v51  ;;  %v817_v35 = vadd.f32 %v816_v44, %v814_v49  ;;  %v829_v3 = vmul.f32 %v3002_v52, %v828_v9  ;;  %v831_v48 = vstv %s3169_s27 }
  0xf7   :  { %v719_v33 = vmul.f32 %v718_v59, %v717_v50  ;;  %2023 = verf.f32 %v804_v24  ;;  %v748_v23 = vstv %s3176_s28  ;;  %v758_v53 = vmul.f32 0.5, %v3146_v29 }
  0xf8   :  { %v2016_v37 = vpop.eup %2015  ;;  %v732_v32 = vmul.f32 %v731_v58, %v728_v40  ;;  %v819_v42 = vmul.f32 0.70710677, %v817_v35  ;;  %v832_v51 = vadd.f32 %v831_v48, %v829_v3  ;;  %v763_v40 = vstv %s3183_s30 }
  0xf9   :  { %v720_v36 = vadd.f32 %v719_v33, %v705_v39  ;;  %v746_v41 = vadd.f32 1.0, %v2016_v37  ;;  %v773_v39 = vmul.f32 0.5, %v3163_v54  ;;  %v778_v29 = vstv %s1905_s8 }
  0xfa   :  { %v734_v47 = vmul.f32 %v733_v28, %v732_v32  ;;  %2025 = verf.f32 %v819_v42  ;;  %v834_v44 = vmul.f32 0.70710677, %v832_v51  ;;  %v788_v3 = vmul.f32 0.5, %v787_v27 }
  0xfb   :  { %v2018_v15 = vpop.eup %2017  ;;  %v747_v34 = vmul.f32 %v746_v41, %v743_v38  ;;  %v793_v41 = vstv %s1908_s10  ;;  %vm849_vm0 = vcmp.eq.f32.partialorder %v3002_v52, 0.0 }
  0xfc   :  { %v735_v59 = vadd.f32 %v734_v47, %v720_v36  ;;  %v761_v49 = vadd.f32 1.0, %v2018_v15  ;;  %2027 = verf.f32 %v834_v44  ;;  %v808_v15 = vstv %s1911_s4 }
  0xfd   :  { %v749_v50 = vmul.f32 %v748_v23, %v747_v34  ;;  %v803_v34 = vmul.f32 0.5, %v802_v25 }
  0xfe   :  { %v762_v9 = vmul.f32 %v761_v49, %v758_v53 }
  0xff   :  { %v2020_v58 = vpop.eup %2019  ;;  %v750_v24 = vadd.f32 %v749_v50, %v735_v59  ;;  %v818_v59 = vmul.f32 0.5, %v817_v35  ;;  %v842_v35 = vstv %s3382_s6 }
 0x100   :  { %v764_v28 = vmul.f32 %v763_v40, %v762_v9  ;;  %v776_v33 = vadd.f32 1.0, %v2020_v58  ;;  %v823_v9 = vstv %s1914_s12 }
 0x101   :  { %v2022_v48 = vpop.eup %2021 }
 0x102   :  { %v765_v38 = vadd.f32 %v764_v28, %v750_v24  ;;  %v777_v37 = vmul.f32 %v776_v33, %v773_v39  ;;  %v791_v32 = vadd.f32 1.0, %v2022_v48  ;;  %v833_v39 = vmul.f32 0.5, %v832_v51 }
 0x104   :  { %v779_v36 = vmul.f32 %v778_v29, %v777_v37  ;;  %v2024_v42 = vpop.eup %2023  ;;  %v792_v47 = vmul.f32 %v791_v32, %v788_v3  ;;  %v838_v29 = vstv %s1917_s13 }
 0x105   :  { %v806_v23 = vadd.f32 1.0, %v2024_v42 }
 0x106   :  { %v780_v54 = vadd.f32 %v779_v36, %v765_v38  ;;  %v794_v53 = vmul.f32 %v793_v41, %v792_v47 }
 0x107   :  { %v2026_v49 = vpop.eup %2025  ;;  %v807_v44 = vmul.f32 %v806_v23, %v803_v34 }
 0x108   :  { %v795_v50 = vadd.f32 %v794_v53, %v780_v54  ;;  %v821_v27 = vadd.f32 1.0, %v2026_v49  ;;  %v3522_v53 = vmov 0.0   ;;  %v3523_v49 = vld [vmem:[#allocation23_spill] sm:$0xff] }
 0x109   :  { %v809_v40 = vmul.f32 %v808_v15, %v807_v44  ;;  %v2028_v58 = vpop.eup %2027  ;;  %v3524_v44 = vld [vmem:[#allocation21_spill] sm:$0xff] }
 0x10a   :  { %v822_v24 = vmul.f32 %v821_v27, %v818_v59  ;;  %v836_v33 = vadd.f32 1.0, %v2028_v58  ;;  %v3526_v27 = vld [vmem:[#allocation22_spill] sm:$0xff]  ;;  %v3530_v58 = vld [vmem:[#allocation25_spill] sm:$0xff] }
 0x10b   :  { %v810_v28 = vadd.f32 %v809_v40, %v795_v50  ;;  %v3525_v50 = vld [vmem:[#allocation27_spill] sm:$0xff] }
 0x10c   :  { %v824_v25 = vmul.f32 %v823_v9, %v822_v24  ;;  %v837_v3 = vmul.f32 %v836_v33, %v833_v39  ;;  %v3527_v40 = vld [vmem:[#allocation31_spill] sm:$0xff]  ;;  %v3528_v9 = vld [vmem:[#allocation24_spill] sm:$0xff]  ;;  %v3529_v39 = vld [vmem:[#allocation34_spill] sm:$0xff] }
 0x10d   :  { %v3531_v24 = vld [vmem:[#allocation35_spill] sm:$0xff]  ;;  %v3533_v33 = vld [vmem:[#allocation36_spill] sm:$0xff] }
 0x10e   :  { %v825_v48 = vadd.f32 %v824_v25, %v810_v28  ;;  %v839_v38 = vmul.f32 %v838_v29, %v837_v3  ;;  %v3532_v28 = vld [vmem:[#allocation26_spill] sm:$0xff]  ;;  %v3534_v25 = vld [vmem:[#allocation28_spill] sm:$0xff]  ;;  %v3535_v29 = vld [vmem:[#allocation37_spill] sm:$0xff] }
 0x10f   :  { %v3536_v3 = vld [vmem:[#allocation29_spill] sm:$0xff] }
 0x110   :  { %v840_v37 = vadd.f32 %v839_v38, %v825_v48  ;;  %v3537_v48 = vld [vmem:[#allocation38_spill] sm:$0xff] }
 0x111   :  { %v3538_v38 = vld [vmem:[#allocation30_spill] sm:$0xff] }
 0x112   :  { %v843_v32 = vadd.f32 %v842_v35, %v840_v37  ;;  %v3539_v35 = vld [vmem:[#allocation39_spill] sm:$0xff]  ;;  %v3540_v37 = vld [vmem:[#allocation32_spill] sm:$0xff] }
 0x114   :  { %v845_v36 = vmul.f32 0.70710677, %v843_v32  ;;  %v844_v41 = vmul.f32 0.5, %v843_v32  ;;  %v3541_v32 = vld [vmem:[#allocation43_spill] sm:$0xff] }
 0x116   :  { %2029 = verf.f32 %v845_v36  ;;  %v3542_v36 = vld [vmem:[#allocation33_spill] sm:$0xff] }
 0x123   :  { %v2030_v34 = vpop.eup %2029 }
 0x124   :  { %v847_v51 = vadd.f32 1.0, %v2030_v34  ;;  %v3544_v34 = vld [vmem:[#allocation47_spill] sm:$0xff] }
 0x126   :  { %v848_v42 = vmul.f32 %v847_v51, %v844_v41  ;;  %v3543_v41 = vld [vmem:[#allocation40_spill] sm:$0xff]  ;;  %v3545_v51 = vld [vmem:[#allocation41_spill] sm:$0xff] }
 0x128   :  { %v850_v47 = vsel %vm849_vm0, 0.0, %v848_v42  ;;  %v3546_v42 = vld [vmem:[#allocation19_spill] sm:$0xff] }
 0x129   :  { %v3197_v54 = vand.u32 4294901760, %v850_v47 }
 0x12b   :  { %3521 = vst [vmem:[#allocation50_spill] sm:$0xff] %v3197_v54  ;;  %v3200_v23 = vsub.f32 %v850_v47, %v3197_v54  ;;  %1229 = vmatmul.mubr.f32.vlgmr.msra.gmra.mxu1 %v3197_v54  ;;  %v3547_v47 = vld [vmem:[#allocation42_spill] sm:$0xff] }
 0x12c   :  { %1375 = vmatpush1.msra.mxu1 %v2204_v4  ;;  %1468 = vmatprep.mubr.f32.mxu1 %v3522_v53  ;;  %v3550_v54 = vld [vmem:[#allocation46_spill] sm:$0xff] }
 0x12d   :  { %v994_v15 = vand.u32 4294901760, %v3200_v23  ;;  %1377 = vmatprep.subr.mxu1 %v2206_v5 }
 0x12e   :  { %1379 = vmatpush1.msra.mxu1 %v2210_v10 }
 0x12f   :  { %v995_v52 = vsub.f32 %v3200_v23, %v994_v15  ;;  %1381 = vmatprep.subr.mxu1 %v2212_v11 }
 0x130   :  { %1383 = vmatpush1.msra.mxu1 %v2214_v12 }
 0x131   :  { %v996_v59 = vand.u32 4294901760, %v995_v52  ;;  %1385 = vmatprep.subr.mxu1 %v2226_v18  ;;  %v3548_v52 = vld [vmem:[#allocation44_spill] sm:$0xff] }
 0x132   :  { %1387 = vmatpush1.msra.mxu1 %v2238_v22 }
 0x133   :  { %997 = vmatmul.mubr.f32.vlgmr.msra.gmra.mxu0 %v996_v59  ;;  %1389 = vmatprep.subr.mxu1 %v2284_v55  ;;  %v3549_v59 = vld [vmem:[#allocation45_spill] sm:$0xff] }
 0x134   :  { %1240 = vmatpush1.msra.mxu0 %v2221_v16  ;;  %1391 = vmatpush1.msra.mxu1 %v2286_v56 }
 0x135   :  { %1243 = vmatprep.subr.mxu0 %v2224_v17  ;;  %1393 = vmatprep.subr.mxu1 %v2288_v57 }
 0x136   :  { %1246 = vmatpush1.msra.mxu0 %v2230_v19  ;;  %1395 = vmatpush1.msra.mxu1 %v2290_v60 }
 0x137   :  { %1249 = vmatprep.subr.mxu0 %v2233_v20  ;;  %1397 = vmatprep.subr.mxu1 %v2292_v61 }
 0x138   :  { %1252 = vmatpush1.msra.mxu0 %v2236_v21  ;;  %1399 = vmatpush1.msra.mxu1 %v2294_v62 }
 0x139   :  { %1255 = vmatprep.subr.mxu0 %v2245_v26  ;;  %1401 = vmatprep.subr.mxu1 %v2306_v2 }
 0x13a   :  { %1258 = vmatpush1.msra.mxu0 %v2252_v30  ;;  %1403 = vmatpush1.msra.mxu1 %v2318_v13 }
 0x13b   :  { %1261 = vmatprep.subr.mxu0 %v2298_v63  ;;  %1405 = vmatprep.subr.mxu1 %v2364_v31 }
 0x13c   :  { %1264 = vmatpush1.msra.mxu0 %v2301_v0  ;;  %1407 = vmatpush1.msra.mxu1 %v2366_v14 }
 0x13d   :  { %1267 = vmatprep.subr.mxu0 %v2304_v1  ;;  %1409 = vmatprep.subr.mxu1 %v2368_v43 }
 0x13e   :  { %1270 = vmatpush1.msra.mxu0 %v2310_v6  ;;  %1411 = vmatpush1.msra.mxu1 %v2370_v45 }
 0x13f   :  { %1273 = vmatprep.subr.mxu0 %v2313_v7  ;;  %1413 = vmatprep.subr.mxu1 %v2372_v46 }
 0x140   :  { %1276 = vmatpush1.msra.mxu0 %v2316_v8  ;;  %1415 = vmatpush1.msra.mxu1 %v3523_v49 }
 0x141   :  { %1279 = vmatprep.subr.mxu0 %v3524_v44  ;;  %1417 = vmatprep.subr.mxu1 %v3525_v50 }
 0x142   :  { %1282 = vmatpush1.msra.mxu0 %v3526_v27  ;;  %1419 = vmatpush1.msra.mxu1 %v3527_v40 }
 0x143   :  { %1285 = vmatprep.subr.mxu0 %v3528_v9  ;;  %1421 = vmatprep.subr.mxu1 %v3529_v39 }
 0x144   :  { %1288 = vmatpush1.msra.mxu0 %v3530_v58  ;;  %1423 = vmatpush1.msra.mxu1 %v3531_v24 }
 0x145   :  { %1291 = vmatprep.subr.mxu0 %v3532_v28  ;;  %1425 = vmatprep.subr.mxu1 %v3533_v33 }
 0x146   :  { %1294 = vmatpush1.msra.mxu0 %v3534_v25  ;;  %1427 = vmatpush1.msra.mxu1 %v3535_v29 }
 0x147   :  { %1297 = vmatprep.subr.mxu0 %v3536_v3  ;;  %1429 = vmatprep.subr.mxu1 %v3537_v48 }
 0x148   :  { %1300 = vmatpush1.msra.mxu0 %v3538_v38  ;;  %1431 = vmatpush1.msra.mxu1 %v3539_v35 }
 0x149   :  { %1303 = vmatprep.subr.mxu0 %v3540_v37  ;;  %1433 = vmatprep.subr.mxu1 %v3541_v32 }
 0x14a   :  { %1306 = vmatpush1.msra.mxu0 %v3542_v36  ;;  %1363 = vmatprep.mubr.f32.mxu0 %v3522_v53 }
 0x14b   :  { %1309 = vmatprep.subr.mxu0 %v3543_v41  ;;  %1435 = vmatpush1.msra.mxu1 %v3544_v34  ;;  %v3551_v34 = vld [vmem:[#allocation48_spill] sm:$0xff] }
 0x14c   :  { %1312 = vmatpush1.msra.mxu0 %v3545_v51  ;;  %1647 = vmatprep.subr.mxu1 %v3546_v42  ;;  %v3552_v42 = vld [vmem:[#allocation49_spill] sm:$0xff] }
 0x14d   :  { %1315 = vmatprep.subr.mxu0 %v3547_v47  ;;  %1472 = vmatmul.mubr.f32.vlgmr.msra.gmra.mxu1 %v994_v15  ;;  %v3553_v15 = vld [vmem:[#allocation20_spill] sm:$0xff] }
 0x14e   :  { %1318 = vmatpush1.msra.mxu0 %v3548_v52  ;;  %1649 = vmatpush1.msra.mxu1 %v2204_v4  ;;  %v3554_v4 = vand.u32 4294901760, %v3553_v15 }
 0x14f   :  { %1321 = vmatprep.subr.mxu0 %v3549_v59  ;;  %1651 = vmatprep.subr.mxu1 %v2206_v5  ;;  %v3555_v59 = vand.u32 4294901760, %v2221_v16  ;;  %v3556_v5 = vand.u32 4294901760, %v2224_v17  ;;  %v3560_v16 = vand.u32 4294901760, %v2245_v26  ;;  %v3561_v17 = vand.u32 4294901760, %v2252_v30 }
 0x150   :  { %1324 = vmatpush1.msra.mxu0 %v3550_v54  ;;  %1653 = vmatpush1.msra.mxu1 %v2210_v10  ;;  %v3557_v10 = vand.u32 4294901760, %v2230_v19  ;;  %v3563_v19 = vand.u32 4294901760, %v2301_v0  ;;  %v3567_v26 = vand.u32 4294901760, %v2316_v8  ;;  %v3568_v30 = vand.u32 4294901760, %v3524_v44 }
 0x151   :  { %1327 = vmatprep.subr.mxu0 %v3551_v34  ;;  %1655 = vmatprep.subr.mxu1 %v2212_v11  ;;  %v3558_v11 = vand.u32 4294901760, %v2233_v20  ;;  %v3564_v20 = vand.u32 4294901760, %v2304_v1  ;;  %v3576_v0 = vand.u32 4294901760, %v3540_v37  ;;  %v3577_v1 = vand.u32 4294901760, %v3542_v36 }
 0x152   :  { %1330 = vmatpush1.msra.mxu0 %v3552_v42  ;;  %1657 = vmatpush1.msra.mxu1 %v2214_v12  ;;  %v3559_v12 = vand.u32 4294901760, %v2236_v21  ;;  %v3565_v21 = vand.u32 4294901760, %v2310_v6  ;;  %v3579_v6 = vand.u32 4294901760, %v3545_v51  ;;  %v3581_v8 = vand.u32 4294901760, %v3548_v52 }
 0x153   :  { %1366 = vmatmul.mubr.f32.vlgmr.msra.gmra.mxu0 %v3200_v23  ;;  %1481 = vmatprep.subr.mxu0 %v3554_v4  ;;  %v3588_v23 = vand.u32 4294901760, %v3552_v42 }
 0x154   :  { %1485 = vmatpush1.msra.mxu0 %v3555_v59  ;;  %1659 = vmatprep.subr.mxu1 %v2226_v18  ;;  %v3562_v18 = vand.u32 4294901760, %v2298_v63  ;;  %v3575_v63 = vand.u32 4294901760, %v3538_v38 }
 0x155   :  { %1489 = vmatprep.subr.mxu0 %v3556_v5  ;;  %1661 = vmatpush1.msra.mxu1 %v2238_v22  ;;  %v3566_v22 = vand.u32 4294901760, %v2313_v7  ;;  %v3580_v7 = vand.u32 4294901760, %v3547_v47 }
 0x156   :  { %1493 = vmatpush1.msra.mxu0 %v3557_v10  ;;  %1663 = vmatprep.subr.mxu1 %v2284_v55  ;;  %v3569_v55 = vand.u32 4294901760, %v3526_v27 }
 0x157   :  { %1497 = vmatprep.subr.mxu0 %v3558_v11  ;;  %1665 = vmatpush1.msra.mxu1 %v2286_v56  ;;  %v3570_v56 = vand.u32 4294901760, %v3528_v9 }
 0x158   :  { %1501 = vmatpush1.msra.mxu0 %v3559_v12  ;;  %1667 = vmatprep.subr.mxu1 %v2288_v57  ;;  %v3571_v57 = vand.u32 4294901760, %v3530_v58 }
 0x159   :  { %1505 = vmatprep.subr.mxu0 %v3560_v16  ;;  %1669 = vmatpush1.msra.mxu1 %v2290_v60  ;;  %v3572_v60 = vand.u32 4294901760, %v3532_v28 }
 0x15a   :  { %1509 = vmatpush1.msra.mxu0 %v3561_v17  ;;  %1671 = vmatprep.subr.mxu1 %v2292_v61  ;;  %v3573_v61 = vand.u32 4294901760, %v3534_v25 }
 0x15b   :  { %1513 = vmatprep.subr.mxu0 %v3562_v18  ;;  %1673 = vmatpush1.msra.mxu1 %v2294_v62  ;;  %v3574_v62 = vand.u32 4294901760, %v3536_v3 }
 0x15c   :  { %1517 = vmatpush1.msra.mxu0 %v3563_v19  ;;  %1675 = vmatprep.subr.mxu1 %v2306_v2  ;;  %v3578_v2 = vand.u32 4294901760, %v3543_v41 }
 0x15d   :  { %1521 = vmatprep.subr.mxu0 %v3564_v20  ;;  %1677 = vmatpush1.msra.mxu1 %v2318_v13  ;;  %v3582_v13 = vld [vmem:[#allocation47_spill] sm:$0xff] }
 0x15e   :  { %1525 = vmatpush1.msra.mxu0 %v3565_v21  ;;  %1679 = vmatprep.subr.mxu1 %v2364_v31 }
 0x15f   :  { %1529 = vmatprep.subr.mxu0 %v3566_v22  ;;  %1681 = vmatpush1.msra.mxu1 %v2366_v14  ;;  %v3583_v14 = vld [vmem:[#allocation45_spill] sm:$0xff] }
 0x160   :  { %1533 = vmatpush1.msra.mxu0 %v3567_v26  ;;  %1683 = vmatprep.subr.mxu1 %v2368_v43  ;;  %v3584_v31 = vand.u32 4294901760, %v3583_v14  ;;  %v3585_v43 = vand.u32 4294901760, %v3550_v54 }
 0x161   :  { %1537 = vmatprep.subr.mxu0 %v3568_v30  ;;  %1685 = vmatpush1.msra.mxu1 %v2370_v45  ;;  %v3586_v45 = vld [vmem:[#allocation50_spill] sm:$0xff] }
 0x162   :  { %1541 = vmatpush1.msra.mxu0 %v3569_v55  ;;  %1687 = vmatprep.subr.mxu1 %v2372_v46  ;;  %v3587_v46 = vand.u32 4294901760, %v3551_v34 }
 0x163   :  { %1545 = vmatprep.subr.mxu0 %v3570_v56  ;;  %1689 = vmatpush1.msra.mxu1 %v3523_v49  ;;  %v885_v49 = vlaneseq }
 0x164   :  { %1549 = vmatpush1.msra.mxu0 %v3571_v57  ;;  %1691 = vmatprep.subr.mxu1 %v3525_v50 }
 0x165   :  { %1553 = vmatprep.subr.mxu0 %v3572_v60  ;;  %1693 = vmatpush1.msra.mxu1 %v3527_v40  ;;  %v886_v44 = vshrl.u32 %v885_v49, 7 }
 0x166   :  { %1557 = vmatpush1.msra.mxu0 %v3573_v61  ;;  %1695 = vmatprep.subr.mxu1 %v3529_v39 }
 0x167   :  { %1561 = vmatprep.subr.mxu0 %v3574_v62  ;;  %1697 = vmatpush1.msra.mxu1 %v3531_v24  ;;  %v887_v50 = vsub.s32 0, %v886_v44  ;;  %v891_v27 = vsub.s32 1, %v886_v44 }
 0x168   :  { %1565 = vmatpush1.msra.mxu0 %v3575_v63  ;;  %1699 = vmatprep.subr.mxu1 %v3533_v33 }
 0x169   :  { %1569 = vmatprep.subr.mxu0 %v3576_v0  ;;  %1701 = vmatpush1.msra.mxu1 %v3535_v29 }
 0x16a   :  { %1573 = vmatpush1.msra.mxu0 %v3577_v1  ;;  %1703 = vmatprep.subr.mxu1 %v3537_v48 }
 0x16b   :  { %1577 = vmatprep.subr.mxu0 %v3578_v2  ;;  %1705 = vmatpush1.msra.mxu1 %v3539_v35 }
 0x16c   :  { %1581 = vmatpush1.msra.mxu0 %v3579_v6  ;;  %1707 = vmatprep.subr.mxu1 %v3541_v32 }
 0x16d   :  { %1585 = vmatprep.subr.mxu0 %v3580_v7  ;;  %1638 = vmatprep.mubr.f32.mxu0 %v3522_v53 }
 0x16e   :  { %1589 = vmatpush1.msra.mxu0 %v3581_v8  ;;  %1709 = vmatpush1.msra.mxu1 %v3582_v13 }
 0x16f   :  { %1593 = vmatprep.subr.mxu0 %v3584_v31  ;;  %1742 = vmatprep.mubr.f32.mxu1 %v3522_v53  ;;  %v883_v53 = vld [vmem:[%s3378_s2] sm:$0x3]  ;;  %s2146_s2 = smov [#allocation13]  }
 0x170   :  { %1597 = vmatpush1.msra.mxu0 %v3585_v43  ;;  %1744 = vmatmul.mubr.f32.vlgmr.msra.gmra.mxu1 %v3586_v45  ;;  %v888_v40 = vrot.slane %v883_v53, %v887_v50  ;;  %v892_v9 = vrot.slane %v883_v53, %v891_v27  ;;  %s1761_s18 = sshll.u32 %s2146_s2, 4  ;;  %s1762_s18 = int_to_ptr.vmem [resolvable:$true] %s1761_s18 }
 0x171   :  { %1601 = vmatprep.subr.mxu0 %v3587_v46  ;;  %s2108_s5 = scalar_lea.vmem %s1762_s18, 128  ;;  %p2113_p12 = scmp.lt.s32.totalorder %s1762_s18, %s1762_s18 }
 0x172   :  { %1605 = vmatpush1.msra.mxu0 %v3588_v23  ;;  %p2109_p11 = scmp.ne.s32.totalorder %s1762_s18, %s2108_s5  ;;  %p2114_p13 = scmp.lt.s32.totalorder %s2108_s5, %s2108_s5 }
 0x173   :  { %1640 = vmatmul.mubr.f32.vlgmr.msra.gmra.mxu0 %v3586_v45 }
 0x174   :  { %p2115_p0 = por %p2114_p13, %p2113_p12 }
 0x176   :  { %p2116_p1 = pnand %p2115_p0, %p2109_p11 }
 0x1eb   :  { %v1230_v39 = vpop.f32.mrf.mxu1 }
 0x1ed   :  { %v1232_v25 = vpop.f32.mrf.mxu1 }
 0x1f3   :  { %v998_v54 = vpop.f32.mrf.mxu0 }
 0x1f4   :  { %v999_v24 = vadd.f32 %v998_v54, %v888_v40 }
 0x1f5   :  { %v1000_v58 = vpop.f32.mrf.mxu0 }
 0x1f6   :  { %v1001_v33 = vadd.f32 %v1000_v58, %v892_v9  ;;  %v1231_v29 = vadd.f32 %v1230_v39, %v999_v24 }
 0x1f8   :  { %v1233_v38 = vadd.f32 %v1232_v25, %v1001_v33 }
 0x20d   :  { %v1473_v3 = vpop.f32.mrf.mxu1 }
 0x20f   :  { %v1475_v32 = vpop.f32.mrf.mxu1 }
 0x213   :  { %v1367_v28 = vpop.f32.mrf.mxu0 }
 0x214   :  { %v1368_v35 = vadd.f32 %v1367_v28, %v1231_v29 }
 0x215   :  { %v1369_v48 = vpop.f32.mrf.mxu0 }
 0x216   :  { %v1370_v37 = vadd.f32 %v1369_v48, %v1233_v38  ;;  %v1474_v36 = vadd.f32 %v1473_v3, %v1368_v35 }
 0x218   :  { %v1476_v51 = vadd.f32 %v1475_v32, %v1370_v37 }
 0x230   :  { %v1745_v34 = vpop.f32.mrf.mxu1 }
 0x232   :  { %v1747_v42 = vpop.f32.mrf.mxu1 }
 0x233   :  { %v1641_v41 = vpop.f32.mrf.mxu0 }
 0x234   :  { %v1642_v47 = vadd.f32 %v1641_v41, %v1474_v36 }
 0x235   :  { %v1643_v52 = vpop.f32.mrf.mxu0 }
 0x236   :  { %v1644_v59 = vadd.f32 %v1643_v52, %v1476_v51  ;;  %v1746_v15 = vadd.f32 %v1745_v34, %v1642_v47 }
 0x238   :  { %v1748_v4 = vadd.f32 %v1747_v42, %v1644_v59 }
 0x23a   :  { %v1752_v5 = vcombine.low %v1746_v15, %v1748_v4 }
 0x23c   :  { %1754 = vst [vmem:[#allocation13] sm:$0xff] %v1752_v5 }
 0x23d   :  { %2119 = shalt.err (!%p2116_p1)
}
 0x23e   :  { %1764 = dma.vmem_to_hbm [thread:$0]  %s1762_s18, 128, %s3383_s7, [#allocation5]  }
 0x23f   :  { %2136 = dma.done.wait [#allocation5], 128  }
 0x240   :  { %2137 = vsyncadd [#allocation5], 4294967168 }
 0x241   :  { %1768 = vsyncpa [#allocation4], 1 }
 0x242   :  { %1769 = vsyncpa [#allocation8], 1 }
 0x243   :  { %1770 = vsyncpa [#allocation5], 1 }
 0x244   :  { %1771 = vsyncpa [#allocation6], 1 }
 0x245   :  { %1772 = vsyncpa [#allocation11], 1 }

</bundles_post_ra>
